<compile_context>
chip_gen: v7x
topology: tpu7x:2x2x1
jax: 0.10.0
libtpu: 0.0.40
codegen_flags: <defaults>
</compile_context>

<pallas_src>
import functools

import jax
import jax.numpy as jnp
import numpy as np
from jax.experimental import pallas as pl
from jax.experimental.pallas import tpu as pltpu


# ----------------------------- in-kernel helpers ----------------------------- #

def _act(v, act):
    if act == "lrelu":
        return jnp.where(v >= 0, v, 0.05 * v)
    if act == "relu":
        return jnp.maximum(v, 0.0)
    return v


def _conv1x1(wT, b, x_slab, mask, act=None):
    """1x1 conv on a slab: (Cout,Cin)@(Cin,L) + b, re-zero border, activation."""
    y = jnp.dot(wT, x_slab, preferred_element_type=jnp.float32) + b
    return _act(y * mask, act)


def _conv3x3(pad_ref, lead, w9_ref, b, mask, Hh, Ww, res=None, act=None):
    """3x3/pad-1 conv reading a zero-padded-flat ref; returns the output slab.

    pad_ref[lead] is (Cin, (Hh+2)*(Ww+2)) with a correct zero border.  The output
    slab covers padded-flat positions [WP+1, WP+1+L), L = Hh*(Ww+2) - 2; `mask`
    zeroes the left/right padding columns that fall inside the slab.
    """
    WP = Ww + 2
    L = Hh * WP - 2
    acc = None
    for t in range(9):
        dh, dw = divmod(t, 3)
        start = (WP + 1) + (dh - 1) * WP + (dw - 1)
        tap = pad_ref[lead, :, start:start + L]
        y = jnp.dot(w9_ref[t], tap, preferred_element_type=jnp.float32)
        acc = y if acc is None else acc + y
    acc = acc + b
    if res is not None:
        acc = acc + res
    return _act(acc * mask, act)


# ------------------------- kernel 1: fused RFDB trunk ------------------------ #

def _rfdb_trunk_kernel(x_ref, mask_ref,
                       w1d, b1d, w1r, b1r, w2d, b2d, w2r, b2r,
                       w3d, b3d, w3r, b3r, w4, b4, w5s, b5,
                       we1, be1, wef, bef,
                       xe_ref, c1e_ref, cf_ref, r_scr, *, H, W):
    WP = W + 2
    L = H * WP - 2
    s0 = WP + 1
    mask = mask_ref[...]                                   # (1, L)

    r_scr[...] = jnp.zeros_like(r_scr)                     # zero-padded borders

    x_slab = x_ref[0, :, s0:s0 + L]                        # (C, L)

    d1 = _conv1x1(w1d[...], b1d[...], x_slab, mask, "lrelu")
    r1 = _conv3x3(x_ref, 0, w1r, b1r[...], mask, H, W, res=x_slab, act="lrelu")
    r_scr[0, :, s0:s0 + L] = r1

    d2 = _conv1x1(w2d[...], b2d[...], r1, mask, "lrelu")
    r2 = _conv3x3(r_scr, 0, w2r, b2r[...], mask, H, W, res=r1, act="lrelu")
    r_scr[1, :, s0:s0 + L] = r2

    d3 = _conv1x1(w3d[...], b3d[...], r2, mask, "lrelu")
    r3 = _conv3x3(r_scr, 1, w3r, b3r[...], mask, H, W, res=r2, act="lrelu")
    r_scr[2, :, s0:s0 + L] = r3

    r4 = _conv3x3(r_scr, 2, w4, b4[...], mask, H, W, act="lrelu")

    # c5: 1x1 conv over concat([d1, d2, d3, r4]) == sum of four chunked matmuls
    # (no in-kernel concatenation needed).
    xe = (jnp.dot(w5s[0], d1, preferred_element_type=jnp.float32)
          + jnp.dot(w5s[1], d2, preferred_element_type=jnp.float32)
          + jnp.dot(w5s[2], d3, preferred_element_type=jnp.float32)
          + jnp.dot(w5s[3], r4, preferred_element_type=jnp.float32)
          + b5[...]) * mask

    c1e = _conv1x1(we1[...], be1[...], xe, mask)           # ESA conv1 (no act)
    cf = _conv1x1(wef[...], bef[...], c1e, mask)           # ESA conv_f (no act)

    xe_ref[0, :, :] = xe
    c1e_ref[0, :, :] = c1e
    cf_ref[0, :, :] = cf


# -------------------- kernel 2: fused ESA tail + sigmoid gate ---------------- #

def _rfdb_esa_kernel(xe_ref, cf_ref, cols_ref,
                     w2m, b2, wmax, bmax, w3, b3, w3b, b3b, w4T, b4,
                     kup_ref, mask3_ref,
                     out_ref, p_scr, *, OH2, OW2, PH, PW, pk, ps):
    WP3 = PW + 2
    L3 = PH * WP3 - 2
    s3 = WP3 + 1
    mask3 = mask3_ref[...]                                 # (1, L3)

    p_scr[...] = jnp.zeros_like(p_scr)

    # ESA conv2 (3x3, stride 2, pad 0) as one matmul over pre-gathered patches.
    c1m = jnp.dot(w2m[...], cols_ref[0, :, :],
                  preferred_element_type=jnp.float32) + b2[...]      # (f, OH2*OW2)

    # 7x7 / stride-3 max pool: VPU max tree over static lane slices; the pooled
    # values land in a zero-padded small map held in scratch.
    for pi in range(PH):
        for pj in range(PW):
            rows = []
            for r in range(pk):
                a = (pi * ps + r) * OW2 + pj * ps
                rows.append(c1m[:, a:a + pk])
            m = functools.reduce(jnp.maximum, rows)                  # (f, pk)
            pooled = jnp.max(m, axis=1, keepdims=True)               # (f, 1)
            pos = (pi + 1) * WP3 + (pj + 1)
            p_scr[0, :, pos:pos + 1] = pooled

    v_range = _conv3x3(p_scr, 0, wmax, bmax[...], mask3, PH, PW, act="relu")
    p_scr[1, :, s3:s3 + L3] = v_range
    c3a = _conv3x3(p_scr, 1, w3, b3[...], mask3, PH, PW, act="relu")
    p_scr[2, :, s3:s3 + L3] = c3a
    c3fin = _conv3x3(p_scr, 2, w3b, b3b[...], mask3, PH, PW)         # (f, L3)

    # Bilinear upsample (align_corners=False) as a single matmul, then
    # (c3 + cf) -> conv4 -> sigmoid -> gate, all fused in the epilogue.
    c3up = jnp.dot(c3fin, kup_ref[...], preferred_element_type=jnp.float32)  # (f, L)
    tt = c3up + cf_ref[0, :, :]
    c4 = jnp.dot(w4T[...], tt, preferred_element_type=jnp.float32) + b4[...]  # (C, L)
    gate = 1.0 / (1.0 + jnp.exp(-c4))
    out_ref[0, :, :] = xe_ref[0, :, :] * gate


# ------------------------------ Pallas wrapper -------------------------------- #

def rfdb_forward_pallas(x_nchw, p):
    x = x_nchw.astype(jnp.float32)
    B, C, H, W = x.shape
    dc, f = C // 2, C // 4
    HP, WP = H + 2, W + 2
    NPad = HP * WP
    L = H * WP - 2
    s0 = WP + 1

    # ---------------- layout prep (thin glue, all tiny) ---------------- #
    xp = jnp.pad(x, ((0, 0), (0, 0), (1, 1), (1, 1))).reshape(B, C, NPad)
    mask = jnp.pad(jnp.ones((H, W), jnp.float32),
                   ((1, 1), (1, 1))).reshape(NPad)[s0:s0 + L].reshape(1, L)

    def w1x1(name):
        w, b = p[name]
        return (w[:, :, 0, 0].astype(jnp.float32),
                b.reshape(-1, 1).astype(jnp.float32))

    def w3x3(name):
        w, b = p[name]
        w9 = jnp.transpose(w, (2, 3, 0, 1)).reshape(9, w.shape[0], w.shape[1])
        return w9.astype(jnp.float32), b.reshape(-1, 1).astype(jnp.float32)

    w1d, b1d = w1x1("c1_d"); w1r, b1r = w3x3("c1_r")
    w2d, b2d = w1x1("c2_d"); w2r, b2r = w3x3("c2_r")
    w3d, b3d = w1x1("c3_d"); w3r, b3r = w3x3("c3_r")
    w4, b4 = w3x3("c4")
    w5, b5 = w1x1("c5")
    w5s = jnp.stack([w5[:, k * dc:(k + 1) * dc] for k in range(4)], axis=0)
    we1, be1 = w1x1("esa_conv1")
    wef, bef = w1x1("esa_conv_f")

    def bcast_spec(a):
        nd = a.ndim
        return pl.BlockSpec(a.shape, lambda b, _n=nd: (0,) * _n)

    def batch_spec(a):
        nd = a.ndim
        return pl.BlockSpec((1,) + a.shape[1:],
                            lambda b, _n=nd: (b,) + (0,) * (_n - 1))

    cparams = pltpu.CompilerParams(dimension_semantics=("parallel",),
                                   vmem_limit_bytes=32 * 1024 * 1024)

    # ------------------------- fused trunk kernel ------------------------- #
    trunk_in = [xp, mask, w1d, b1d, w1r, b1r, w2d, b2d, w2r, b2r,
                w3d, b3d, w3r, b3r, w4, b4, w5s, b5, we1, be1, wef, bef]
    trunk_specs = [batch_spec(xp)] + [bcast_spec(a) for a in trunk_in[1:]]

    xe_slab, c1_slab, cf_slab = pl.pallas_call(
        functools.partial(_rfdb_trunk_kernel, H=H, W=W),
        out_shape=(jax.ShapeDtypeStruct((B, C, L), jnp.float32),
                   jax.ShapeDtypeStruct((B, f, L), jnp.float32),
                   jax.ShapeDtypeStruct((B, f, L), jnp.float32)),
        grid=(B,),
        in_specs=trunk_specs,
        out_specs=(pl.BlockSpec((1, C, L), lambda b: (b, 0, 0)),
                   pl.BlockSpec((1, f, L), lambda b: (b, 0, 0)),
                   pl.BlockSpec((1, f, L), lambda b: (b, 0, 0))),
        scratch_shapes=[pltpu.VMEM((3, C, NPad), jnp.float32)],
        compiler_params=cparams,
    )(*trunk_in)

    def slab_to_map(slab):                      # (B, Cc, L) -> (B, Cc, H, W)
        Cc = slab.shape[1]
        full = jnp.pad(slab, ((0, 0), (0, 0), (0, 2)))
        return full.reshape(B, Cc, H, WP)[:, :, :, :W]

    # ---------- ESA tail: stride-2 patch gather + interp matrix (glue) ---------- #
    c1_int = slab_to_map(c1_slab)                               # (B, f, H, W)
    OH2 = (H - 3) // 2 + 1
    OW2 = (W - 3) // 2 + 1
    # TODO(synk): the stride-2 patch gather for ESA conv2 stays in plain-JAX glue
    # (tiny tensor); a strided in-kernel gather would remove this last HBM hop.
    patches = [c1_int[:, :, kh:kh + 2 * OH2:2, kw:kw + 2 * OW2:2]
               .reshape(B, f, OH2 * OW2)
               for kh in range(3) for kw in range(3)]
    cols2 = jnp.concatenate(patches, axis=1)                    # (B, 9f, OH2*OW2)

    pk, ps = 7, 3
    PH = (OH2 - pk) // ps + 1
    PW = (OW2 - pk) // ps + 1
    WP3 = PW + 2
    NP3 = (PH + 2) * WP3
    L3 = PH * WP3 - 2
    s3 = WP3 + 1
    mask3 = jnp.pad(jnp.ones((PH, PW), jnp.float32),
                    ((1, 1), (1, 1))).reshape(NP3)[s3:s3 + L3].reshape(1, L3)

    # bilinear (align_corners=False) upsample matrix, in slab coordinates
    def interp_matrix(out_n, in_n):
        d = (jnp.arange(out_n, dtype=jnp.float32) + 0.5) * (in_n / out_n) - 0.5
        d = jnp.clip(d, 0.0, in_n - 1.0)
        i0 = jnp.floor(d).astype(jnp.int32)
        i1 = jnp.minimum(i0 + 1, in_n - 1)
        fr = d - i0.astype(jnp.float32)
        R = jnp.zeros((out_n, in_n), jnp.float32)
        R = R.at[jnp.arange(out_n), i0].add(1.0 - fr)
        R = R.at[jnp.arange(out_n), i1].add(fr)
        return R

    Rh = interp_matrix(H, PH)                                   # (H, PH)
    Rw = interp_matrix(W, PW)                                   # (W, PW)
    k4 = jnp.einsum("yi,xj->ijyx", Rh, Rw)                      # (PH, PW, H, W)
    kfull = jnp.zeros((PH + 2, WP3, HP, WP), jnp.float32)
    kfull = kfull.at[1:PH + 1, 1:PW + 1, 1:H + 1, 1:W + 1].set(k4)
    kup = kfull.reshape(NP3, NPad)[s3:s3 + L3, s0:s0 + L]       # (L3, L)

    w2m_, b2_ = p["esa_conv2"]
    w2m = jnp.transpose(w2m_, (0, 2, 3, 1)).reshape(f, 9 * f).astype(jnp.float32)
    b2 = b2_.reshape(-1, 1).astype(jnp.float32)
    wmax, bmax = w3x3("esa_conv_max")
    w3e, b3e = w3x3("esa_conv3")
    w3be, b3be = w3x3("esa_conv3_")
    w4T, b4e = w1x1("esa_conv4")

    esa_in = [xe_slab, cf_slab, cols2, w2m, b2, wmax, bmax, w3e, b3e,
              w3be, b3be, w4T, b4e, kup, mask3]
    esa_specs = ([batch_spec(xe_slab), batch_spec(cf_slab), batch_spec(cols2)]
                 + [bcast_spec(a) for a in esa_in[3:]])

    out_slab = pl.pallas_call(
        functools.partial(_rfdb_esa_kernel, OH2=OH2, OW2=OW2, PH=PH, PW=PW,
                          pk=pk, ps=ps),
        out_shape=jax.ShapeDtypeStruct((B, C, L), jnp.float32),
        grid=(B,),
        in_specs=esa_specs,
        out_specs=pl.BlockSpec((1, C, L), lambda b: (b, 0, 0)),
        scratch_shapes=[pltpu.VMEM((3, f, NP3), jnp.float32)],
        compiler_params=cparams,
    )(*esa_in)

    return slab_to_map(out_slab)                                # (B, C, H, W) NCHW


# ------------------------ pure-JAX reference (NCHW) --------------------------- #

def bilinear_resize_nhwc(x, out_h, out_w):
    """F.interpolate(mode='bilinear', align_corners=False) semantics, NHWC."""
    B, H, W, C = x.shape

    def coords(out, inp):
        d = (jnp.arange(out, dtype=jnp.float32) + 0.5) * (inp / out) - 0.5
        d = jnp.clip(d, 0.0, inp - 1.0)
        i0 = jnp.floor(d).astype(jnp.int32)
        i1 = jnp.minimum(i0 + 1, inp - 1)
        fr = d - i0.astype(jnp.float32)
        return i0, i1, fr

    h0, h1, fh = coords(out_h, H)
    w0, w1, fw = coords(out_w, W)
    xh0 = x[:, h0, :, :]
    xh1 = x[:, h1, :, :]
    fw_ = fw[None, None, :, None]
    top = xh0[:, :, w0, :] * (1 - fw_) + xh0[:, :, w1, :] * fw_
    bot = xh1[:, :, w0, :] * (1 - fw_) + xh1[:, :, w1, :] * fw_
    fh_ = fh[None, :, None, None]
    return top * (1 - fh_) + bot * fh_


def rfdb_forward_ref(x, p):
    lrelu = lambda v: jnp.where(v >= 0, v, 0.05 * v)
    relu = lambda v: jnp.maximum(v, 0.0)

    def conv(xx, wb, stride=1, pad=0):
        w, b = wb
        y = jax.lax.conv_general_dilated(
            xx, w, (stride, stride), ((pad, pad), (pad, pad)),
            dimension_numbers=("NCHW", "OIHW", "NCHW"))
        return y + b[None, :, None, None]

    d1 = lrelu(conv(x, p["c1_d"]))
    r1 = lrelu(conv(x, p["c1_r"], pad=1) + x)
    d2 = lrelu(conv(r1, p["c2_d"]))
    r2 = lrelu(conv(r1, p["c2_r"], pad=1) + r1)
    d3 = lrelu(conv(r2, p["c3_d"]))
    r3 = lrelu(conv(r2, p["c3_r"], pad=1) + r2)
    r4 = lrelu(conv(r3, p["c4"], pad=1))
    out = jnp.concatenate([d1, d2, d3, r4], axis=1)
    xe = conv(out, p["c5"])

    c1_ = conv(xe, p["esa_conv1"])
    c1 = conv(c1_, p["esa_conv2"], stride=2, pad=0)
    v_max = jax.lax.reduce_window(c1, -jnp.inf, jax.lax.max,
                                  (1, 1, 7, 7), (1, 1, 3, 3), "VALID")
    v_range = relu(conv(v_max, p["esa_conv_max"], pad=1))
    c3 = relu(conv(v_range, p["esa_conv3"], pad=1))
    c3 = conv(c3, p["esa_conv3_"], pad=1)
    c3 = jnp.transpose(
        bilinear_resize_nhwc(jnp.transpose(c3, (0, 2, 3, 1)), x.shape[2], x.shape[3]),
        (0, 3, 1, 2))
    cf = conv(c1_, p["esa_conv_f"])
    c4 = conv(c3 + cf, p["esa_conv4"])
    m = 1.0 / (1.0 + jnp.exp(-c4))
    return xe * m


# ---------------------------------- params ------------------------------------ #

def make_params(key, in_channels):
    dc = in_channels // 2
    f = in_channels // 4

    def conv_p(k, cout, cin, ksize):
        kw, kb = jax.random.split(k)
        w = jax.random.normal(kw, (cout, cin, ksize, ksize), jnp.float32)
        w = w * (1.0 / np.sqrt(cin * ksize * ksize))
        b = 0.1 * jax.random.normal(kb, (cout,), jnp.float32)
        return (w, b)

    names_shapes = [
        ("c1_d", (dc, in_channels, 1)), ("c1_r", (in_channels, in_channels, 3)),
        ("c2_d", (dc, in_channels, 1)), ("c2_r", (in_channels, in_channels, 3)),
        ("c3_d", (dc, in_channels, 1)), ("c3_r", (in_channels, in_channels, 3)),
        ("c4", (dc, in_channels, 3)), ("c5", (in_channels, dc * 4, 1)),
        ("esa_conv1", (f, in_channels, 1)), ("esa_conv_f", (f, f, 1)),
        ("esa_conv_max", (f, f, 3)), ("esa_conv2", (f, f, 3)),
        ("esa_conv3", (f, f, 3)), ("esa_conv3_", (f, f, 3)),
        ("esa_conv4", (in_channels, f, 1)),
    ]
    keys = jax.random.split(key, len(names_shapes))
    return {name: conv_p(k, *shape) for k, (name, shape) in zip(keys, names_shapes)}


# ----------------------------------- main -------------------------------------- #

if __name__ == "__main__":
    B, C, H, W = 2, 4, 16, 16                       # in_channels=4 -> dc=2, ESA f=1
    key = jax.random.PRNGKey(0)
    kx, kp = jax.random.split(key)
    x = jax.random.normal(kx, (B, C, H, W), jnp.float32)
    params = make_params(kp, C)

    out_pallas = jax.block_until_ready(jax.jit(rfdb_forward_pallas)(x, params))
    out_ref = jax.block_until_ready(jax.jit(rfdb_forward_ref)(x, params))

    assert out_pallas.shape == (B, C, H, W), out_pallas.shape
    np.testing.assert_allclose(np.asarray(out_pallas), np.asarray(out_ref),
                               rtol=1e-3, atol=1e-3)
    print("KERNEL_OK")
</pallas_src>

<mosaic_0001>
module attributes {stable_mosaic.version = 11 : i64} {
  func.func private @main(%arg0: i32) attributes {dimension_semantics = [#tpu.dimension_semantics<core_parallel>], iteration_bounds = array<i64: 2>, tpu.core_type = #tpu.core_type<sc_scalar_subcore>, window_params = []} {
    return
  }
}

module attributes {stable_mosaic.version = 11 : i64} {
  func.func private @main(%arg0: i32) attributes {dimension_semantics = [#tpu.dimension_semantics<core_parallel>], iteration_bounds = array<i64: 2>, tpu.core_type = #tpu.core_type<sc_scalar_subcore>, window_params = []} {
    return
  }
}

module attributes {stable_mosaic.version = 11 : i64} {
  func.func @_rfdb_trunk_kernel(%arg0: i32, %arg1: memref<1x4x324xf32, #tpu.memory_space<vmem>>, %arg2: memref<1x286xf32, #tpu.memory_space<vmem>>, %arg3: memref<2x4xf32, #tpu.memory_space<vmem>>, %arg4: memref<2x1xf32, #tpu.memory_space<vmem>>, %arg5: memref<9x4x4xf32, #tpu.memory_space<vmem>>, %arg6: memref<4x1xf32, #tpu.memory_space<vmem>>, %arg7: memref<2x4xf32, #tpu.memory_space<vmem>>, %arg8: memref<2x1xf32, #tpu.memory_space<vmem>>, %arg9: memref<9x4x4xf32, #tpu.memory_space<vmem>>, %arg10: memref<4x1xf32, #tpu.memory_space<vmem>>, %arg11: memref<2x4xf32, #tpu.memory_space<vmem>>, %arg12: memref<2x1xf32, #tpu.memory_space<vmem>>, %arg13: memref<9x4x4xf32, #tpu.memory_space<vmem>>, %arg14: memref<4x1xf32, #tpu.memory_space<vmem>>, %arg15: memref<9x2x4xf32, #tpu.memory_space<vmem>>, %arg16: memref<2x1xf32, #tpu.memory_space<vmem>>, %arg17: memref<4x4x2xf32, #tpu.memory_space<vmem>>, %arg18: memref<4x1xf32, #tpu.memory_space<vmem>>, %arg19: memref<1x4xf32, #tpu.memory_space<vmem>>, %arg20: memref<1x1xf32, #tpu.memory_space<vmem>>, %arg21: memref<1x1xf32, #tpu.memory_space<vmem>>, %arg22: memref<1x1xf32, #tpu.memory_space<vmem>>, %arg23: memref<1x4x286xf32, #tpu.memory_space<vmem>>, %arg24: memref<1x1x286xf32, #tpu.memory_space<vmem>>, %arg25: memref<1x1x286xf32, #tpu.memory_space<vmem>>, %arg26: memref<3x4x324xf32, #tpu.memory_space<vmem>>) attributes {dimension_semantics = [#tpu.dimension_semantics<parallel>], iteration_bounds = array<i64: 2>, scalar_prefetch = 0 : i64, scratch_operands = 1 : i64, tpu.core_type = #tpu.core_type<tc>, window_params = [{transform_indices = @transform_0, window_bounds = array<i64: 1, 4, 324>}, {pipeline_mode = #tpu.pipeline_mode<synchronous>, transform_indices = @transform_1, window_bounds = array<i64: 1, 286>}, {pipeline_mode = #tpu.pipeline_mode<synchronous>, transform_indices = @transform_2, window_bounds = array<i64: 2, 4>}, {pipeline_mode = #tpu.pipeline_mode<synchronous>, transform_indices = @transform_3, window_bounds = array<i64: 2, 1>}, {pipeline_mode = #tpu.pipeline_mode<synchronous>, transform_indices = @transform_4, window_bounds = array<i64: 9, 4, 4>}, {pipeline_mode = #tpu.pipeline_mode<synchronous>, transform_indices = @transform_5, window_bounds = array<i64: 4, 1>}, {pipeline_mode = #tpu.pipeline_mode<synchronous>, transform_indices = @transform_6, window_bounds = array<i64: 2, 4>}, {pipeline_mode = #tpu.pipeline_mode<synchronous>, transform_indices = @transform_7, window_bounds = array<i64: 2, 1>}, {pipeline_mode = #tpu.pipeline_mode<synchronous>, transform_indices = @transform_8, window_bounds = array<i64: 9, 4, 4>}, {pipeline_mode = #tpu.pipeline_mode<synchronous>, transform_indices = @transform_9, window_bounds = array<i64: 4, 1>}, {pipeline_mode = #tpu.pipeline_mode<synchronous>, transform_indices = @transform_10, window_bounds = array<i64: 2, 4>}, {pipeline_mode = #tpu.pipeline_mode<synchronous>, transform_indices = @transform_11, window_bounds = array<i64: 2, 1>}, {pipeline_mode = #tpu.pipeline_mode<synchronous>, transform_indices = @transform_12, window_bounds = array<i64: 9, 4, 4>}, {pipeline_mode = #tpu.pipeline_mode<synchronous>, transform_indices = @transform_13, window_bounds = array<i64: 4, 1>}, {pipeline_mode = #tpu.pipeline_mode<synchronous>, transform_indices = @transform_14, window_bounds = array<i64: 9, 2, 4>}, {pipeline_mode = #tpu.pipeline_mode<synchronous>, transform_indices = @transform_15, window_bounds = array<i64: 2, 1>}, {pipeline_mode = #tpu.pipeline_mode<synchronous>, transform_indices = @transform_16, window_bounds = array<i64: 4, 4, 2>}, {pipeline_mode = #tpu.pipeline_mode<synchronous>, transform_indices = @transform_17, window_bounds = array<i64: 4, 1>}, {pipeline_mode = #tpu.pipeline_mode<synchronous>, transform_indices = @transform_18, window_bounds = array<i64: 1, 4>}, {pipeline_mode = #tpu.pipeline_mode<synchronous>, transform_indices = @transform_19, window_bounds = array<i64: 1, 1>}, {pipeline_mode = #tpu.pipeline_mode<synchronous>, transform_indices = @transform_20, window_bounds = array<i64: 1, 1>}, {pipeline_mode = #tpu.pipeline_mode<synchronous>, transform_indices = @transform_21, window_bounds = array<i64: 1, 1>}, {transform_indices = @transform_22, window_bounds = array<i64: 1, 4, 286>}, {transform_indices = @transform_23, window_bounds = array<i64: 1, 1, 286>}, {transform_indices = @transform_24, window_bounds = array<i64: 1, 1, 286>}]} {
    %c0 = arith.constant 0 : index
    %c0_0 = arith.constant 0 : index
    %0 = vector.load %arg2[%c0, %c0_0] : memref<1x286xf32, #tpu.memory_space<vmem>>, vector<1x286xf32>
    %cst = arith.constant 0.000000e+00 : f32
    %1 = vector.broadcast %cst : f32 to vector<3x4x324xf32>
    %c0_1 = arith.constant 0 : index
    %c0_2 = arith.constant 0 : index
    %c0_3 = arith.constant 0 : index
    %2 = vector.load %arg26[%c0_1, %c0_2, %c0_3] : memref<3x4x324xf32, #tpu.memory_space<vmem>>, vector<3x4x324xf32>
    tpu.vector_store %arg26[%c0_1, %c0_2, %c0_3], %1 {strides = array<i32>} : memref<3x4x324xf32, #tpu.memory_space<vmem>>, vector<3x4x324xf32>,
    %c0_4 = arith.constant 0 : index
    %c0_5 = arith.constant 0 : index
    %c19 = arith.constant 19 : index
    %3 = vector.load %arg1[%c0_4, %c0_5, %c19] : memref<1x4x324xf32, #tpu.memory_space<vmem>>, vector<1x4x286xf32>
    %4 = vector.shape_cast %3 : vector<1x4x286xf32> to vector<4x286xf32>
    %c0_6 = arith.constant 0 : index
    %c0_7 = arith.constant 0 : index
    %5 = vector.load %arg3[%c0_6, %c0_7] : memref<2x4xf32, #tpu.memory_space<vmem>>, vector<2x4xf32>
    %c0_8 = arith.constant 0 : index
    %c0_9 = arith.constant 0 : index
    %6 = vector.load %arg4[%c0_8, %c0_9] : memref<2x1xf32, #tpu.memory_space<vmem>>, vector<2x1xf32>
    %cst_10 = arith.constant dense<0.000000e+00> : vector<2x286xf32>
    %7 = tpu.matmul %5, %4, %cst_10 {dimension_numbers = #tpu.dot_dimension_numbers<[1], [0], [0], [1], [0, 0, 1, 1], [], []>} : vector<2x4xf32>, vector<4x286xf32>, vector<2x286xf32> -> vector<2x286xf32>
    %8 = vector.broadcast %6 : vector<2x1xf32> to vector<2x286xf32>
    %9 = arith.addf %7, %8 : vector<2x286xf32>
    %10 = vector.broadcast %0 : vector<1x286xf32> to vector<2x286xf32>
    %11 = arith.mulf %9, %10 : vector<2x286xf32>
    %cst_11 = arith.constant 0.000000e+00 : f32
    %12 = vector.broadcast %cst_11 : f32 to vector<2x286xf32>
    %13 = arith.cmpf oge, %11, %12 : vector<2x286xf32>
    %cst_12 = arith.constant 5.000000e-02 : f32
    %14 = vector.broadcast %cst_12 : f32 to vector<2x286xf32>
    %15 = arith.mulf %14, %11 : vector<2x286xf32>
    %16 = arith.select %13, %11, %15 : vector<2x286xi1>, vector<2x286xf32>
    %c0_13 = arith.constant 0 : index
    %c0_14 = arith.constant 0 : index
    %17 = vector.load %arg6[%c0_13, %c0_14] : memref<4x1xf32, #tpu.memory_space<vmem>>, vector<4x1xf32>
    %c0_15 = arith.constant 0 : index
    %c0_16 = arith.constant 0 : index
    %c0_17 = arith.constant 0 : index
    %18 = vector.load %arg1[%c0_15, %c0_16, %c0_17] : memref<1x4x324xf32, #tpu.memory_space<vmem>>, vector<1x4x286xf32>
    %19 = vector.shape_cast %18 : vector<1x4x286xf32> to vector<4x286xf32>
    %c0_18 = arith.constant 0 : index
    %c0_19 = arith.constant 0 : index
    %c0_20 = arith.constant 0 : index
    %20 = vector.load %arg5[%c0_18, %c0_19, %c0_20] : memref<9x4x4xf32, #tpu.memory_space<vmem>>, vector<1x4x4xf32>
    %21 = vector.shape_cast %20 : vector<1x4x4xf32> to vector<4x4xf32>
    %cst_21 = arith.constant dense<0.000000e+00> : vector<4x286xf32>
    %22 = tpu.matmul %21, %19, %cst_21 {dimension_numbers = #tpu.dot_dimension_numbers<[1], [0], [0], [1], [0, 0, 1, 1], [], []>} : vector<4x4xf32>, vector<4x286xf32>, vector<4x286xf32> -> vector<4x286xf32>
    %c0_22 = arith.constant 0 : index
    %c0_23 = arith.constant 0 : index
    %c1 = arith.constant 1 : index
    %23 = vector.load %arg1[%c0_22, %c0_23, %c1] : memref<1x4x324xf32, #tpu.memory_space<vmem>>, vector<1x4x286xf32>
    %24 = vector.shape_cast %23 : vector<1x4x286xf32> to vector<4x286xf32>
    %c1_24 = arith.constant 1 : index
    %c0_25 = arith.constant 0 : index
    %c0_26 = arith.constant 0 : index
    %25 = vector.load %arg5[%c1_24, %c0_25, %c0_26] : memref<9x4x4xf32, #tpu.memory_space<vmem>>, vector<1x4x4xf32>
    %26 = vector.shape_cast %25 : vector<1x4x4xf32> to vector<4x4xf32>
    %cst_27 = arith.constant dense<0.000000e+00> : vector<4x286xf32>
    %27 = tpu.matmul %26, %24, %cst_27 {dimension_numbers = #tpu.dot_dimension_numbers<[1], [0], [0], [1], [0, 0, 1, 1], [], []>} : vector<4x4xf32>, vector<4x286xf32>, vector<4x286xf32> -> vector<4x286xf32>
    %28 = arith.addf %22, %27 : vector<4x286xf32>
    %c0_28 = arith.constant 0 : index
    %c0_29 = arith.constant 0 : index
    %c2 = arith.constant 2 : index
    %29 = vector.load %arg1[%c0_28, %c0_29, %c2] : memref<1x4x324xf32, #tpu.memory_space<vmem>>, vector<1x4x286xf32>
    %30 = vector.shape_cast %29 : vector<1x4x286xf32> to vector<4x286xf32>
    %c2_30 = arith.constant 2 : index
    %c0_31 = arith.constant 0 : index
    %c0_32 = arith.constant 0 : index
    %31 = vector.load %arg5[%c2_30, %c0_31, %c0_32] : memref<9x4x4xf32, #tpu.memory_space<vmem>>, vector<1x4x4xf32>
    %32 = vector.shape_cast %31 : vector<1x4x4xf32> to vector<4x4xf32>
    %cst_33 = arith.constant dense<0.000000e+00> : vector<4x286xf32>
    %33 = tpu.matmul %32, %30, %cst_33 {dimension_numbers = #tpu.dot_dimension_numbers<[1], [0], [0], [1], [0, 0, 1, 1], [], []>} : vector<4x4xf32>, vector<4x286xf32>, vector<4x286xf32> -> vector<4x286xf32>
    %34 = arith.addf %28, %33 : vector<4x286xf32>
    %c0_34 = arith.constant 0 : index
    %c0_35 = arith.constant 0 : index
    %c18 = arith.constant 18 : index
    %35 = vector.load %arg1[%c0_34, %c0_35, %c18] : memref<1x4x324xf32, #tpu.memory_space<vmem>>, vector<1x4x286xf32>
    %36 = vector.shape_cast %35 : vector<1x4x286xf32> to vector<4x286xf32>
    %c3 = arith.constant 3 : index
    %c0_36 = arith.constant 0 : index
    %c0_37 = arith.constant 0 : index
    %37 = vector.load %arg5[%c3, %c0_36, %c0_37] : memref<9x4x4xf32, #tpu.memory_space<vmem>>, vector<1x4x4xf32>
    %38 = vector.shape_cast %37 : vector<1x4x4xf32> to vector<4x4xf32>
    %cst_38 = arith.constant dense<0.000000e+00> : vector<4x286xf32>
    %39 = tpu.matmul %38, %36, %cst_38 {dimension_numbers = #tpu.dot_dimension_numbers<[1], [0], [0], [1], [0, 0, 1, 1], [], []>} : vector<4x4xf32>, vector<4x286xf32>, vector<4x286xf32> -> vector<4x286xf32>
    %40 = arith.addf %34, %39 : vector<4x286xf32>
    %c0_39 = arith.constant 0 : index
    %c0_40 = arith.constant 0 : index
    %c19_41 = arith.constant 19 : index
    %41 = vector.load %arg1[%c0_39, %c0_40, %c19_41] : memref<1x4x324xf32, #tpu.memory_space<vmem>>, vector<1x4x286xf32>
    %42 = vector.shape_cast %41 : vector<1x4x286xf32> to vector<4x286xf32>
    %c4 = arith.constant 4 : index
    %c0_42 = arith.constant 0 : index
    %c0_43 = arith.constant 0 : index
    %43 = vector.load %arg5[%c4, %c0_42, %c0_43] : memref<9x4x4xf32, #tpu.memory_space<vmem>>, vector<1x4x4xf32>
    %44 = vector.shape_cast %43 : vector<1x4x4xf32> to vector<4x4xf32>
    %cst_44 = arith.constant dense<0.000000e+00> : vector<4x286xf32>
    %45 = tpu.matmul %44, %42, %cst_44 {dimension_numbers = #tpu.dot_dimension_numbers<[1], [0], [0], [1], [0, 0, 1, 1], [], []>} : vector<4x4xf32>, vector<4x286xf32>, vector<4x286xf32> -> vector<4x286xf32>
    %46 = arith.addf %40, %45 : vector<4x286xf32>
    %c0_45 = arith.constant 0 : index
    %c0_46 = arith.constant 0 : index
    %c20 = arith.constant 20 : index
    %47 = vector.load %arg1[%c0_45, %c0_46, %c20] : memref<1x4x324xf32, #tpu.memory_space<vmem>>, vector<1x4x286xf32>
    %48 = vector.shape_cast %47 : vector<1x4x286xf32> to vector<4x286xf32>
    %c5 = arith.constant 5 : index
    %c0_47 = arith.constant 0 : index
    %c0_48 = arith.constant 0 : index
    %49 = vector.load %arg5[%c5, %c0_47, %c0_48] : memref<9x4x4xf32, #tpu.memory_space<vmem>>, vector<1x4x4xf32>
    %50 = vector.shape_cast %49 : vector<1x4x4xf32> to vector<4x4xf32>
    %cst_49 = arith.constant dense<0.000000e+00> : vector<4x286xf32>
    %51 = tpu.matmul %50, %48, %cst_49 {dimension_numbers = #tpu.dot_dimension_numbers<[1], [0], [0], [1], [0, 0, 1, 1], [], []>} : vector<4x4xf32>, vector<4x286xf32>, vector<4x286xf32> -> vector<4x286xf32>
    %52 = arith.addf %46, %51 : vector<4x286xf32>
    %c0_50 = arith.constant 0 : index
    %c0_51 = arith.constant 0 : index
    %c36 = arith.constant 36 : index
    %53 = vector.load %arg1[%c0_50, %c0_51, %c36] : memref<1x4x324xf32, #tpu.memory_space<vmem>>, vector<1x4x286xf32>
    %54 = vector.shape_cast %53 : vector<1x4x286xf32> to vector<4x286xf32>
    %c6 = arith.constant 6 : index
    %c0_52 = arith.constant 0 : index
    %c0_53 = arith.constant 0 : index
    %55 = vector.load %arg5[%c6, %c0_52, %c0_53] : memref<9x4x4xf32, #tpu.memory_space<vmem>>, vector<1x4x4xf32>
    %56 = vector.shape_cast %55 : vector<1x4x4xf32> to vector<4x4xf32>
    %cst_54 = arith.constant dense<0.000000e+00> : vector<4x286xf32>
    %57 = tpu.matmul %56, %54, %cst_54 {dimension_numbers = #tpu.dot_dimension_numbers<[1], [0], [0], [1], [0, 0, 1, 1], [], []>} : vector<4x4xf32>, vector<4x286xf32>, vector<4x286xf32> -> vector<4x286xf32>
    %58 = arith.addf %52, %57 : vector<4x286xf32>
    %c0_55 = arith.constant 0 : index
    %c0_56 = arith.constant 0 : index
    %c37 = arith.constant 37 : index
    %59 = vector.load %arg1[%c0_55, %c0_56, %c37] : memref<1x4x324xf32, #tpu.memory_space<vmem>>, vector<1x4x286xf32>
    %60 = vector.shape_cast %59 : vector<1x4x286xf32> to vector<4x286xf32>
    %c7 = arith.constant 7 : index
    %c0_57 = arith.constant 0 : index
    %c0_58 = arith.constant 0 : index
    %61 = vector.load %arg5[%c7, %c0_57, %c0_58] : memref<9x4x4xf32, #tpu.memory_space<vmem>>, vector<1x4x4xf32>
    %62 = vector.shape_cast %61 : vector<1x4x4xf32> to vector<4x4xf32>
    %cst_59 = arith.constant dense<0.000000e+00> : vector<4x286xf32>
    %63 = tpu.matmul %62, %60, %cst_59 {dimension_numbers = #tpu.dot_dimension_numbers<[1], [0], [0], [1], [0, 0, 1, 1], [], []>} : vector<4x4xf32>, vector<4x286xf32>, vector<4x286xf32> -> vector<4x286xf32>
    %64 = arith.addf %58, %63 : vector<4x286xf32>
    %c0_60 = arith.constant 0 : index
    %c0_61 = arith.constant 0 : index
    %c38 = arith.constant 38 : index
    %65 = vector.load %arg1[%c0_60, %c0_61, %c38] : memref<1x4x324xf32, #tpu.memory_space<vmem>>, vector<1x4x286xf32>
    %66 = vector.shape_cast %65 : vector<1x4x286xf32> to vector<4x286xf32>
    %c8 = arith.constant 8 : index
    %c0_62 = arith.constant 0 : index
    %c0_63 = arith.constant 0 : index
    %67 = vector.load %arg5[%c8, %c0_62, %c0_63] : memref<9x4x4xf32, #tpu.memory_space<vmem>>, vector<1x4x4xf32>
    %68 = vector.shape_cast %67 : vector<1x4x4xf32> to vector<4x4xf32>
    %cst_64 = arith.constant dense<0.000000e+00> : vector<4x286xf32>
    %69 = tpu.matmul %68, %66, %cst_64 {dimension_numbers = #tpu.dot_dimension_numbers<[1], [0], [0], [1], [0, 0, 1, 1], [], []>} : vector<4x4xf32>, vector<4x286xf32>, vector<4x286xf32> -> vector<4x286xf32>
    %70 = arith.addf %64, %69 : vector<4x286xf32>
    %71 = vector.broadcast %17 : vector<4x1xf32> to vector<4x286xf32>
    %72 = arith.addf %70, %71 : vector<4x286xf32>
    %73 = arith.addf %72, %4 : vector<4x286xf32>
    %74 = vector.broadcast %0 : vector<1x286xf32> to vector<4x286xf32>
    %75 = arith.mulf %73, %74 : vector<4x286xf32>
    %cst_65 = arith.constant 0.000000e+00 : f32
    %76 = vector.broadcast %cst_65 : f32 to vector<4x286xf32>
    %77 = arith.cmpf oge, %75, %76 : vector<4x286xf32>
    %cst_66 = arith.constant 5.000000e-02 : f32
    %78 = vector.broadcast %cst_66 : f32 to vector<4x286xf32>
    %79 = arith.mulf %78, %75 : vector<4x286xf32>
    %80 = arith.select %77, %75, %79 : vector<4x286xi1>, vector<4x286xf32>
    %c0_67 = arith.constant 0 : index
    %c0_68 = arith.constant 0 : index
    %c19_69 = arith.constant 19 : index
    %81 = vector.load %arg26[%c0_67, %c0_68, %c19_69] : memref<3x4x324xf32, #tpu.memory_space<vmem>>, vector<1x4x286xf32>
    %82 = vector.shape_cast %81 : vector<1x4x286xf32> to vector<4x286xf32>
    %83 = vector.shape_cast %80 : vector<4x286xf32> to vector<1x4x286xf32>
    tpu.vector_store %arg26[%c0_67, %c0_68, %c19_69], %83 {strides = array<i32>} : memref<3x4x324xf32, #tpu.memory_space<vmem>>, vector<1x4x286xf32>,
    %c0_70 = arith.constant 0 : index
    %c0_71 = arith.constant 0 : index
    %84 = vector.load %arg7[%c0_70, %c0_71] : memref<2x4xf32, #tpu.memory_space<vmem>>, vector<2x4xf32>
    %c0_72 = arith.constant 0 : index
    %c0_73 = arith.constant 0 : index
    %85 = vector.load %arg8[%c0_72, %c0_73] : memref<2x1xf32, #tpu.memory_space<vmem>>, vector<2x1xf32>
    %cst_74 = arith.constant dense<0.000000e+00> : vector<2x286xf32>
    %86 = tpu.matmul %84, %80, %cst_74 {dimension_numbers = #tpu.dot_dimension_numbers<[1], [0], [0], [1], [0, 0, 1, 1], [], []>} : vector<2x4xf32>, vector<4x286xf32>, vector<2x286xf32> -> vector<2x286xf32>
    %87 = vector.broadcast %85 : vector<2x1xf32> to vector<2x286xf32>
    %88 = arith.addf %86, %87 : vector<2x286xf32>
    %89 = vector.broadcast %0 : vector<1x286xf32> to vector<2x286xf32>
    %90 = arith.mulf %88, %89 : vector<2x286xf32>
    %cst_75 = arith.constant 0.000000e+00 : f32
    %91 = vector.broadcast %cst_75 : f32 to vector<2x286xf32>
    %92 = arith.cmpf oge, %90, %91 : vector<2x286xf32>
    %cst_76 = arith.constant 5.000000e-02 : f32
    %93 = vector.broadcast %cst_76 : f32 to vector<2x286xf32>
    %94 = arith.mulf %93, %90 : vector<2x286xf32>
    %95 = arith.select %92, %90, %94 : vector<2x286xi1>, vector<2x286xf32>
    %c0_77 = arith.constant 0 : index
    %c0_78 = arith.constant 0 : index
    %96 = vector.load %arg10[%c0_77, %c0_78] : memref<4x1xf32, #tpu.memory_space<vmem>>, vector<4x1xf32>
    %c0_79 = arith.constant 0 : index
    %c0_80 = arith.constant 0 : index
    %c0_81 = arith.constant 0 : index
    %97 = vector.load %arg26[%c0_79, %c0_80, %c0_81] : memref<3x4x324xf32, #tpu.memory_space<vmem>>, vector<1x4x286xf32>
    %98 = vector.shape_cast %97 : vector<1x4x286xf32> to vector<4x286xf32>
    %c0_82 = arith.constant 0 : index
    %c0_83 = arith.constant 0 : index
    %c0_84 = arith.constant 0 : index
    %99 = vector.load %arg9[%c0_82, %c0_83, %c0_84] : memref<9x4x4xf32, #tpu.memory_space<vmem>>, vector<1x4x4xf32>
    %100 = vector.shape_cast %99 : vector<1x4x4xf32> to vector<4x4xf32>
    %cst_85 = arith.constant dense<0.000000e+00> : vector<4x286xf32>
    %101 = tpu.matmul %100, %98, %cst_85 {dimension_numbers = #tpu.dot_dimension_numbers<[1], [0], [0], [1], [0, 0, 1, 1], [], []>} : vector<4x4xf32>, vector<4x286xf32>, vector<4x286xf32> -> vector<4x286xf32>
    %c0_86 = arith.constant 0 : index
    %c0_87 = arith.constant 0 : index
    %c1_88 = arith.constant 1 : index
    %102 = vector.load %arg26[%c0_86, %c0_87, %c1_88] : memref<3x4x324xf32, #tpu.memory_space<vmem>>, vector<1x4x286xf32>
    %103 = vector.shape_cast %102 : vector<1x4x286xf32> to vector<4x286xf32>
    %c1_89 = arith.constant 1 : index
    %c0_90 = arith.constant 0 : index
    %c0_91 = arith.constant 0 : index
    %104 = vector.load %arg9[%c1_89, %c0_90, %c0_91] : memref<9x4x4xf32, #tpu.memory_space<vmem>>, vector<1x4x4xf32>
    %105 = vector.shape_cast %104 : vector<1x4x4xf32> to vector<4x4xf32>
    %cst_92 = arith.constant dense<0.000000e+00> : vector<4x286xf32>
    %106 = tpu.matmul %105, %103, %cst_92 {dimension_numbers = #tpu.dot_dimension_numbers<[1], [0], [0], [1], [0, 0, 1, 1], [], []>} : vector<4x4xf32>, vector<4x286xf32>, vector<4x286xf32> -> vector<4x286xf32>
    %107 = arith.addf %101, %106 : vector<4x286xf32>
    %c0_93 = arith.constant 0 : index
    %c0_94 = arith.constant 0 : index
    %c2_95 = arith.constant 2 : index
    %108 = vector.load %arg26[%c0_93, %c0_94, %c2_95] : memref<3x4x324xf32, #tpu.memory_space<vmem>>, vector<1x4x286xf32>
    %109 = vector.shape_cast %108 : vector<1x4x286xf32> to vector<4x286xf32>
    %c2_96 = arith.constant 2 : index
    %c0_97 = arith.constant 0 : index
    %c0_98 = arith.constant 0 : index
    %110 = vector.load %arg9[%c2_96, %c0_97, %c0_98] : memref<9x4x4xf32, #tpu.memory_space<vmem>>, vector<1x4x4xf32>
    %111 = vector.shape_cast %110 : vector<1x4x4xf32> to vector<4x4xf32>
    %cst_99 = arith.constant dense<0.000000e+00> : vector<4x286xf32>
    %112 = tpu.matmul %111, %109, %cst_99 {dimension_numbers = #tpu.dot_dimension_numbers<[1], [0], [0], [1], [0, 0, 1, 1], [], []>} : vector<4x4xf32>, vector<4x286xf32>, vector<4x286xf32> -> vector<4x286xf32>
    %113 = arith.addf %107, %112 : vector<4x286xf32>
    %c0_100 = arith.constant 0 : index
    %c0_101 = arith.constant 0 : index
    %c18_102 = arith.constant 18 : index
    %114 = vector.load %arg26[%c0_100, %c0_101, %c18_102] : memref<3x4x324xf32, #tpu.memory_space<vmem>>, vector<1x4x286xf32>
    %115 = vector.shape_cast %114 : vector<1x4x286xf32> to vector<4x286xf32>
    %c3_103 = arith.constant 3 : index
    %c0_104 = arith.constant 0 : index
    %c0_105 = arith.constant 0 : index
    %116 = vector.load %arg9[%c3_103, %c0_104, %c0_105] : memref<9x4x4xf32, #tpu.memory_space<vmem>>, vector<1x4x4xf32>
    %117 = vector.shape_cast %116 : vector<1x4x4xf32> to vector<4x4xf32>
    %cst_106 = arith.constant dense<0.000000e+00> : vector<4x286xf32>
    %118 = tpu.matmul %117, %115, %cst_106 {dimension_numbers = #tpu.dot_dimension_numbers<[1], [0], [0], [1], [0, 0, 1, 1], [], []>} : vector<4x4xf32>, vector<4x286xf32>, vector<4x286xf32> -> vector<4x286xf32>
    %119 = arith.addf %113, %118 : vector<4x286xf32>
    %c0_107 = arith.constant 0 : index
    %c0_108 = arith.constant 0 : index
    %c19_109 = arith.constant 19 : index
    %120 = vector.load %arg26[%c0_107, %c0_108, %c19_109] : memref<3x4x324xf32, #tpu.memory_space<vmem>>, vector<1x4x286xf32>
    %121 = vector.shape_cast %120 : vector<1x4x286xf32> to vector<4x286xf32>
    %c4_110 = arith.constant 4 : index
    %c0_111 = arith.constant 0 : index
    %c0_112 = arith.constant 0 : index
    %122 = vector.load %arg9[%c4_110, %c0_111, %c0_112] : memref<9x4x4xf32, #tpu.memory_space<vmem>>, vector<1x4x4xf32>
    %123 = vector.shape_cast %122 : vector<1x4x4xf32> to vector<4x4xf32>
    %cst_113 = arith.constant dense<0.000000e+00> : vector<4x286xf32>
    %124 = tpu.matmul %123, %121, %cst_113 {dimension_numbers = #tpu.dot_dimension_numbers<[1], [0], [0], [1], [0, 0, 1, 1], [], []>} : vector<4x4xf32>, vector<4x286xf32>, vector<4x286xf32> -> vector<4x286xf32>
    %125 = arith.addf %119, %124 : vector<4x286xf32>
    %c0_114 = arith.constant 0 : index
    %c0_115 = arith.constant 0 : index
    %c20_116 = arith.constant 20 : index
    %126 = vector.load %arg26[%c0_114, %c0_115, %c20_116] : memref<3x4x324xf32, #tpu.memory_space<vmem>>, vector<1x4x286xf32>
    %127 = vector.shape_cast %126 : vector<1x4x286xf32> to vector<4x286xf32>
    %c5_117 = arith.constant 5 : index
    %c0_118 = arith.constant 0 : index
    %c0_119 = arith.constant 0 : index
    %128 = vector.load %arg9[%c5_117, %c0_118, %c0_119] : memref<9x4x4xf32, #tpu.memory_space<vmem>>, vector<1x4x4xf32>
    %129 = vector.shape_cast %128 : vector<1x4x4xf32> to vector<4x4xf32>
    %cst_120 = arith.constant dense<0.000000e+00> : vector<4x286xf32>
    %130 = tpu.matmul %129, %127, %cst_120 {dimension_numbers = #tpu.dot_dimension_numbers<[1], [0], [0], [1], [0, 0, 1, 1], [], []>} : vector<4x4xf32>, vector<4x286xf32>, vector<4x286xf32> -> vector<4x286xf32>
    %131 = arith.addf %125, %130 : vector<4x286xf32>
    %c0_121 = arith.constant 0 : index
    %c0_122 = arith.constant 0 : index
    %c36_123 = arith.constant 36 : index
    %132 = vector.load %arg26[%c0_121, %c0_122, %c36_123] : memref<3x4x324xf32, #tpu.memory_space<vmem>>, vector<1x4x286xf32>
    %133 = vector.shape_cast %132 : vector<1x4x286xf32> to vector<4x286xf32>
    %c6_124 = arith.constant 6 : index
    %c0_125 = arith.constant 0 : index
    %c0_126 = arith.constant 0 : index
    %134 = vector.load %arg9[%c6_124, %c0_125, %c0_126] : memref<9x4x4xf32, #tpu.memory_space<vmem>>, vector<1x4x4xf32>
    %135 = vector.shape_cast %134 : vector<1x4x4xf32> to vector<4x4xf32>
    %cst_127 = arith.constant dense<0.000000e+00> : vector<4x286xf32>
    %136 = tpu.matmul %135, %133, %cst_127 {dimension_numbers = #tpu.dot_dimension_numbers<[1], [0], [0], [1], [0, 0, 1, 1], [], []>} : vector<4x4xf32>, vector<4x286xf32>, vector<4x286xf32> -> vector<4x286xf32>
    %137 = arith.addf %131, %136 : vector<4x286xf32>
    %c0_128 = arith.constant 0 : index
    %c0_129 = arith.constant 0 : index
    %c37_130 = arith.constant 37 : index
    %138 = vector.load %arg26[%c0_128, %c0_129, %c37_130] : memref<3x4x324xf32, #tpu.memory_space<vmem>>, vector<1x4x286xf32>
    %139 = vector.shape_cast %138 : vector<1x4x286xf32> to vector<4x286xf32>
    %c7_131 = arith.constant 7 : index
    %c0_132 = arith.constant 0 : index
    %c0_133 = arith.constant 0 : index
    %140 = vector.load %arg9[%c7_131, %c0_132, %c0_133] : memref<9x4x4xf32, #tpu.memory_space<vmem>>, vector<1x4x4xf32>
    %141 = vector.shape_cast %140 : vector<1x4x4xf32> to vector<4x4xf32>
    %cst_134 = arith.constant dense<0.000000e+00> : vector<4x286xf32>
    %142 = tpu.matmul %141, %139, %cst_134 {dimension_numbers = #tpu.dot_dimension_numbers<[1], [0], [0], [1], [0, 0, 1, 1], [], []>} : vector<4x4xf32>, vector<4x286xf32>, vector<4x286xf32> -> vector<4x286xf32>
    %143 = arith.addf %137, %142 : vector<4x286xf32>
    %c0_135 = arith.constant 0 : index
    %c0_136 = arith.constant 0 : index
    %c38_137 = arith.constant 38 : index
    %144 = vector.load %arg26[%c0_135, %c0_136, %c38_137] : memref<3x4x324xf32, #tpu.memory_space<vmem>>, vector<1x4x286xf32>
    %145 = vector.shape_cast %144 : vector<1x4x286xf32> to vector<4x286xf32>
    %c8_138 = arith.constant 8 : index
    %c0_139 = arith.constant 0 : index
    %c0_140 = arith.constant 0 : index
    %146 = vector.load %arg9[%c8_138, %c0_139, %c0_140] : memref<9x4x4xf32, #tpu.memory_space<vmem>>, vector<1x4x4xf32>
    %147 = vector.shape_cast %146 : vector<1x4x4xf32> to vector<4x4xf32>
    %cst_141 = arith.constant dense<0.000000e+00> : vector<4x286xf32>
    %148 = tpu.matmul %147, %145, %cst_141 {dimension_numbers = #tpu.dot_dimension_numbers<[1], [0], [0], [1], [0, 0, 1, 1], [], []>} : vector<4x4xf32>, vector<4x286xf32>, vector<4x286xf32> -> vector<4x286xf32>
    %149 = arith.addf %143, %148 : vector<4x286xf32>
    %150 = vector.broadcast %96 : vector<4x1xf32> to vector<4x286xf32>
    %151 = arith.addf %149, %150 : vector<4x286xf32>
    %152 = arith.addf %151, %80 : vector<4x286xf32>
    %153 = vector.broadcast %0 : vector<1x286xf32> to vector<4x286xf32>
    %154 = arith.mulf %152, %153 : vector<4x286xf32>
    %cst_142 = arith.constant 0.000000e+00 : f32
    %155 = vector.broadcast %cst_142 : f32 to vector<4x286xf32>
    %156 = arith.cmpf oge, %154, %155 : vector<4x286xf32>
    %cst_143 = arith.constant 5.000000e-02 : f32
    %157 = vector.broadcast %cst_143 : f32 to vector<4x286xf32>
    %158 = arith.mulf %157, %154 : vector<4x286xf32>
    %159 = arith.select %156, %154, %158 : vector<4x286xi1>, vector<4x286xf32>
    %c1_144 = arith.constant 1 : index
    %c0_145 = arith.constant 0 : index
    %c19_146 = arith.constant 19 : index
    %160 = vector.load %arg26[%c1_144, %c0_145, %c19_146] : memref<3x4x324xf32, #tpu.memory_space<vmem>>, vector<1x4x286xf32>
    %161 = vector.shape_cast %160 : vector<1x4x286xf32> to vector<4x286xf32>
    %162 = vector.shape_cast %159 : vector<4x286xf32> to vector<1x4x286xf32>
    tpu.vector_store %arg26[%c1_144, %c0_145, %c19_146], %162 {strides = array<i32>} : memref<3x4x324xf32, #tpu.memory_space<vmem>>, vector<1x4x286xf32>,
    %c0_147 = arith.constant 0 : index
    %c0_148 = arith.constant 0 : index
    %163 = vector.load %arg11[%c0_147, %c0_148] : memref<2x4xf32, #tpu.memory_space<vmem>>, vector<2x4xf32>
    %c0_149 = arith.constant 0 : index
    %c0_150 = arith.constant 0 : index
    %164 = vector.load %arg12[%c0_149, %c0_150] : memref<2x1xf32, #tpu.memory_space<vmem>>, vector<2x1xf32>
    %cst_151 = arith.constant dense<0.000000e+00> : vector<2x286xf32>
    %165 = tpu.matmul %163, %159, %cst_151 {dimension_numbers = #tpu.dot_dimension_numbers<[1], [0], [0], [1], [0, 0, 1, 1], [], []>} : vector<2x4xf32>, vector<4x286xf32>, vector<2x286xf32> -> vector<2x286xf32>
    %166 = vector.broadcast %164 : vector<2x1xf32> to vector<2x286xf32>
    %167 = arith.addf %165, %166 : vector<2x286xf32>
    %168 = vector.broadcast %0 : vector<1x286xf32> to vector<2x286xf32>
    %169 = arith.mulf %167, %168 : vector<2x286xf32>
    %cst_152 = arith.constant 0.000000e+00 : f32
    %170 = vector.broadcast %cst_152 : f32 to vector<2x286xf32>
    %171 = arith.cmpf oge, %169, %170 : vector<2x286xf32>
    %cst_153 = arith.constant 5.000000e-02 : f32
    %172 = vector.broadcast %cst_153 : f32 to vector<2x286xf32>
    %173 = arith.mulf %172, %169 : vector<2x286xf32>
    %174 = arith.select %171, %169, %173 : vector<2x286xi1>, vector<2x286xf32>
    %c0_154 = arith.constant 0 : index
    %c0_155 = arith.constant 0 : index
    %175 = vector.load %arg14[%c0_154, %c0_155] : memref<4x1xf32, #tpu.memory_space<vmem>>, vector<4x1xf32>
    %c1_156 = arith.constant 1 : index
    %c0_157 = arith.constant 0 : index
    %c0_158 = arith.constant 0 : index
    %176 = vector.load %arg26[%c1_156, %c0_157, %c0_158] : memref<3x4x324xf32, #tpu.memory_space<vmem>>, vector<1x4x286xf32>
    %177 = vector.shape_cast %176 : vector<1x4x286xf32> to vector<4x286xf32>
    %c0_159 = arith.constant 0 : index
    %c0_160 = arith.constant 0 : index
    %c0_161 = arith.constant 0 : index
    %178 = vector.load %arg13[%c0_159, %c0_160, %c0_161] : memref<9x4x4xf32, #tpu.memory_space<vmem>>, vector<1x4x4xf32>
    %179 = vector.shape_cast %178 : vector<1x4x4xf32> to vector<4x4xf32>
    %cst_162 = arith.constant dense<0.000000e+00> : vector<4x286xf32>
    %180 = tpu.matmul %179, %177, %cst_162 {dimension_numbers = #tpu.dot_dimension_numbers<[1], [0], [0], [1], [0, 0, 1, 1], [], []>} : vector<4x4xf32>, vector<4x286xf32>, vector<4x286xf32> -> vector<4x286xf32>
    %c1_163 = arith.constant 1 : index
    %c0_164 = arith.constant 0 : index
    %c1_165 = arith.constant 1 : index
    %181 = vector.load %arg26[%c1_163, %c0_164, %c1_165] : memref<3x4x324xf32, #tpu.memory_space<vmem>>, vector<1x4x286xf32>
    %182 = vector.shape_cast %181 : vector<1x4x286xf32> to vector<4x286xf32>
    %c1_166 = arith.constant 1 : index
    %c0_167 = arith.constant 0 : index
    %c0_168 = arith.constant 0 : index
    %183 = vector.load %arg13[%c1_166, %c0_167, %c0_168] : memref<9x4x4xf32, #tpu.memory_space<vmem>>, vector<1x4x4xf32>
    %184 = vector.shape_cast %183 : vector<1x4x4xf32> to vector<4x4xf32>
    %cst_169 = arith.constant dense<0.000000e+00> : vector<4x286xf32>
    %185 = tpu.matmul %184, %182, %cst_169 {dimension_numbers = #tpu.dot_dimension_numbers<[1], [0], [0], [1], [0, 0, 1, 1], [], []>} : vector<4x4xf32>, vector<4x286xf32>, vector<4x286xf32> -> vector<4x286xf32>
    %186 = arith.addf %180, %185 : vector<4x286xf32>
    %c1_170 = arith.constant 1 : index
    %c0_171 = arith.constant 0 : index
    %c2_172 = arith.constant 2 : index
    %187 = vector.load %arg26[%c1_170, %c0_171, %c2_172] : memref<3x4x324xf32, #tpu.memory_space<vmem>>, vector<1x4x286xf32>
    %188 = vector.shape_cast %187 : vector<1x4x286xf32> to vector<4x286xf32>
    %c2_173 = arith.constant 2 : index
    %c0_174 = arith.constant 0 : index
    %c0_175 = arith.constant 0 : index
    %189 = vector.load %arg13[%c2_173, %c0_174, %c0_175] : memref<9x4x4xf32, #tpu.memory_space<vmem>>, vector<1x4x4xf32>
    %190 = vector.shape_cast %189 : vector<1x4x4xf32> to vector<4x4xf32>
    %cst_176 = arith.constant dense<0.000000e+00> : vector<4x286xf32>
    %191 = tpu.matmul %190, %188, %cst_176 {dimension_numbers = #tpu.dot_dimension_numbers<[1], [0], [0], [1], [0, 0, 1, 1], [], []>} : vector<4x4xf32>, vector<4x286xf32>, vector<4x286xf32> -> vector<4x286xf32>
    %192 = arith.addf %186, %191 : vector<4x286xf32>
    %c1_177 = arith.constant 1 : index
    %c0_178 = arith.constant 0 : index
    %c18_179 = arith.constant 18 : index
    %193 = vector.load %arg26[%c1_177, %c0_178, %c18_179] : memref<3x4x324xf32, #tpu.memory_space<vmem>>, vector<1x4x286xf32>
    %194 = vector.shape_cast %193 : vector<1x4x286xf32> to vector<4x286xf32>
    %c3_180 = arith.constant 3 : index
    %c0_181 = arith.constant 0 : index
    %c0_182 = arith.constant 0 : index
    %195 = vector.load %arg13[%c3_180, %c0_181, %c0_182] : memref<9x4x4xf32, #tpu.memory_space<vmem>>, vector<1x4x4xf32>
    %196 = vector.shape_cast %195 : vector<1x4x4xf32> to vector<4x4xf32>
    %cst_183 = arith.constant dense<0.000000e+00> : vector<4x286xf32>
    %197 = tpu.matmul %196, %194, %cst_183 {dimension_numbers = #tpu.dot_dimension_numbers<[1], [0], [0], [1], [0, 0, 1, 1], [], []>} : vector<4x4xf32>, vector<4x286xf32>, vector<4x286xf32> -> vector<4x286xf32>
    %198 = arith.addf %192, %197 : vector<4x286xf32>
    %c1_184 = arith.constant 1 : index
    %c0_185 = arith.constant 0 : index
    %c19_186 = arith.constant 19 : index
    %199 = vector.load %arg26[%c1_184, %c0_185, %c19_186] : memref<3x4x324xf32, #tpu.memory_space<vmem>>, vector<1x4x286xf32>
    %200 = vector.shape_cast %199 : vector<1x4x286xf32> to vector<4x286xf32>
    %c4_187 = arith.constant 4 : index
    %c0_188 = arith.constant 0 : index
    %c0_189 = arith.constant 0 : index
    %201 = vector.load %arg13[%c4_187, %c0_188, %c0_189] : memref<9x4x4xf32, #tpu.memory_space<vmem>>, vector<1x4x4xf32>
    %202 = vector.shape_cast %201 : vector<1x4x4xf32> to vector<4x4xf32>
    %cst_190 = arith.constant dense<0.000000e+00> : vector<4x286xf32>
    %203 = tpu.matmul %202, %200, %cst_190 {dimension_numbers = #tpu.dot_dimension_numbers<[1], [0], [0], [1], [0, 0, 1, 1], [], []>} : vector<4x4xf32>, vector<4x286xf32>, vector<4x286xf32> -> vector<4x286xf32>
    %204 = arith.addf %198, %203 : vector<4x286xf32>
    %c1_191 = arith.constant 1 : index
    %c0_192 = arith.constant 0 : index
    %c20_193 = arith.constant 20 : index
    %205 = vector.load %arg26[%c1_191, %c0_192, %c20_193] : memref<3x4x324xf32, #tpu.memory_space<vmem>>, vector<1x4x286xf32>
    %206 = vector.shape_cast %205 : vector<1x4x286xf32> to vector<4x286xf32>
    %c5_194 = arith.constant 5 : index
    %c0_195 = arith.constant 0 : index
    %c0_196 = arith.constant 0 : index
    %207 = vector.load %arg13[%c5_194, %c0_195, %c0_196] : memref<9x4x4xf32, #tpu.memory_space<vmem>>, vector<1x4x4xf32>
    %208 = vector.shape_cast %207 : vector<1x4x4xf32> to vector<4x4xf32>
    %cst_197 = arith.constant dense<0.000000e+00> : vector<4x286xf32>
    %209 = tpu.matmul %208, %206, %cst_197 {dimension_numbers = #tpu.dot_dimension_numbers<[1], [0], [0], [1], [0, 0, 1, 1], [], []>} : vector<4x4xf32>, vector<4x286xf32>, vector<4x286xf32> -> vector<4x286xf32>
    %210 = arith.addf %204, %209 : vector<4x286xf32>
    %c1_198 = arith.constant 1 : index
    %c0_199 = arith.constant 0 : index
    %c36_200 = arith.constant 36 : index
    %211 = vector.load %arg26[%c1_198, %c0_199, %c36_200] : memref<3x4x324xf32, #tpu.memory_space<vmem>>, vector<1x4x286xf32>
    %212 = vector.shape_cast %211 : vector<1x4x286xf32> to vector<4x286xf32>
    %c6_201 = arith.constant 6 : index
    %c0_202 = arith.constant 0 : index
    %c0_203 = arith.constant 0 : index
    %213 = vector.load %arg13[%c6_201, %c0_202, %c0_203] : memref<9x4x4xf32, #tpu.memory_space<vmem>>, vector<1x4x4xf32>
    %214 = vector.shape_cast %213 : vector<1x4x4xf32> to vector<4x4xf32>
    %cst_204 = arith.constant dense<0.000000e+00> : vector<4x286xf32>
    %215 = tpu.matmul %214, %212, %cst_204 {dimension_numbers = #tpu.dot_dimension_numbers<[1], [0], [0], [1], [0, 0, 1, 1], [], []>} : vector<4x4xf32>, vector<4x286xf32>, vector<4x286xf32> -> vector<4x286xf32>
    %216 = arith.addf %210, %215 : vector<4x286xf32>
    %c1_205 = arith.constant 1 : index
    %c0_206 = arith.constant 0 : index
    %c37_207 = arith.constant 37 : index
    %217 = vector.load %arg26[%c1_205, %c0_206, %c37_207] : memref<3x4x324xf32, #tpu.memory_space<vmem>>, vector<1x4x286xf32>
    %218 = vector.shape_cast %217 : vector<1x4x286xf32> to vector<4x286xf32>
    %c7_208 = arith.constant 7 : index
    %c0_209 = arith.constant 0 : index
    %c0_210 = arith.constant 0 : index
    %219 = vector.load %arg13[%c7_208, %c0_209, %c0_210] : memref<9x4x4xf32, #tpu.memory_space<vmem>>, vector<1x4x4xf32>
    %220 = vector.shape_cast %219 : vector<1x4x4xf32> to vector<4x4xf32>
    %cst_211 = arith.constant dense<0.000000e+00> : vector<4x286xf32>
    %221 = tpu.matmul %220, %218, %cst_211 {dimension_numbers = #tpu.dot_dimension_numbers<[1], [0], [0], [1], [0, 0, 1, 1], [], []>} : vector<4x4xf32>, vector<4x286xf32>, vector<4x286xf32> -> vector<4x286xf32>
    %222 = arith.addf %216, %221 : vector<4x286xf32>
    %c1_212 = arith.constant 1 : index
    %c0_213 = arith.constant 0 : index
    %c38_214 = arith.constant 38 : index
    %223 = vector.load %arg26[%c1_212, %c0_213, %c38_214] : memref<3x4x324xf32, #tpu.memory_space<vmem>>, vector<1x4x286xf32>
    %224 = vector.shape_cast %223 : vector<1x4x286xf32> to vector<4x286xf32>
    %c8_215 = arith.constant 8 : index
    %c0_216 = arith.constant 0 : index
    %c0_217 = arith.constant 0 : index
    %225 = vector.load %arg13[%c8_215, %c0_216, %c0_217] : memref<9x4x4xf32, #tpu.memory_space<vmem>>, vector<1x4x4xf32>
    %226 = vector.shape_cast %225 : vector<1x4x4xf32> to vector<4x4xf32>
    %cst_218 = arith.constant dense<0.000000e+00> : vector<4x286xf32>
    %227 = tpu.matmul %226, %224, %cst_218 {dimension_numbers = #tpu.dot_dimension_numbers<[1], [0], [0], [1], [0, 0, 1, 1], [], []>} : vector<4x4xf32>, vector<4x286xf32>, vector<4x286xf32> -> vector<4x286xf32>
    %228 = arith.addf %222, %227 : vector<4x286xf32>
    %229 = vector.broadcast %175 : vector<4x1xf32> to vector<4x286xf32>
    %230 = arith.addf %228, %229 : vector<4x286xf32>
    %231 = arith.addf %230, %159 : vector<4x286xf32>
    %232 = vector.broadcast %0 : vector<1x286xf32> to vector<4x286xf32>
    %233 = arith.mulf %231, %232 : vector<4x286xf32>
    %cst_219 = arith.constant 0.000000e+00 : f32
    %234 = vector.broadcast %cst_219 : f32 to vector<4x286xf32>
    %235 = arith.cmpf oge, %233, %234 : vector<4x286xf32>
    %cst_220 = arith.constant 5.000000e-02 : f32
    %236 = vector.broadcast %cst_220 : f32 to vector<4x286xf32>
    %237 = arith.mulf %236, %233 : vector<4x286xf32>
    %238 = arith.select %235, %233, %237 : vector<4x286xi1>, vector<4x286xf32>
    %c2_221 = arith.constant 2 : index
    %c0_222 = arith.constant 0 : index
    %c19_223 = arith.constant 19 : index
    %239 = vector.load %arg26[%c2_221, %c0_222, %c19_223] : memref<3x4x324xf32, #tpu.memory_space<vmem>>, vector<1x4x286xf32>
    %240 = vector.shape_cast %239 : vector<1x4x286xf32> to vector<4x286xf32>
    %241 = vector.shape_cast %238 : vector<4x286xf32> to vector<1x4x286xf32>
    tpu.vector_store %arg26[%c2_221, %c0_222, %c19_223], %241 {strides = array<i32>} : memref<3x4x324xf32, #tpu.memory_space<vmem>>, vector<1x4x286xf32>,
    %c0_224 = arith.constant 0 : index
    %c0_225 = arith.constant 0 : index
    %242 = vector.load %arg16[%c0_224, %c0_225] : memref<2x1xf32, #tpu.memory_space<vmem>>, vector<2x1xf32>
    %c2_226 = arith.constant 2 : index
    %c0_227 = arith.constant 0 : index
    %c0_228 = arith.constant 0 : index
    %243 = vector.load %arg26[%c2_226, %c0_227, %c0_228] : memref<3x4x324xf32, #tpu.memory_space<vmem>>, vector<1x4x286xf32>
    %244 = vector.shape_cast %243 : vector<1x4x286xf32> to vector<4x286xf32>
    %c0_229 = arith.constant 0 : index
    %c0_230 = arith.constant 0 : index
    %c0_231 = arith.constant 0 : index
    %245 = vector.load %arg15[%c0_229, %c0_230, %c0_231] : memref<9x2x4xf32, #tpu.memory_space<vmem>>, vector<1x2x4xf32>
    %246 = vector.shape_cast %245 : vector<1x2x4xf32> to vector<2x4xf32>
    %cst_232 = arith.constant dense<0.000000e+00> : vector<2x286xf32>
    %247 = tpu.matmul %246, %244, %cst_232 {dimension_numbers = #tpu.dot_dimension_numbers<[1], [0], [0], [1], [0, 0, 1, 1], [], []>} : vector<2x4xf32>, vector<4x286xf32>, vector<2x286xf32> -> vector<2x286xf32>
    %c2_233 = arith.constant 2 : index
    %c0_234 = arith.constant 0 : index
    %c1_235 = arith.constant 1 : index
    %248 = vector.load %arg26[%c2_233, %c0_234, %c1_235] : memref<3x4x324xf32, #tpu.memory_space<vmem>>, vector<1x4x286xf32>
    %249 = vector.shape_cast %248 : vector<1x4x286xf32> to vector<4x286xf32>
    %c1_236 = arith.constant 1 : index
    %c0_237 = arith.constant 0 : index
    %c0_238 = arith.constant 0 : index
    %250 = vector.load %arg15[%c1_236, %c0_237, %c0_238] : memref<9x2x4xf32, #tpu.memory_space<vmem>>, vector<1x2x4xf32>
    %251 = vector.shape_cast %250 : vector<1x2x4xf32> to vector<2x4xf32>
    %cst_239 = arith.constant dense<0.000000e+00> : vector<2x286xf32>
    %252 = tpu.matmul %251, %249, %cst_239 {dimension_numbers = #tpu.dot_dimension_numbers<[1], [0], [0], [1], [0, 0, 1, 1], [], []>} : vector<2x4xf32>, vector<4x286xf32>, vector<2x286xf32> -> vector<2x286xf32>
    %253 = arith.addf %247, %252 : vector<2x286xf32>
    %c2_240 = arith.constant 2 : index
    %c0_241 = arith.constant 0 : index
    %c2_242 = arith.constant 2 : index
    %254 = vector.load %arg26[%c2_240, %c0_241, %c2_242] : memref<3x4x324xf32, #tpu.memory_space<vmem>>, vector<1x4x286xf32>
    %255 = vector.shape_cast %254 : vector<1x4x286xf32> to vector<4x286xf32>
    %c2_243 = arith.constant 2 : index
    %c0_244 = arith.constant 0 : index
    %c0_245 = arith.constant 0 : index
    %256 = vector.load %arg15[%c2_243, %c0_244, %c0_245] : memref<9x2x4xf32, #tpu.memory_space<vmem>>, vector<1x2x4xf32>
    %257 = vector.shape_cast %256 : vector<1x2x4xf32> to vector<2x4xf32>
    %cst_246 = arith.constant dense<0.000000e+00> : vector<2x286xf32>
    %258 = tpu.matmul %257, %255, %cst_246 {dimension_numbers = #tpu.dot_dimension_numbers<[1], [0], [0], [1], [0, 0, 1, 1], [], []>} : vector<2x4xf32>, vector<4x286xf32>, vector<2x286xf32> -> vector<2x286xf32>
    %259 = arith.addf %253, %258 : vector<2x286xf32>
    %c2_247 = arith.constant 2 : index
    %c0_248 = arith.constant 0 : index
    %c18_249 = arith.constant 18 : index
    %260 = vector.load %arg26[%c2_247, %c0_248, %c18_249] : memref<3x4x324xf32, #tpu.memory_space<vmem>>, vector<1x4x286xf32>
    %261 = vector.shape_cast %260 : vector<1x4x286xf32> to vector<4x286xf32>
    %c3_250 = arith.constant 3 : index
    %c0_251 = arith.constant 0 : index
    %c0_252 = arith.constant 0 : index
    %262 = vector.load %arg15[%c3_250, %c0_251, %c0_252] : memref<9x2x4xf32, #tpu.memory_space<vmem>>, vector<1x2x4xf32>
    %263 = vector.shape_cast %262 : vector<1x2x4xf32> to vector<2x4xf32>
    %cst_253 = arith.constant dense<0.000000e+00> : vector<2x286xf32>
    %264 = tpu.matmul %263, %261, %cst_253 {dimension_numbers = #tpu.dot_dimension_numbers<[1], [0], [0], [1], [0, 0, 1, 1], [], []>} : vector<2x4xf32>, vector<4x286xf32>, vector<2x286xf32> -> vector<2x286xf32>
    %265 = arith.addf %259, %264 : vector<2x286xf32>
    %c2_254 = arith.constant 2 : index
    %c0_255 = arith.constant 0 : index
    %c19_256 = arith.constant 19 : index
    %266 = vector.load %arg26[%c2_254, %c0_255, %c19_256] : memref<3x4x324xf32, #tpu.memory_space<vmem>>, vector<1x4x286xf32>
    %267 = vector.shape_cast %266 : vector<1x4x286xf32> to vector<4x286xf32>
    %c4_257 = arith.constant 4 : index
    %c0_258 = arith.constant 0 : index
    %c0_259 = arith.constant 0 : index
    %268 = vector.load %arg15[%c4_257, %c0_258, %c0_259] : memref<9x2x4xf32, #tpu.memory_space<vmem>>, vector<1x2x4xf32>
    %269 = vector.shape_cast %268 : vector<1x2x4xf32> to vector<2x4xf32>
    %cst_260 = arith.constant dense<0.000000e+00> : vector<2x286xf32>
    %270 = tpu.matmul %269, %267, %cst_260 {dimension_numbers = #tpu.dot_dimension_numbers<[1], [0], [0], [1], [0, 0, 1, 1], [], []>} : vector<2x4xf32>, vector<4x286xf32>, vector<2x286xf32> -> vector<2x286xf32>
    %271 = arith.addf %265, %270 : vector<2x286xf32>
    %c2_261 = arith.constant 2 : index
    %c0_262 = arith.constant 0 : index
    %c20_263 = arith.constant 20 : index
    %272 = vector.load %arg26[%c2_261, %c0_262, %c20_263] : memref<3x4x324xf32, #tpu.memory_space<vmem>>, vector<1x4x286xf32>
    %273 = vector.shape_cast %272 : vector<1x4x286xf32> to vector<4x286xf32>
    %c5_264 = arith.constant 5 : index
    %c0_265 = arith.constant 0 : index
    %c0_266 = arith.constant 0 : index
    %274 = vector.load %arg15[%c5_264, %c0_265, %c0_266] : memref<9x2x4xf32, #tpu.memory_space<vmem>>, vector<1x2x4xf32>
    %275 = vector.shape_cast %274 : vector<1x2x4xf32> to vector<2x4xf32>
    %cst_267 = arith.constant dense<0.000000e+00> : vector<2x286xf32>
    %276 = tpu.matmul %275, %273, %cst_267 {dimension_numbers = #tpu.dot_dimension_numbers<[1], [0], [0], [1], [0, 0, 1, 1], [], []>} : vector<2x4xf32>, vector<4x286xf32>, vector<2x286xf32> -> vector<2x286xf32>
    %277 = arith.addf %271, %276 : vector<2x286xf32>
    %c2_268 = arith.constant 2 : index
    %c0_269 = arith.constant 0 : index
    %c36_270 = arith.constant 36 : index
    %278 = vector.load %arg26[%c2_268, %c0_269, %c36_270] : memref<3x4x324xf32, #tpu.memory_space<vmem>>, vector<1x4x286xf32>
    %279 = vector.shape_cast %278 : vector<1x4x286xf32> to vector<4x286xf32>
    %c6_271 = arith.constant 6 : index
    %c0_272 = arith.constant 0 : index
    %c0_273 = arith.constant 0 : index
    %280 = vector.load %arg15[%c6_271, %c0_272, %c0_273] : memref<9x2x4xf32, #tpu.memory_space<vmem>>, vector<1x2x4xf32>
    %281 = vector.shape_cast %280 : vector<1x2x4xf32> to vector<2x4xf32>
    %cst_274 = arith.constant dense<0.000000e+00> : vector<2x286xf32>
    %282 = tpu.matmul %281, %279, %cst_274 {dimension_numbers = #tpu.dot_dimension_numbers<[1], [0], [0], [1], [0, 0, 1, 1], [], []>} : vector<2x4xf32>, vector<4x286xf32>, vector<2x286xf32> -> vector<2x286xf32>
    %283 = arith.addf %277, %282 : vector<2x286xf32>
    %c2_275 = arith.constant 2 : index
    %c0_276 = arith.constant 0 : index
    %c37_277 = arith.constant 37 : index
    %284 = vector.load %arg26[%c2_275, %c0_276, %c37_277] : memref<3x4x324xf32, #tpu.memory_space<vmem>>, vector<1x4x286xf32>
    %285 = vector.shape_cast %284 : vector<1x4x286xf32> to vector<4x286xf32>
    %c7_278 = arith.constant 7 : index
    %c0_279 = arith.constant 0 : index
    %c0_280 = arith.constant 0 : index
    %286 = vector.load %arg15[%c7_278, %c0_279, %c0_280] : memref<9x2x4xf32, #tpu.memory_space<vmem>>, vector<1x2x4xf32>
    %287 = vector.shape_cast %286 : vector<1x2x4xf32> to vector<2x4xf32>
    %cst_281 = arith.constant dense<0.000000e+00> : vector<2x286xf32>
    %288 = tpu.matmul %287, %285, %cst_281 {dimension_numbers = #tpu.dot_dimension_numbers<[1], [0], [0], [1], [0, 0, 1, 1], [], []>} : vector<2x4xf32>, vector<4x286xf32>, vector<2x286xf32> -> vector<2x286xf32>
    %289 = arith.addf %283, %288 : vector<2x286xf32>
    %c2_282 = arith.constant 2 : index
    %c0_283 = arith.constant 0 : index
    %c38_284 = arith.constant 38 : index
    %290 = vector.load %arg26[%c2_282, %c0_283, %c38_284] : memref<3x4x324xf32, #tpu.memory_space<vmem>>, vector<1x4x286xf32>
    %291 = vector.shape_cast %290 : vector<1x4x286xf32> to vector<4x286xf32>
    %c8_285 = arith.constant 8 : index
    %c0_286 = arith.constant 0 : index
    %c0_287 = arith.constant 0 : index
    %292 = vector.load %arg15[%c8_285, %c0_286, %c0_287] : memref<9x2x4xf32, #tpu.memory_space<vmem>>, vector<1x2x4xf32>
    %293 = vector.shape_cast %292 : vector<1x2x4xf32> to vector<2x4xf32>
    %cst_288 = arith.constant dense<0.000000e+00> : vector<2x286xf32>
    %294 = tpu.matmul %293, %291, %cst_288 {dimension_numbers = #tpu.dot_dimension_numbers<[1], [0], [0], [1], [0, 0, 1, 1], [], []>} : vector<2x4xf32>, vector<4x286xf32>, vector<2x286xf32> -> vector<2x286xf32>
    %295 = arith.addf %289, %294 : vector<2x286xf32>
    %296 = vector.broadcast %242 : vector<2x1xf32> to vector<2x286xf32>
    %297 = arith.addf %295, %296 : vector<2x286xf32>
    %298 = vector.broadcast %0 : vector<1x286xf32> to vector<2x286xf32>
    %299 = arith.mulf %297, %298 : vector<2x286xf32>
    %cst_289 = arith.constant 0.000000e+00 : f32
    %300 = vector.broadcast %cst_289 : f32 to vector<2x286xf32>
    %301 = arith.cmpf oge, %299, %300 : vector<2x286xf32>
    %cst_290 = arith.constant 5.000000e-02 : f32
    %302 = vector.broadcast %cst_290 : f32 to vector<2x286xf32>
    %303 = arith.mulf %302, %299 : vector<2x286xf32>
    %304 = arith.select %301, %299, %303 : vector<2x286xi1>, vector<2x286xf32>
    %c0_291 = arith.constant 0 : index
    %c0_292 = arith.constant 0 : index
    %c0_293 = arith.constant 0 : index
    %305 = vector.load %arg17[%c0_291, %c0_292, %c0_293] : memref<4x4x2xf32, #tpu.memory_space<vmem>>, vector<1x4x2xf32>
    %306 = vector.shape_cast %305 : vector<1x4x2xf32> to vector<4x2xf32>
    %cst_294 = arith.constant dense<0.000000e+00> : vector<4x286xf32>
    %307 = tpu.matmul %306, %16, %cst_294 {dimension_numbers = #tpu.dot_dimension_numbers<[1], [0], [0], [1], [0, 0, 1, 1], [], []>} : vector<4x2xf32>, vector<2x286xf32>, vector<4x286xf32> -> vector<4x286xf32>
    %c1_295 = arith.constant 1 : index
    %c0_296 = arith.constant 0 : index
    %c0_297 = arith.constant 0 : index
    %308 = vector.load %arg17[%c1_295, %c0_296, %c0_297] : memref<4x4x2xf32, #tpu.memory_space<vmem>>, vector<1x4x2xf32>
    %309 = vector.shape_cast %308 : vector<1x4x2xf32> to vector<4x2xf32>
    %cst_298 = arith.constant dense<0.000000e+00> : vector<4x286xf32>
    %310 = tpu.matmul %309, %95, %cst_298 {dimension_numbers = #tpu.dot_dimension_numbers<[1], [0], [0], [1], [0, 0, 1, 1], [], []>} : vector<4x2xf32>, vector<2x286xf32>, vector<4x286xf32> -> vector<4x286xf32>
    %311 = arith.addf %307, %310 : vector<4x286xf32>
    %c2_299 = arith.constant 2 : index
    %c0_300 = arith.constant 0 : index
    %c0_301 = arith.constant 0 : index
    %312 = vector.load %arg17[%c2_299, %c0_300, %c0_301] : memref<4x4x2xf32, #tpu.memory_space<vmem>>, vector<1x4x2xf32>
    %313 = vector.shape_cast %312 : vector<1x4x2xf32> to vector<4x2xf32>
    %cst_302 = arith.constant dense<0.000000e+00> : vector<4x286xf32>
    %314 = tpu.matmul %313, %174, %cst_302 {dimension_numbers = #tpu.dot_dimension_numbers<[1], [0], [0], [1], [0, 0, 1, 1], [], []>} : vector<4x2xf32>, vector<2x286xf32>, vector<4x286xf32> -> vector<4x286xf32>
    %315 = arith.addf %311, %314 : vector<4x286xf32>
    %c3_303 = arith.constant 3 : index
    %c0_304 = arith.constant 0 : index
    %c0_305 = arith.constant 0 : index
    %316 = vector.load %arg17[%c3_303, %c0_304, %c0_305] : memref<4x4x2xf32, #tpu.memory_space<vmem>>, vector<1x4x2xf32>
    %317 = vector.shape_cast %316 : vector<1x4x2xf32> to vector<4x2xf32>
    %cst_306 = arith.constant dense<0.000000e+00> : vector<4x286xf32>
    %318 = tpu.matmul %317, %304, %cst_306 {dimension_numbers = #tpu.dot_dimension_numbers<[1], [0], [0], [1], [0, 0, 1, 1], [], []>} : vector<4x2xf32>, vector<2x286xf32>, vector<4x286xf32> -> vector<4x286xf32>
    %319 = arith.addf %315, %318 : vector<4x286xf32>
    %c0_307 = arith.constant 0 : index
    %c0_308 = arith.constant 0 : index
    %320 = vector.load %arg18[%c0_307, %c0_308] : memref<4x1xf32, #tpu.memory_space<vmem>>, vector<4x1xf32>
    %321 = vector.broadcast %320 : vector<4x1xf32> to vector<4x286xf32>
    %322 = arith.addf %319, %321 : vector<4x286xf32>
    %323 = vector.broadcast %0 : vector<1x286xf32> to vector<4x286xf32>
    %324 = arith.mulf %322, %323 : vector<4x286xf32>
    %c0_309 = arith.constant 0 : index
    %c0_310 = arith.constant 0 : index
    %325 = vector.load %arg19[%c0_309, %c0_310] : memref<1x4xf32, #tpu.memory_space<vmem>>, vector<1x4xf32>
    %c0_311 = arith.constant 0 : index
    %c0_312 = arith.constant 0 : index
    %326 = vector.load %arg20[%c0_311, %c0_312] : memref<1x1xf32, #tpu.memory_space<vmem>>, vector<1x1xf32>
    %cst_313 = arith.constant dense<0.000000e+00> : vector<1x286xf32>
    %327 = tpu.matmul %325, %324, %cst_313 {dimension_numbers = #tpu.dot_dimension_numbers<[1], [0], [0], [1], [0, 0, 1, 1], [], []>} : vector<1x4xf32>, vector<4x286xf32>, vector<1x286xf32> -> vector<1x286xf32>
    %328 = vector.broadcast %326 : vector<1x1xf32> to vector<1x286xf32>
    %329 = arith.addf %327, %328 : vector<1x286xf32>
    %330 = arith.mulf %329, %0 : vector<1x286xf32>
    %c0_314 = arith.constant 0 : index
    %c0_315 = arith.constant 0 : index
    %331 = vector.load %arg21[%c0_314, %c0_315] : memref<1x1xf32, #tpu.memory_space<vmem>>, vector<1x1xf32>
    %c0_316 = arith.constant 0 : index
    %c0_317 = arith.constant 0 : index
    %332 = vector.load %arg22[%c0_316, %c0_317] : memref<1x1xf32, #tpu.memory_space<vmem>>, vector<1x1xf32>
    %cst_318 = arith.constant dense<0.000000e+00> : vector<1x286xf32>
    %333 = tpu.matmul %331, %330, %cst_318 {dimension_numbers = #tpu.dot_dimension_numbers<[1], [0], [0], [1], [0, 0, 1, 1], [], []>} : vector<1x1xf32>, vector<1x286xf32>, vector<1x286xf32> -> vector<1x286xf32>
    %334 = vector.broadcast %332 : vector<1x1xf32> to vector<1x286xf32>
    %335 = arith.addf %333, %334 : vector<1x286xf32>
    %336 = arith.mulf %335, %0 : vector<1x286xf32>
    %c0_319 = arith.constant 0 : index
    %c0_320 = arith.constant 0 : index
    %c0_321 = arith.constant 0 : index
    %337 = vector.load %arg23[%c0_319, %c0_320, %c0_321] : memref<1x4x286xf32, #tpu.memory_space<vmem>>, vector<1x4x286xf32>
    %338 = vector.shape_cast %337 : vector<1x4x286xf32> to vector<4x286xf32>
    %339 = vector.shape_cast %324 : vector<4x286xf32> to vector<1x4x286xf32>
    tpu.vector_store %arg23[%c0_319, %c0_320, %c0_321], %339 {strides = array<i32>} : memref<1x4x286xf32, #tpu.memory_space<vmem>>, vector<1x4x286xf32>,
    %c0_322 = arith.constant 0 : index
    %c0_323 = arith.constant 0 : index
    %c0_324 = arith.constant 0 : index
    %340 = vector.load %arg24[%c0_322, %c0_323, %c0_324] : memref<1x1x286xf32, #tpu.memory_space<vmem>>, vector<1x1x286xf32>
    %341 = vector.shape_cast %340 : vector<1x1x286xf32> to vector<1x286xf32>
    %342 = vector.shape_cast %330 : vector<1x286xf32> to vector<1x1x286xf32>
    tpu.vector_store %arg24[%c0_322, %c0_323, %c0_324], %342 {strides = array<i32>} : memref<1x1x286xf32, #tpu.memory_space<vmem>>, vector<1x1x286xf32>,
    %c0_325 = arith.constant 0 : index
    %c0_326 = arith.constant 0 : index
    %c0_327 = arith.constant 0 : index
    %343 = vector.load %arg25[%c0_325, %c0_326, %c0_327] : memref<1x1x286xf32, #tpu.memory_space<vmem>>, vector<1x1x286xf32>
    %344 = vector.shape_cast %343 : vector<1x1x286xf32> to vector<1x286xf32>
    %345 = vector.shape_cast %336 : vector<1x286xf32> to vector<1x1x286xf32>
    tpu.vector_store %arg25[%c0_325, %c0_326, %c0_327], %345 {strides = array<i32>} : memref<1x1x286xf32, #tpu.memory_space<vmem>>, vector<1x1x286xf32>,
    return
  }
  func.func @transform_0(%arg0: i32) -> (i32, i32, i32) {
    %c0_i32 = arith.constant 0 : i32
    %c0_i32_0 = arith.constant 0 : i32
    %c0_i32_1 = arith.constant 0 : i32
    return %arg0, %c0_i32, %c0_i32_0 : i32, i32, i32
  }
  func.func @transform_1(%arg0: i32) -> (i32, i32) {
    %c0_i32 = arith.constant 0 : i32
    %c0_i32_0 = arith.constant 0 : i32
    %c0_i32_1 = arith.constant 0 : i32
    return %c0_i32, %c0_i32_0 : i32, i32
  }
  func.func @transform_2(%arg0: i32) -> (i32, i32) {
    %c0_i32 = arith.constant 0 : i32
    %c0_i32_0 = arith.constant 0 : i32
    %c0_i32_1 = arith.constant 0 : i32
    return %c0_i32, %c0_i32_0 : i32, i32
  }
  func.func @transform_3(%arg0: i32) -> (i32, i32) {
    %c0_i32 = arith.constant 0 : i32
    %c0_i32_0 = arith.constant 0 : i32
    %c0_i32_1 = arith.constant 0 : i32
    return %c0_i32, %c0_i32_0 : i32, i32
  }
  func.func @transform_4(%arg0: i32) -> (i32, i32, i32) {
    %c0_i32 = arith.constant 0 : i32
    %c0_i32_0 = arith.constant 0 : i32
    %c0_i32_1 = arith.constant 0 : i32
    %c0_i32_2 = arith.constant 0 : i32
    return %c0_i32, %c0_i32_0, %c0_i32_1 : i32, i32, i32
  }
  func.func @transform_5(%arg0: i32) -> (i32, i32) {
    %c0_i32 = arith.constant 0 : i32
    %c0_i32_0 = arith.constant 0 : i32
    %c0_i32_1 = arith.constant 0 : i32
    return %c0_i32, %c0_i32_0 : i32, i32
  }
  func.func @transform_6(%arg0: i32) -> (i32, i32) {
    %c0_i32 = arith.constant 0 : i32
    %c0_i32_0 = arith.constant 0 : i32
    %c0_i32_1 = arith.constant 0 : i32
    return %c0_i32, %c0_i32_0 : i32, i32
  }
  func.func @transform_7(%arg0: i32) -> (i32, i32) {
    %c0_i32 = arith.constant 0 : i32
    %c0_i32_0 = arith.constant 0 : i32
    %c0_i32_1 = arith.constant 0 : i32
    return %c0_i32, %c0_i32_0 : i32, i32
  }
  func.func @transform_8(%arg0: i32) -> (i32, i32, i32) {
    %c0_i32 = arith.constant 0 : i32
    %c0_i32_0 = arith.constant 0 : i32
    %c0_i32_1 = arith.constant 0 : i32
    %c0_i32_2 = arith.constant 0 : i32
    return %c0_i32, %c0_i32_0, %c0_i32_1 : i32, i32, i32
  }
  func.func @transform_9(%arg0: i32) -> (i32, i32) {
    %c0_i32 = arith.constant 0 : i32
    %c0_i32_0 = arith.constant 0 : i32
    %c0_i32_1 = arith.constant 0 : i32
    return %c0_i32, %c0_i32_0 : i32, i32
  }
  func.func @transform_10(%arg0: i32) -> (i32, i32) {
    %c0_i32 = arith.constant 0 : i32
    %c0_i32_0 = arith.constant 0 : i32
    %c0_i32_1 = arith.constant 0 : i32
    return %c0_i32, %c0_i32_0 : i32, i32
  }
  func.func @transform_11(%arg0: i32) -> (i32, i32) {
    %c0_i32 = arith.constant 0 : i32
    %c0_i32_0 = arith.constant 0 : i32
    %c0_i32_1 = arith.constant 0 : i32
    return %c0_i32, %c0_i32_0 : i32, i32
  }
  func.func @transform_12(%arg0: i32) -> (i32, i32, i32) {
    %c0_i32 = arith.constant 0 : i32
    %c0_i32_0 = arith.constant 0 : i32
    %c0_i32_1 = arith.constant 0 : i32
    %c0_i32_2 = arith.constant 0 : i32
    return %c0_i32, %c0_i32_0, %c0_i32_1 : i32, i32, i32
  }
  func.func @transform_13(%arg0: i32) -> (i32, i32) {
    %c0_i32 = arith.constant 0 : i32
    %c0_i32_0 = arith.constant 0 : i32
    %c0_i32_1 = arith.constant 0 : i32
    return %c0_i32, %c0_i32_0 : i32, i32
  }
  func.func @transform_14(%arg0: i32) -> (i32, i32, i32) {
    %c0_i32 = arith.constant 0 : i32
    %c0_i32_0 = arith.constant 0 : i32
    %c0_i32_1 = arith.constant 0 : i32
    %c0_i32_2 = arith.constant 0 : i32
    return %c0_i32, %c0_i32_0, %c0_i32_1 : i32, i32, i32
  }
  func.func @transform_15(%arg0: i32) -> (i32, i32) {
    %c0_i32 = arith.constant 0 : i32
    %c0_i32_0 = arith.constant 0 : i32
    %c0_i32_1 = arith.constant 0 : i32
    return %c0_i32, %c0_i32_0 : i32, i32
  }
  func.func @transform_16(%arg0: i32) -> (i32, i32, i32) {
    %c0_i32 = arith.constant 0 : i32
    %c0_i32_0 = arith.constant 0 : i32
    %c0_i32_1 = arith.constant 0 : i32
    %c0_i32_2 = arith.constant 0 : i32
    return %c0_i32, %c0_i32_0, %c0_i32_1 : i32, i32, i32
  }
  func.func @transform_17(%arg0: i32) -> (i32, i32) {
    %c0_i32 = arith.constant 0 : i32
    %c0_i32_0 = arith.constant 0 : i32
    %c0_i32_1 = arith.constant 0 : i32
    return %c0_i32, %c0_i32_0 : i32, i32
  }
  func.func @transform_18(%arg0: i32) -> (i32, i32) {
    %c0_i32 = arith.constant 0 : i32
    %c0_i32_0 = arith.constant 0 : i32
    %c0_i32_1 = arith.constant 0 : i32
    return %c0_i32, %c0_i32_0 : i32, i32
  }
  func.func @transform_19(%arg0: i32) -> (i32, i32) {
    %c0_i32 = arith.constant 0 : i32
    %c0_i32_0 = arith.constant 0 : i32
    %c0_i32_1 = arith.constant 0 : i32
    return %c0_i32, %c0_i32_0 : i32, i32
  }
  func.func @transform_20(%arg0: i32) -> (i32, i32) {
    %c0_i32 = arith.constant 0 : i32
    %c0_i32_0 = arith.constant 0 : i32
    %c0_i32_1 = arith.constant 0 : i32
    return %c0_i32, %c0_i32_0 : i32, i32
  }
  func.func @transform_21(%arg0: i32) -> (i32, i32) {
    %c0_i32 = arith.constant 0 : i32
    %c0_i32_0 = arith.constant 0 : i32
    %c0_i32_1 = arith.constant 0 : i32
    return %c0_i32, %c0_i32_0 : i32, i32
  }
  func.func @transform_22(%arg0: i32) -> (i32, i32, i32) {
    %c0_i32 = arith.constant 0 : i32
    %c0_i32_0 = arith.constant 0 : i32
    %c0_i32_1 = arith.constant 0 : i32
    return %arg0, %c0_i32, %c0_i32_0 : i32, i32, i32
  }
  func.func @transform_23(%arg0: i32) -> (i32, i32, i32) {
    %c0_i32 = arith.constant 0 : i32
    %c0_i32_0 = arith.constant 0 : i32
    %c0_i32_1 = arith.constant 0 : i32
    return %arg0, %c0_i32, %c0_i32_0 : i32, i32, i32
  }
  func.func @transform_24(%arg0: i32) -> (i32, i32, i32) {
    %c0_i32 = arith.constant 0 : i32
    %c0_i32_0 = arith.constant 0 : i32
    %c0_i32_1 = arith.constant 0 : i32
    return %arg0, %c0_i32, %c0_i32_0 : i32, i32, i32
  }
}

module attributes {stable_mosaic.version = 11 : i64} {
  func.func @_rfdb_esa_kernel(%arg0: i32, %arg1: memref<1x4x286xf32, #tpu.memory_space<vmem>>, %arg2: memref<1x1x286xf32, #tpu.memory_space<vmem>>, %arg3: memref<1x9x49xf32, #tpu.memory_space<vmem>>, %arg4: memref<1x9xf32, #tpu.memory_space<vmem>>, %arg5: memref<1x1xf32, #tpu.memory_space<vmem>>, %arg6: memref<9x1x1xf32, #tpu.memory_space<vmem>>, %arg7: memref<1x1xf32, #tpu.memory_space<vmem>>, %arg8: memref<9x1x1xf32, #tpu.memory_space<vmem>>, %arg9: memref<1x1xf32, #tpu.memory_space<vmem>>, %arg10: memref<9x1x1xf32, #tpu.memory_space<vmem>>, %arg11: memref<1x1xf32, #tpu.memory_space<vmem>>, %arg12: memref<4x1xf32, #tpu.memory_space<vmem>>, %arg13: memref<4x1xf32, #tpu.memory_space<vmem>>, %arg14: memref<1x286xf32, #tpu.memory_space<vmem>>, %arg15: memref<1x1xf32, #tpu.memory_space<vmem>>, %arg16: memref<1x4x286xf32, #tpu.memory_space<vmem>>, %arg17: memref<3x1x9xf32, #tpu.memory_space<vmem>>) attributes {dimension_semantics = [#tpu.dimension_semantics<parallel>], iteration_bounds = array<i64: 2>, scalar_prefetch = 0 : i64, scratch_operands = 1 : i64, tpu.core_type = #tpu.core_type<tc>, window_params = [{transform_indices = @transform_0, window_bounds = array<i64: 1, 4, 286>}, {transform_indices = @transform_1, window_bounds = array<i64: 1, 1, 286>}, {transform_indices = @transform_2, window_bounds = array<i64: 1, 9, 49>}, {pipeline_mode = #tpu.pipeline_mode<synchronous>, transform_indices = @transform_3, window_bounds = array<i64: 1, 9>}, {pipeline_mode = #tpu.pipeline_mode<synchronous>, transform_indices = @transform_4, window_bounds = array<i64: 1, 1>}, {pipeline_mode = #tpu.pipeline_mode<synchronous>, transform_indices = @transform_5, window_bounds = array<i64: 9, 1, 1>}, {pipeline_mode = #tpu.pipeline_mode<synchronous>, transform_indices = @transform_6, window_bounds = array<i64: 1, 1>}, {pipeline_mode = #tpu.pipeline_mode<synchronous>, transform_indices = @transform_7, window_bounds = array<i64: 9, 1, 1>}, {pipeline_mode = #tpu.pipeline_mode<synchronous>, transform_indices = @transform_8, window_bounds = array<i64: 1, 1>}, {pipeline_mode = #tpu.pipeline_mode<synchronous>, transform_indices = @transform_9, window_bounds = array<i64: 9, 1, 1>}, {pipeline_mode = #tpu.pipeline_mode<synchronous>, transform_indices = @transform_10, window_bounds = array<i64: 1, 1>}, {pipeline_mode = #tpu.pipeline_mode<synchronous>, transform_indices = @transform_11, window_bounds = array<i64: 4, 1>}, {pipeline_mode = #tpu.pipeline_mode<synchronous>, transform_indices = @transform_12, window_bounds = array<i64: 4, 1>}, {pipeline_mode = #tpu.pipeline_mode<synchronous>, transform_indices = @transform_13, window_bounds = array<i64: 1, 286>}, {pipeline_mode = #tpu.pipeline_mode<synchronous>, transform_indices = @transform_14, window_bounds = array<i64: 1, 1>}, {transform_indices = @transform_15, window_bounds = array<i64: 1, 4, 286>}]} {
    %c0 = arith.constant 0 : index
    %c0_0 = arith.constant 0 : index
    %0 = vector.load %arg15[%c0, %c0_0] : memref<1x1xf32, #tpu.memory_space<vmem>>, vector<1x1xf32>
    %cst = arith.constant 0.000000e+00 : f32
    %1 = vector.broadcast %cst : f32 to vector<3x1x9xf32>
    %c0_1 = arith.constant 0 : index
    %c0_2 = arith.constant 0 : index
    %c0_3 = arith.constant 0 : index
    %2 = vector.load %arg17[%c0_1, %c0_2, %c0_3] : memref<3x1x9xf32, #tpu.memory_space<vmem>>, vector<3x1x9xf32>
    tpu.vector_store %arg17[%c0_1, %c0_2, %c0_3], %1 {strides = array<i32>} : memref<3x1x9xf32, #tpu.memory_space<vmem>>, vector<3x1x9xf32>,
    %c0_4 = arith.constant 0 : index
    %c0_5 = arith.constant 0 : index
    %3 = vector.load %arg4[%c0_4, %c0_5] : memref<1x9xf32, #tpu.memory_space<vmem>>, vector<1x9xf32>
    %c0_6 = arith.constant 0 : index
    %c0_7 = arith.constant 0 : index
    %c0_8 = arith.constant 0 : index
    %4 = vector.load %arg3[%c0_6, %c0_7, %c0_8] : memref<1x9x49xf32, #tpu.memory_space<vmem>>, vector<1x9x49xf32>
    %5 = vector.shape_cast %4 : vector<1x9x49xf32> to vector<9x49xf32>
    %cst_9 = arith.constant dense<0.000000e+00> : vector<1x49xf32>
    %6 = tpu.matmul %3, %5, %cst_9 {dimension_numbers = #tpu.dot_dimension_numbers<[1], [0], [0], [1], [0, 0, 1, 1], [], []>} : vector<1x9xf32>, vector<9x49xf32>, vector<1x49xf32> -> vector<1x49xf32>
    %c0_10 = arith.constant 0 : index
    %c0_11 = arith.constant 0 : index
    %7 = vector.load %arg5[%c0_10, %c0_11] : memref<1x1xf32, #tpu.memory_space<vmem>>, vector<1x1xf32>
    %8 = vector.broadcast %7 : vector<1x1xf32> to vector<1x49xf32>
    %9 = arith.addf %6, %8 : vector<1x49xf32>
    %10 = vector.extract_strided_slice %9 {offsets = [0, 0], sizes = [1, 7], strides = [1, 1]} : vector<1x49xf32> to vector<1x7xf32>
    %11 = vector.extract_strided_slice %9 {offsets = [0, 7], sizes = [1, 7], strides = [1, 1]} : vector<1x49xf32> to vector<1x7xf32>
    %12 = vector.extract_strided_slice %9 {offsets = [0, 14], sizes = [1, 7], strides = [1, 1]} : vector<1x49xf32> to vector<1x7xf32>
    %13 = vector.extract_strided_slice %9 {offsets = [0, 21], sizes = [1, 7], strides = [1, 1]} : vector<1x49xf32> to vector<1x7xf32>
    %14 = vector.extract_strided_slice %9 {offsets = [0, 28], sizes = [1, 7], strides = [1, 1]} : vector<1x49xf32> to vector<1x7xf32>
    %15 = vector.extract_strided_slice %9 {offsets = [0, 35], sizes = [1, 7], strides = [1, 1]} : vector<1x49xf32> to vector<1x7xf32>
    %16 = vector.extract_strided_slice %9 {offsets = [0, 42], sizes = [1, 7], strides = [1, 1]} : vector<1x49xf32> to vector<1x7xf32>
    %17 = arith.maximumf %10, %11 : vector<1x7xf32>
    %18 = arith.maximumf %17, %12 : vector<1x7xf32>
    %19 = arith.maximumf %18, %13 : vector<1x7xf32>
    %20 = arith.maximumf %19, %14 : vector<1x7xf32>
    %21 = arith.maximumf %20, %15 : vector<1x7xf32>
    %22 = arith.maximumf %21, %16 : vector<1x7xf32>
    %cst_12 = arith.constant dense<0xFF800000> : vector<1xf32>
    %23 = vector.multi_reduction <maximumf>, %22, %cst_12 [1] : vector<1x7xf32> to vector<1xf32>
    %24 = vector.shape_cast %23 : vector<1xf32> to vector<1x1xf32>
    %c0_13 = arith.constant 0 : index
    %c0_14 = arith.constant 0 : index
    %c4 = arith.constant 4 : index
    %25 = vector.load %arg17[%c0_13, %c0_14, %c4] : memref<3x1x9xf32, #tpu.memory_space<vmem>>, vector<1x1x1xf32>
    %26 = vector.shape_cast %25 : vector<1x1x1xf32> to vector<1x1xf32>
    %27 = vector.shape_cast %24 : vector<1x1xf32> to vector<1x1x1xf32>
    tpu.vector_store %arg17[%c0_13, %c0_14, %c4], %27 {strides = array<i32>} : memref<3x1x9xf32, #tpu.memory_space<vmem>>, vector<1x1x1xf32>,
    %c0_15 = arith.constant 0 : index
    %c0_16 = arith.constant 0 : index
    %28 = vector.load %arg7[%c0_15, %c0_16] : memref<1x1xf32, #tpu.memory_space<vmem>>, vector<1x1xf32>
    %c0_17 = arith.constant 0 : index
    %c0_18 = arith.constant 0 : index
    %c0_19 = arith.constant 0 : index
    %29 = vector.load %arg17[%c0_17, %c0_18, %c0_19] : memref<3x1x9xf32, #tpu.memory_space<vmem>>, vector<1x1x1xf32>
    %30 = vector.shape_cast %29 : vector<1x1x1xf32> to vector<1x1xf32>
    %c0_20 = arith.constant 0 : index
    %c0_21 = arith.constant 0 : index
    %c0_22 = arith.constant 0 : index
    %31 = vector.load %arg6[%c0_20, %c0_21, %c0_22] : memref<9x1x1xf32, #tpu.memory_space<vmem>>, vector<1x1x1xf32>
    %32 = vector.shape_cast %31 : vector<1x1x1xf32> to vector<1x1xf32>
    %cst_23 = arith.constant dense<0.000000e+00> : vector<1x1xf32>
    %33 = tpu.matmul %32, %30, %cst_23 {dimension_numbers = #tpu.dot_dimension_numbers<[1], [0], [0], [1], [0, 0, 1, 1], [], []>} : vector<1x1xf32>, vector<1x1xf32>, vector<1x1xf32> -> vector<1x1xf32>
    %c0_24 = arith.constant 0 : index
    %c0_25 = arith.constant 0 : index
    %c1 = arith.constant 1 : index
    %34 = vector.load %arg17[%c0_24, %c0_25, %c1] : memref<3x1x9xf32, #tpu.memory_space<vmem>>, vector<1x1x1xf32>
    %35 = vector.shape_cast %34 : vector<1x1x1xf32> to vector<1x1xf32>
    %c1_26 = arith.constant 1 : index
    %c0_27 = arith.constant 0 : index
    %c0_28 = arith.constant 0 : index
    %36 = vector.load %arg6[%c1_26, %c0_27, %c0_28] : memref<9x1x1xf32, #tpu.memory_space<vmem>>, vector<1x1x1xf32>
    %37 = vector.shape_cast %36 : vector<1x1x1xf32> to vector<1x1xf32>
    %cst_29 = arith.constant dense<0.000000e+00> : vector<1x1xf32>
    %38 = tpu.matmul %37, %35, %cst_29 {dimension_numbers = #tpu.dot_dimension_numbers<[1], [0], [0], [1], [0, 0, 1, 1], [], []>} : vector<1x1xf32>, vector<1x1xf32>, vector<1x1xf32> -> vector<1x1xf32>
    %39 = arith.addf %33, %38 : vector<1x1xf32>
    %c0_30 = arith.constant 0 : index
    %c0_31 = arith.constant 0 : index
    %c2 = arith.constant 2 : index
    %40 = vector.load %arg17[%c0_30, %c0_31, %c2] : memref<3x1x9xf32, #tpu.memory_space<vmem>>, vector<1x1x1xf32>
    %41 = vector.shape_cast %40 : vector<1x1x1xf32> to vector<1x1xf32>
    %c2_32 = arith.constant 2 : index
    %c0_33 = arith.constant 0 : index
    %c0_34 = arith.constant 0 : index
    %42 = vector.load %arg6[%c2_32, %c0_33, %c0_34] : memref<9x1x1xf32, #tpu.memory_space<vmem>>, vector<1x1x1xf32>
    %43 = vector.shape_cast %42 : vector<1x1x1xf32> to vector<1x1xf32>
    %cst_35 = arith.constant dense<0.000000e+00> : vector<1x1xf32>
    %44 = tpu.matmul %43, %41, %cst_35 {dimension_numbers = #tpu.dot_dimension_numbers<[1], [0], [0], [1], [0, 0, 1, 1], [], []>} : vector<1x1xf32>, vector<1x1xf32>, vector<1x1xf32> -> vector<1x1xf32>
    %45 = arith.addf %39, %44 : vector<1x1xf32>
    %c0_36 = arith.constant 0 : index
    %c0_37 = arith.constant 0 : index
    %c3 = arith.constant 3 : index
    %46 = vector.load %arg17[%c0_36, %c0_37, %c3] : memref<3x1x9xf32, #tpu.memory_space<vmem>>, vector<1x1x1xf32>
    %47 = vector.shape_cast %46 : vector<1x1x1xf32> to vector<1x1xf32>
    %c3_38 = arith.constant 3 : index
    %c0_39 = arith.constant 0 : index
    %c0_40 = arith.constant 0 : index
    %48 = vector.load %arg6[%c3_38, %c0_39, %c0_40] : memref<9x1x1xf32, #tpu.memory_space<vmem>>, vector<1x1x1xf32>
    %49 = vector.shape_cast %48 : vector<1x1x1xf32> to vector<1x1xf32>
    %cst_41 = arith.constant dense<0.000000e+00> : vector<1x1xf32>
    %50 = tpu.matmul %49, %47, %cst_41 {dimension_numbers = #tpu.dot_dimension_numbers<[1], [0], [0], [1], [0, 0, 1, 1], [], []>} : vector<1x1xf32>, vector<1x1xf32>, vector<1x1xf32> -> vector<1x1xf32>
    %51 = arith.addf %45, %50 : vector<1x1xf32>
    %c0_42 = arith.constant 0 : index
    %c0_43 = arith.constant 0 : index
    %c4_44 = arith.constant 4 : index
    %52 = vector.load %arg17[%c0_42, %c0_43, %c4_44] : memref<3x1x9xf32, #tpu.memory_space<vmem>>, vector<1x1x1xf32>
    %53 = vector.shape_cast %52 : vector<1x1x1xf32> to vector<1x1xf32>
    %c4_45 = arith.constant 4 : index
    %c0_46 = arith.constant 0 : index
    %c0_47 = arith.constant 0 : index
    %54 = vector.load %arg6[%c4_45, %c0_46, %c0_47] : memref<9x1x1xf32, #tpu.memory_space<vmem>>, vector<1x1x1xf32>
    %55 = vector.shape_cast %54 : vector<1x1x1xf32> to vector<1x1xf32>
    %cst_48 = arith.constant dense<0.000000e+00> : vector<1x1xf32>
    %56 = tpu.matmul %55, %53, %cst_48 {dimension_numbers = #tpu.dot_dimension_numbers<[1], [0], [0], [1], [0, 0, 1, 1], [], []>} : vector<1x1xf32>, vector<1x1xf32>, vector<1x1xf32> -> vector<1x1xf32>
    %57 = arith.addf %51, %56 : vector<1x1xf32>
    %c0_49 = arith.constant 0 : index
    %c0_50 = arith.constant 0 : index
    %c5 = arith.constant 5 : index
    %58 = vector.load %arg17[%c0_49, %c0_50, %c5] : memref<3x1x9xf32, #tpu.memory_space<vmem>>, vector<1x1x1xf32>
    %59 = vector.shape_cast %58 : vector<1x1x1xf32> to vector<1x1xf32>
    %c5_51 = arith.constant 5 : index
    %c0_52 = arith.constant 0 : index
    %c0_53 = arith.constant 0 : index
    %60 = vector.load %arg6[%c5_51, %c0_52, %c0_53] : memref<9x1x1xf32, #tpu.memory_space<vmem>>, vector<1x1x1xf32>
    %61 = vector.shape_cast %60 : vector<1x1x1xf32> to vector<1x1xf32>
    %cst_54 = arith.constant dense<0.000000e+00> : vector<1x1xf32>
    %62 = tpu.matmul %61, %59, %cst_54 {dimension_numbers = #tpu.dot_dimension_numbers<[1], [0], [0], [1], [0, 0, 1, 1], [], []>} : vector<1x1xf32>, vector<1x1xf32>, vector<1x1xf32> -> vector<1x1xf32>
    %63 = arith.addf %57, %62 : vector<1x1xf32>
    %c0_55 = arith.constant 0 : index
    %c0_56 = arith.constant 0 : index
    %c6 = arith.constant 6 : index
    %64 = vector.load %arg17[%c0_55, %c0_56, %c6] : memref<3x1x9xf32, #tpu.memory_space<vmem>>, vector<1x1x1xf32>
    %65 = vector.shape_cast %64 : vector<1x1x1xf32> to vector<1x1xf32>
    %c6_57 = arith.constant 6 : index
    %c0_58 = arith.constant 0 : index
    %c0_59 = arith.constant 0 : index
    %66 = vector.load %arg6[%c6_57, %c0_58, %c0_59] : memref<9x1x1xf32, #tpu.memory_space<vmem>>, vector<1x1x1xf32>
    %67 = vector.shape_cast %66 : vector<1x1x1xf32> to vector<1x1xf32>
    %cst_60 = arith.constant dense<0.000000e+00> : vector<1x1xf32>
    %68 = tpu.matmul %67, %65, %cst_60 {dimension_numbers = #tpu.dot_dimension_numbers<[1], [0], [0], [1], [0, 0, 1, 1], [], []>} : vector<1x1xf32>, vector<1x1xf32>, vector<1x1xf32> -> vector<1x1xf32>
    %69 = arith.addf %63, %68 : vector<1x1xf32>
    %c0_61 = arith.constant 0 : index
    %c0_62 = arith.constant 0 : index
    %c7 = arith.constant 7 : index
    %70 = vector.load %arg17[%c0_61, %c0_62, %c7] : memref<3x1x9xf32, #tpu.memory_space<vmem>>, vector<1x1x1xf32>
    %71 = vector.shape_cast %70 : vector<1x1x1xf32> to vector<1x1xf32>
    %c7_63 = arith.constant 7 : index
    %c0_64 = arith.constant 0 : index
    %c0_65 = arith.constant 0 : index
    %72 = vector.load %arg6[%c7_63, %c0_64, %c0_65] : memref<9x1x1xf32, #tpu.memory_space<vmem>>, vector<1x1x1xf32>
    %73 = vector.shape_cast %72 : vector<1x1x1xf32> to vector<1x1xf32>
    %cst_66 = arith.constant dense<0.000000e+00> : vector<1x1xf32>
    %74 = tpu.matmul %73, %71, %cst_66 {dimension_numbers = #tpu.dot_dimension_numbers<[1], [0], [0], [1], [0, 0, 1, 1], [], []>} : vector<1x1xf32>, vector<1x1xf32>, vector<1x1xf32> -> vector<1x1xf32>
    %75 = arith.addf %69, %74 : vector<1x1xf32>
    %c0_67 = arith.constant 0 : index
    %c0_68 = arith.constant 0 : index
    %c8 = arith.constant 8 : index
    %76 = vector.load %arg17[%c0_67, %c0_68, %c8] : memref<3x1x9xf32, #tpu.memory_space<vmem>>, vector<1x1x1xf32>
    %77 = vector.shape_cast %76 : vector<1x1x1xf32> to vector<1x1xf32>
    %c8_69 = arith.constant 8 : index
    %c0_70 = arith.constant 0 : index
    %c0_71 = arith.constant 0 : index
    %78 = vector.load %arg6[%c8_69, %c0_70, %c0_71] : memref<9x1x1xf32, #tpu.memory_space<vmem>>, vector<1x1x1xf32>
    %79 = vector.shape_cast %78 : vector<1x1x1xf32> to vector<1x1xf32>
    %cst_72 = arith.constant dense<0.000000e+00> : vector<1x1xf32>
    %80 = tpu.matmul %79, %77, %cst_72 {dimension_numbers = #tpu.dot_dimension_numbers<[1], [0], [0], [1], [0, 0, 1, 1], [], []>} : vector<1x1xf32>, vector<1x1xf32>, vector<1x1xf32> -> vector<1x1xf32>
    %81 = arith.addf %75, %80 : vector<1x1xf32>
    %82 = arith.addf %81, %28 : vector<1x1xf32>
    %83 = arith.mulf %82, %0 : vector<1x1xf32>
    %cst_73 = arith.constant 0.000000e+00 : f32
    %84 = vector.broadcast %cst_73 : f32 to vector<1x1xf32>
    %85 = arith.maximumf %83, %84 : vector<1x1xf32>
    %c1_74 = arith.constant 1 : index
    %c0_75 = arith.constant 0 : index
    %c4_76 = arith.constant 4 : index
    %86 = vector.load %arg17[%c1_74, %c0_75, %c4_76] : memref<3x1x9xf32, #tpu.memory_space<vmem>>, vector<1x1x1xf32>
    %87 = vector.shape_cast %86 : vector<1x1x1xf32> to vector<1x1xf32>
    %88 = vector.shape_cast %85 : vector<1x1xf32> to vector<1x1x1xf32>
    tpu.vector_store %arg17[%c1_74, %c0_75, %c4_76], %88 {strides = array<i32>} : memref<3x1x9xf32, #tpu.memory_space<vmem>>, vector<1x1x1xf32>,
    %c0_77 = arith.constant 0 : index
    %c0_78 = arith.constant 0 : index
    %89 = vector.load %arg9[%c0_77, %c0_78] : memref<1x1xf32, #tpu.memory_space<vmem>>, vector<1x1xf32>
    %c1_79 = arith.constant 1 : index
    %c0_80 = arith.constant 0 : index
    %c0_81 = arith.constant 0 : index
    %90 = vector.load %arg17[%c1_79, %c0_80, %c0_81] : memref<3x1x9xf32, #tpu.memory_space<vmem>>, vector<1x1x1xf32>
    %91 = vector.shape_cast %90 : vector<1x1x1xf32> to vector<1x1xf32>
    %c0_82 = arith.constant 0 : index
    %c0_83 = arith.constant 0 : index
    %c0_84 = arith.constant 0 : index
    %92 = vector.load %arg8[%c0_82, %c0_83, %c0_84] : memref<9x1x1xf32, #tpu.memory_space<vmem>>, vector<1x1x1xf32>
    %93 = vector.shape_cast %92 : vector<1x1x1xf32> to vector<1x1xf32>
    %cst_85 = arith.constant dense<0.000000e+00> : vector<1x1xf32>
    %94 = tpu.matmul %93, %91, %cst_85 {dimension_numbers = #tpu.dot_dimension_numbers<[1], [0], [0], [1], [0, 0, 1, 1], [], []>} : vector<1x1xf32>, vector<1x1xf32>, vector<1x1xf32> -> vector<1x1xf32>
    %c1_86 = arith.constant 1 : index
    %c0_87 = arith.constant 0 : index
    %c1_88 = arith.constant 1 : index
    %95 = vector.load %arg17[%c1_86, %c0_87, %c1_88] : memref<3x1x9xf32, #tpu.memory_space<vmem>>, vector<1x1x1xf32>
    %96 = vector.shape_cast %95 : vector<1x1x1xf32> to vector<1x1xf32>
    %c1_89 = arith.constant 1 : index
    %c0_90 = arith.constant 0 : index
    %c0_91 = arith.constant 0 : index
    %97 = vector.load %arg8[%c1_89, %c0_90, %c0_91] : memref<9x1x1xf32, #tpu.memory_space<vmem>>, vector<1x1x1xf32>
    %98 = vector.shape_cast %97 : vector<1x1x1xf32> to vector<1x1xf32>
    %cst_92 = arith.constant dense<0.000000e+00> : vector<1x1xf32>
    %99 = tpu.matmul %98, %96, %cst_92 {dimension_numbers = #tpu.dot_dimension_numbers<[1], [0], [0], [1], [0, 0, 1, 1], [], []>} : vector<1x1xf32>, vector<1x1xf32>, vector<1x1xf32> -> vector<1x1xf32>
    %100 = arith.addf %94, %99 : vector<1x1xf32>
    %c1_93 = arith.constant 1 : index
    %c0_94 = arith.constant 0 : index
    %c2_95 = arith.constant 2 : index
    %101 = vector.load %arg17[%c1_93, %c0_94, %c2_95] : memref<3x1x9xf32, #tpu.memory_space<vmem>>, vector<1x1x1xf32>
    %102 = vector.shape_cast %101 : vector<1x1x1xf32> to vector<1x1xf32>
    %c2_96 = arith.constant 2 : index
    %c0_97 = arith.constant 0 : index
    %c0_98 = arith.constant 0 : index
    %103 = vector.load %arg8[%c2_96, %c0_97, %c0_98] : memref<9x1x1xf32, #tpu.memory_space<vmem>>, vector<1x1x1xf32>
    %104 = vector.shape_cast %103 : vector<1x1x1xf32> to vector<1x1xf32>
    %cst_99 = arith.constant dense<0.000000e+00> : vector<1x1xf32>
    %105 = tpu.matmul %104, %102, %cst_99 {dimension_numbers = #tpu.dot_dimension_numbers<[1], [0], [0], [1], [0, 0, 1, 1], [], []>} : vector<1x1xf32>, vector<1x1xf32>, vector<1x1xf32> -> vector<1x1xf32>
    %106 = arith.addf %100, %105 : vector<1x1xf32>
    %c1_100 = arith.constant 1 : index
    %c0_101 = arith.constant 0 : index
    %c3_102 = arith.constant 3 : index
    %107 = vector.load %arg17[%c1_100, %c0_101, %c3_102] : memref<3x1x9xf32, #tpu.memory_space<vmem>>, vector<1x1x1xf32>
    %108 = vector.shape_cast %107 : vector<1x1x1xf32> to vector<1x1xf32>
    %c3_103 = arith.constant 3 : index
    %c0_104 = arith.constant 0 : index
    %c0_105 = arith.constant 0 : index
    %109 = vector.load %arg8[%c3_103, %c0_104, %c0_105] : memref<9x1x1xf32, #tpu.memory_space<vmem>>, vector<1x1x1xf32>
    %110 = vector.shape_cast %109 : vector<1x1x1xf32> to vector<1x1xf32>
    %cst_106 = arith.constant dense<0.000000e+00> : vector<1x1xf32>
    %111 = tpu.matmul %110, %108, %cst_106 {dimension_numbers = #tpu.dot_dimension_numbers<[1], [0], [0], [1], [0, 0, 1, 1], [], []>} : vector<1x1xf32>, vector<1x1xf32>, vector<1x1xf32> -> vector<1x1xf32>
    %112 = arith.addf %106, %111 : vector<1x1xf32>
    %c1_107 = arith.constant 1 : index
    %c0_108 = arith.constant 0 : index
    %c4_109 = arith.constant 4 : index
    %113 = vector.load %arg17[%c1_107, %c0_108, %c4_109] : memref<3x1x9xf32, #tpu.memory_space<vmem>>, vector<1x1x1xf32>
    %114 = vector.shape_cast %113 : vector<1x1x1xf32> to vector<1x1xf32>
    %c4_110 = arith.constant 4 : index
    %c0_111 = arith.constant 0 : index
    %c0_112 = arith.constant 0 : index
    %115 = vector.load %arg8[%c4_110, %c0_111, %c0_112] : memref<9x1x1xf32, #tpu.memory_space<vmem>>, vector<1x1x1xf32>
    %116 = vector.shape_cast %115 : vector<1x1x1xf32> to vector<1x1xf32>
    %cst_113 = arith.constant dense<0.000000e+00> : vector<1x1xf32>
    %117 = tpu.matmul %116, %114, %cst_113 {dimension_numbers = #tpu.dot_dimension_numbers<[1], [0], [0], [1], [0, 0, 1, 1], [], []>} : vector<1x1xf32>, vector<1x1xf32>, vector<1x1xf32> -> vector<1x1xf32>
    %118 = arith.addf %112, %117 : vector<1x1xf32>
    %c1_114 = arith.constant 1 : index
    %c0_115 = arith.constant 0 : index
    %c5_116 = arith.constant 5 : index
    %119 = vector.load %arg17[%c1_114, %c0_115, %c5_116] : memref<3x1x9xf32, #tpu.memory_space<vmem>>, vector<1x1x1xf32>
    %120 = vector.shape_cast %119 : vector<1x1x1xf32> to vector<1x1xf32>
    %c5_117 = arith.constant 5 : index
    %c0_118 = arith.constant 0 : index
    %c0_119 = arith.constant 0 : index
    %121 = vector.load %arg8[%c5_117, %c0_118, %c0_119] : memref<9x1x1xf32, #tpu.memory_space<vmem>>, vector<1x1x1xf32>
    %122 = vector.shape_cast %121 : vector<1x1x1xf32> to vector<1x1xf32>
    %cst_120 = arith.constant dense<0.000000e+00> : vector<1x1xf32>
    %123 = tpu.matmul %122, %120, %cst_120 {dimension_numbers = #tpu.dot_dimension_numbers<[1], [0], [0], [1], [0, 0, 1, 1], [], []>} : vector<1x1xf32>, vector<1x1xf32>, vector<1x1xf32> -> vector<1x1xf32>
    %124 = arith.addf %118, %123 : vector<1x1xf32>
    %c1_121 = arith.constant 1 : index
    %c0_122 = arith.constant 0 : index
    %c6_123 = arith.constant 6 : index
    %125 = vector.load %arg17[%c1_121, %c0_122, %c6_123] : memref<3x1x9xf32, #tpu.memory_space<vmem>>, vector<1x1x1xf32>
    %126 = vector.shape_cast %125 : vector<1x1x1xf32> to vector<1x1xf32>
    %c6_124 = arith.constant 6 : index
    %c0_125 = arith.constant 0 : index
    %c0_126 = arith.constant 0 : index
    %127 = vector.load %arg8[%c6_124, %c0_125, %c0_126] : memref<9x1x1xf32, #tpu.memory_space<vmem>>, vector<1x1x1xf32>
    %128 = vector.shape_cast %127 : vector<1x1x1xf32> to vector<1x1xf32>
    %cst_127 = arith.constant dense<0.000000e+00> : vector<1x1xf32>
    %129 = tpu.matmul %128, %126, %cst_127 {dimension_numbers = #tpu.dot_dimension_numbers<[1], [0], [0], [1], [0, 0, 1, 1], [], []>} : vector<1x1xf32>, vector<1x1xf32>, vector<1x1xf32> -> vector<1x1xf32>
    %130 = arith.addf %124, %129 : vector<1x1xf32>
    %c1_128 = arith.constant 1 : index
    %c0_129 = arith.constant 0 : index
    %c7_130 = arith.constant 7 : index
    %131 = vector.load %arg17[%c1_128, %c0_129, %c7_130] : memref<3x1x9xf32, #tpu.memory_space<vmem>>, vector<1x1x1xf32>
    %132 = vector.shape_cast %131 : vector<1x1x1xf32> to vector<1x1xf32>
    %c7_131 = arith.constant 7 : index
    %c0_132 = arith.constant 0 : index
    %c0_133 = arith.constant 0 : index
    %133 = vector.load %arg8[%c7_131, %c0_132, %c0_133] : memref<9x1x1xf32, #tpu.memory_space<vmem>>, vector<1x1x1xf32>
    %134 = vector.shape_cast %133 : vector<1x1x1xf32> to vector<1x1xf32>
    %cst_134 = arith.constant dense<0.000000e+00> : vector<1x1xf32>
    %135 = tpu.matmul %134, %132, %cst_134 {dimension_numbers = #tpu.dot_dimension_numbers<[1], [0], [0], [1], [0, 0, 1, 1], [], []>} : vector<1x1xf32>, vector<1x1xf32>, vector<1x1xf32> -> vector<1x1xf32>
    %136 = arith.addf %130, %135 : vector<1x1xf32>
    %c1_135 = arith.constant 1 : index
    %c0_136 = arith.constant 0 : index
    %c8_137 = arith.constant 8 : index
    %137 = vector.load %arg17[%c1_135, %c0_136, %c8_137] : memref<3x1x9xf32, #tpu.memory_space<vmem>>, vector<1x1x1xf32>
    %138 = vector.shape_cast %137 : vector<1x1x1xf32> to vector<1x1xf32>
    %c8_138 = arith.constant 8 : index
    %c0_139 = arith.constant 0 : index
    %c0_140 = arith.constant 0 : index
    %139 = vector.load %arg8[%c8_138, %c0_139, %c0_140] : memref<9x1x1xf32, #tpu.memory_space<vmem>>, vector<1x1x1xf32>
    %140 = vector.shape_cast %139 : vector<1x1x1xf32> to vector<1x1xf32>
    %cst_141 = arith.constant dense<0.000000e+00> : vector<1x1xf32>
    %141 = tpu.matmul %140, %138, %cst_141 {dimension_numbers = #tpu.dot_dimension_numbers<[1], [0], [0], [1], [0, 0, 1, 1], [], []>} : vector<1x1xf32>, vector<1x1xf32>, vector<1x1xf32> -> vector<1x1xf32>
    %142 = arith.addf %136, %141 : vector<1x1xf32>
    %143 = arith.addf %142, %89 : vector<1x1xf32>
    %144 = arith.mulf %143, %0 : vector<1x1xf32>
    %cst_142 = arith.constant 0.000000e+00 : f32
    %145 = vector.broadcast %cst_142 : f32 to vector<1x1xf32>
    %146 = arith.maximumf %144, %145 : vector<1x1xf32>
    %c2_143 = arith.constant 2 : index
    %c0_144 = arith.constant 0 : index
    %c4_145 = arith.constant 4 : index
    %147 = vector.load %arg17[%c2_143, %c0_144, %c4_145] : memref<3x1x9xf32, #tpu.memory_space<vmem>>, vector<1x1x1xf32>
    %148 = vector.shape_cast %147 : vector<1x1x1xf32> to vector<1x1xf32>
    %149 = vector.shape_cast %146 : vector<1x1xf32> to vector<1x1x1xf32>
    tpu.vector_store %arg17[%c2_143, %c0_144, %c4_145], %149 {strides = array<i32>} : memref<3x1x9xf32, #tpu.memory_space<vmem>>, vector<1x1x1xf32>,
    %c0_146 = arith.constant 0 : index
    %c0_147 = arith.constant 0 : index
    %150 = vector.load %arg11[%c0_146, %c0_147] : memref<1x1xf32, #tpu.memory_space<vmem>>, vector<1x1xf32>
    %c2_148 = arith.constant 2 : index
    %c0_149 = arith.constant 0 : index
    %c0_150 = arith.constant 0 : index
    %151 = vector.load %arg17[%c2_148, %c0_149, %c0_150] : memref<3x1x9xf32, #tpu.memory_space<vmem>>, vector<1x1x1xf32>
    %152 = vector.shape_cast %151 : vector<1x1x1xf32> to vector<1x1xf32>
    %c0_151 = arith.constant 0 : index
    %c0_152 = arith.constant 0 : index
    %c0_153 = arith.constant 0 : index
    %153 = vector.load %arg10[%c0_151, %c0_152, %c0_153] : memref<9x1x1xf32, #tpu.memory_space<vmem>>, vector<1x1x1xf32>
    %154 = vector.shape_cast %153 : vector<1x1x1xf32> to vector<1x1xf32>
    %cst_154 = arith.constant dense<0.000000e+00> : vector<1x1xf32>
    %155 = tpu.matmul %154, %152, %cst_154 {dimension_numbers = #tpu.dot_dimension_numbers<[1], [0], [0], [1], [0, 0, 1, 1], [], []>} : vector<1x1xf32>, vector<1x1xf32>, vector<1x1xf32> -> vector<1x1xf32>
    %c2_155 = arith.constant 2 : index
    %c0_156 = arith.constant 0 : index
    %c1_157 = arith.constant 1 : index
    %156 = vector.load %arg17[%c2_155, %c0_156, %c1_157] : memref<3x1x9xf32, #tpu.memory_space<vmem>>, vector<1x1x1xf32>
    %157 = vector.shape_cast %156 : vector<1x1x1xf32> to vector<1x1xf32>
    %c1_158 = arith.constant 1 : index
    %c0_159 = arith.constant 0 : index
    %c0_160 = arith.constant 0 : index
    %158 = vector.load %arg10[%c1_158, %c0_159, %c0_160] : memref<9x1x1xf32, #tpu.memory_space<vmem>>, vector<1x1x1xf32>
    %159 = vector.shape_cast %158 : vector<1x1x1xf32> to vector<1x1xf32>
    %cst_161 = arith.constant dense<0.000000e+00> : vector<1x1xf32>
    %160 = tpu.matmul %159, %157, %cst_161 {dimension_numbers = #tpu.dot_dimension_numbers<[1], [0], [0], [1], [0, 0, 1, 1], [], []>} : vector<1x1xf32>, vector<1x1xf32>, vector<1x1xf32> -> vector<1x1xf32>
    %161 = arith.addf %155, %160 : vector<1x1xf32>
    %c2_162 = arith.constant 2 : index
    %c0_163 = arith.constant 0 : index
    %c2_164 = arith.constant 2 : index
    %162 = vector.load %arg17[%c2_162, %c0_163, %c2_164] : memref<3x1x9xf32, #tpu.memory_space<vmem>>, vector<1x1x1xf32>
    %163 = vector.shape_cast %162 : vector<1x1x1xf32> to vector<1x1xf32>
    %c2_165 = arith.constant 2 : index
    %c0_166 = arith.constant 0 : index
    %c0_167 = arith.constant 0 : index
    %164 = vector.load %arg10[%c2_165, %c0_166, %c0_167] : memref<9x1x1xf32, #tpu.memory_space<vmem>>, vector<1x1x1xf32>
    %165 = vector.shape_cast %164 : vector<1x1x1xf32> to vector<1x1xf32>
    %cst_168 = arith.constant dense<0.000000e+00> : vector<1x1xf32>
    %166 = tpu.matmul %165, %163, %cst_168 {dimension_numbers = #tpu.dot_dimension_numbers<[1], [0], [0], [1], [0, 0, 1, 1], [], []>} : vector<1x1xf32>, vector<1x1xf32>, vector<1x1xf32> -> vector<1x1xf32>
    %167 = arith.addf %161, %166 : vector<1x1xf32>
    %c2_169 = arith.constant 2 : index
    %c0_170 = arith.constant 0 : index
    %c3_171 = arith.constant 3 : index
    %168 = vector.load %arg17[%c2_169, %c0_170, %c3_171] : memref<3x1x9xf32, #tpu.memory_space<vmem>>, vector<1x1x1xf32>
    %169 = vector.shape_cast %168 : vector<1x1x1xf32> to vector<1x1xf32>
    %c3_172 = arith.constant 3 : index
    %c0_173 = arith.constant 0 : index
    %c0_174 = arith.constant 0 : index
    %170 = vector.load %arg10[%c3_172, %c0_173, %c0_174] : memref<9x1x1xf32, #tpu.memory_space<vmem>>, vector<1x1x1xf32>
    %171 = vector.shape_cast %170 : vector<1x1x1xf32> to vector<1x1xf32>
    %cst_175 = arith.constant dense<0.000000e+00> : vector<1x1xf32>
    %172 = tpu.matmul %171, %169, %cst_175 {dimension_numbers = #tpu.dot_dimension_numbers<[1], [0], [0], [1], [0, 0, 1, 1], [], []>} : vector<1x1xf32>, vector<1x1xf32>, vector<1x1xf32> -> vector<1x1xf32>
    %173 = arith.addf %167, %172 : vector<1x1xf32>
    %c2_176 = arith.constant 2 : index
    %c0_177 = arith.constant 0 : index
    %c4_178 = arith.constant 4 : index
    %174 = vector.load %arg17[%c2_176, %c0_177, %c4_178] : memref<3x1x9xf32, #tpu.memory_space<vmem>>, vector<1x1x1xf32>
    %175 = vector.shape_cast %174 : vector<1x1x1xf32> to vector<1x1xf32>
    %c4_179 = arith.constant 4 : index
    %c0_180 = arith.constant 0 : index
    %c0_181 = arith.constant 0 : index
    %176 = vector.load %arg10[%c4_179, %c0_180, %c0_181] : memref<9x1x1xf32, #tpu.memory_space<vmem>>, vector<1x1x1xf32>
    %177 = vector.shape_cast %176 : vector<1x1x1xf32> to vector<1x1xf32>
    %cst_182 = arith.constant dense<0.000000e+00> : vector<1x1xf32>
    %178 = tpu.matmul %177, %175, %cst_182 {dimension_numbers = #tpu.dot_dimension_numbers<[1], [0], [0], [1], [0, 0, 1, 1], [], []>} : vector<1x1xf32>, vector<1x1xf32>, vector<1x1xf32> -> vector<1x1xf32>
    %179 = arith.addf %173, %178 : vector<1x1xf32>
    %c2_183 = arith.constant 2 : index
    %c0_184 = arith.constant 0 : index
    %c5_185 = arith.constant 5 : index
    %180 = vector.load %arg17[%c2_183, %c0_184, %c5_185] : memref<3x1x9xf32, #tpu.memory_space<vmem>>, vector<1x1x1xf32>
    %181 = vector.shape_cast %180 : vector<1x1x1xf32> to vector<1x1xf32>
    %c5_186 = arith.constant 5 : index
    %c0_187 = arith.constant 0 : index
    %c0_188 = arith.constant 0 : index
    %182 = vector.load %arg10[%c5_186, %c0_187, %c0_188] : memref<9x1x1xf32, #tpu.memory_space<vmem>>, vector<1x1x1xf32>
    %183 = vector.shape_cast %182 : vector<1x1x1xf32> to vector<1x1xf32>
    %cst_189 = arith.constant dense<0.000000e+00> : vector<1x1xf32>
    %184 = tpu.matmul %183, %181, %cst_189 {dimension_numbers = #tpu.dot_dimension_numbers<[1], [0], [0], [1], [0, 0, 1, 1], [], []>} : vector<1x1xf32>, vector<1x1xf32>, vector<1x1xf32> -> vector<1x1xf32>
    %185 = arith.addf %179, %184 : vector<1x1xf32>
    %c2_190 = arith.constant 2 : index
    %c0_191 = arith.constant 0 : index
    %c6_192 = arith.constant 6 : index
    %186 = vector.load %arg17[%c2_190, %c0_191, %c6_192] : memref<3x1x9xf32, #tpu.memory_space<vmem>>, vector<1x1x1xf32>
    %187 = vector.shape_cast %186 : vector<1x1x1xf32> to vector<1x1xf32>
    %c6_193 = arith.constant 6 : index
    %c0_194 = arith.constant 0 : index
    %c0_195 = arith.constant 0 : index
    %188 = vector.load %arg10[%c6_193, %c0_194, %c0_195] : memref<9x1x1xf32, #tpu.memory_space<vmem>>, vector<1x1x1xf32>
    %189 = vector.shape_cast %188 : vector<1x1x1xf32> to vector<1x1xf32>
    %cst_196 = arith.constant dense<0.000000e+00> : vector<1x1xf32>
    %190 = tpu.matmul %189, %187, %cst_196 {dimension_numbers = #tpu.dot_dimension_numbers<[1], [0], [0], [1], [0, 0, 1, 1], [], []>} : vector<1x1xf32>, vector<1x1xf32>, vector<1x1xf32> -> vector<1x1xf32>
    %191 = arith.addf %185, %190 : vector<1x1xf32>
    %c2_197 = arith.constant 2 : index
    %c0_198 = arith.constant 0 : index
    %c7_199 = arith.constant 7 : index
    %192 = vector.load %arg17[%c2_197, %c0_198, %c7_199] : memref<3x1x9xf32, #tpu.memory_space<vmem>>, vector<1x1x1xf32>
    %193 = vector.shape_cast %192 : vector<1x1x1xf32> to vector<1x1xf32>
    %c7_200 = arith.constant 7 : index
    %c0_201 = arith.constant 0 : index
    %c0_202 = arith.constant 0 : index
    %194 = vector.load %arg10[%c7_200, %c0_201, %c0_202] : memref<9x1x1xf32, #tpu.memory_space<vmem>>, vector<1x1x1xf32>
    %195 = vector.shape_cast %194 : vector<1x1x1xf32> to vector<1x1xf32>
    %cst_203 = arith.constant dense<0.000000e+00> : vector<1x1xf32>
    %196 = tpu.matmul %195, %193, %cst_203 {dimension_numbers = #tpu.dot_dimension_numbers<[1], [0], [0], [1], [0, 0, 1, 1], [], []>} : vector<1x1xf32>, vector<1x1xf32>, vector<1x1xf32> -> vector<1x1xf32>
    %197 = arith.addf %191, %196 : vector<1x1xf32>
    %c2_204 = arith.constant 2 : index
    %c0_205 = arith.constant 0 : index
    %c8_206 = arith.constant 8 : index
    %198 = vector.load %arg17[%c2_204, %c0_205, %c8_206] : memref<3x1x9xf32, #tpu.memory_space<vmem>>, vector<1x1x1xf32>
    %199 = vector.shape_cast %198 : vector<1x1x1xf32> to vector<1x1xf32>
    %c8_207 = arith.constant 8 : index
    %c0_208 = arith.constant 0 : index
    %c0_209 = arith.constant 0 : index
    %200 = vector.load %arg10[%c8_207, %c0_208, %c0_209] : memref<9x1x1xf32, #tpu.memory_space<vmem>>, vector<1x1x1xf32>
    %201 = vector.shape_cast %200 : vector<1x1x1xf32> to vector<1x1xf32>
    %cst_210 = arith.constant dense<0.000000e+00> : vector<1x1xf32>
    %202 = tpu.matmul %201, %199, %cst_210 {dimension_numbers = #tpu.dot_dimension_numbers<[1], [0], [0], [1], [0, 0, 1, 1], [], []>} : vector<1x1xf32>, vector<1x1xf32>, vector<1x1xf32> -> vector<1x1xf32>
    %203 = arith.addf %197, %202 : vector<1x1xf32>
    %204 = arith.addf %203, %150 : vector<1x1xf32>
    %205 = arith.mulf %204, %0 : vector<1x1xf32>
    %c0_211 = arith.constant 0 : index
    %c0_212 = arith.constant 0 : index
    %206 = vector.load %arg14[%c0_211, %c0_212] : memref<1x286xf32, #tpu.memory_space<vmem>>, vector<1x286xf32>
    %cst_213 = arith.constant dense<0.000000e+00> : vector<1x286xf32>
    %207 = tpu.matmul %205, %206, %cst_213 {dimension_numbers = #tpu.dot_dimension_numbers<[1], [0], [0], [1], [0, 0, 1, 1], [], []>} : vector<1x1xf32>, vector<1x286xf32>, vector<1x286xf32> -> vector<1x286xf32>
    %c0_214 = arith.constant 0 : index
    %c0_215 = arith.constant 0 : index
    %c0_216 = arith.constant 0 : index
    %208 = vector.load %arg2[%c0_214, %c0_215, %c0_216] : memref<1x1x286xf32, #tpu.memory_space<vmem>>, vector<1x1x286xf32>
    %209 = vector.shape_cast %208 : vector<1x1x286xf32> to vector<1x286xf32>
    %210 = arith.addf %207, %209 : vector<1x286xf32>
    %c0_217 = arith.constant 0 : index
    %c0_218 = arith.constant 0 : index
    %211 = vector.load %arg12[%c0_217, %c0_218] : memref<4x1xf32, #tpu.memory_space<vmem>>, vector<4x1xf32>
    %cst_219 = arith.constant dense<0.000000e+00> : vector<4x286xf32>
    %212 = tpu.matmul %211, %210, %cst_219 {dimension_numbers = #tpu.dot_dimension_numbers<[1], [0], [0], [1], [0, 0, 1, 1], [], []>} : vector<4x1xf32>, vector<1x286xf32>, vector<4x286xf32> -> vector<4x286xf32>
    %c0_220 = arith.constant 0 : index
    %c0_221 = arith.constant 0 : index
    %213 = vector.load %arg13[%c0_220, %c0_221] : memref<4x1xf32, #tpu.memory_space<vmem>>, vector<4x1xf32>
    %214 = vector.broadcast %213 : vector<4x1xf32> to vector<4x286xf32>
    %215 = arith.addf %212, %214 : vector<4x286xf32>
    %cst_222 = arith.constant 0.000000e+00 : f32
    %216 = vector.broadcast %cst_222 : f32 to vector<4x286xf32>
    %217 = arith.subf %216, %215 : vector<4x286xf32>
    %218 = math.exp %217 : vector<4x286xf32>
    %cst_223 = arith.constant 1.000000e+00 : f32
    %219 = vector.broadcast %cst_223 : f32 to vector<4x286xf32>
    %220 = arith.addf %219, %218 : vector<4x286xf32>
    %cst_224 = arith.constant 1.000000e+00 : f32
    %221 = vector.broadcast %cst_224 : f32 to vector<4x286xf32>
    %222 = arith.divf %221, %220 : vector<4x286xf32>
    %c0_225 = arith.constant 0 : index
    %c0_226 = arith.constant 0 : index
    %c0_227 = arith.constant 0 : index
    %223 = vector.load %arg1[%c0_225, %c0_226, %c0_227] : memref<1x4x286xf32, #tpu.memory_space<vmem>>, vector<1x4x286xf32>
    %224 = vector.shape_cast %223 : vector<1x4x286xf32> to vector<4x286xf32>
    %225 = arith.mulf %224, %222 : vector<4x286xf32>
    %c0_228 = arith.constant 0 : index
    %c0_229 = arith.constant 0 : index
    %c0_230 = arith.constant 0 : index
    %226 = vector.load %arg16[%c0_228, %c0_229, %c0_230] : memref<1x4x286xf32, #tpu.memory_space<vmem>>, vector<1x4x286xf32>
    %227 = vector.shape_cast %226 : vector<1x4x286xf32> to vector<4x286xf32>
    %228 = vector.shape_cast %225 : vector<4x286xf32> to vector<1x4x286xf32>
    tpu.vector_store %arg16[%c0_228, %c0_229, %c0_230], %228 {strides = array<i32>} : memref<1x4x286xf32, #tpu.memory_space<vmem>>, vector<1x4x286xf32>,
    return
  }
  func.func @transform_0(%arg0: i32) -> (i32, i32, i32) {
    %c0_i32 = arith.constant 0 : i32
    %c0_i32_0 = arith.constant 0 : i32
    %c0_i32_1 = arith.constant 0 : i32
    return %arg0, %c0_i32, %c0_i32_0 : i32, i32, i32
  }
  func.func @transform_1(%arg0: i32) -> (i32, i32, i32) {
    %c0_i32 = arith.constant 0 : i32
    %c0_i32_0 = arith.constant 0 : i32
    %c0_i32_1 = arith.constant 0 : i32
    return %arg0, %c0_i32, %c0_i32_0 : i32, i32, i32
  }
  func.func @transform_2(%arg0: i32) -> (i32, i32, i32) {
    %c0_i32 = arith.constant 0 : i32
    %c0_i32_0 = arith.constant 0 : i32
    %c0_i32_1 = arith.constant 0 : i32
    return %arg0, %c0_i32, %c0_i32_0 : i32, i32, i32
  }
  func.func @transform_3(%arg0: i32) -> (i32, i32) {
    %c0_i32 = arith.constant 0 : i32
    %c0_i32_0 = arith.constant 0 : i32
    %c0_i32_1 = arith.constant 0 : i32
    return %c0_i32, %c0_i32_0 : i32, i32
  }
  func.func @transform_4(%arg0: i32) -> (i32, i32) {
    %c0_i32 = arith.constant 0 : i32
    %c0_i32_0 = arith.constant 0 : i32
    %c0_i32_1 = arith.constant 0 : i32
    return %c0_i32, %c0_i32_0 : i32, i32
  }
  func.func @transform_5(%arg0: i32) -> (i32, i32, i32) {
    %c0_i32 = arith.constant 0 : i32
    %c0_i32_0 = arith.constant 0 : i32
    %c0_i32_1 = arith.constant 0 : i32
    %c0_i32_2 = arith.constant 0 : i32
    return %c0_i32, %c0_i32_0, %c0_i32_1 : i32, i32, i32
  }
  func.func @transform_6(%arg0: i32) -> (i32, i32) {
    %c0_i32 = arith.constant 0 : i32
    %c0_i32_0 = arith.constant 0 : i32
    %c0_i32_1 = arith.constant 0 : i32
    return %c0_i32, %c0_i32_0 : i32, i32
  }
  func.func @transform_7(%arg0: i32) -> (i32, i32, i32) {
    %c0_i32 = arith.constant 0 : i32
    %c0_i32_0 = arith.constant 0 : i32
    %c0_i32_1 = arith.constant 0 : i32
    %c0_i32_2 = arith.constant 0 : i32
    return %c0_i32, %c0_i32_0, %c0_i32_1 : i32, i32, i32
  }
  func.func @transform_8(%arg0: i32) -> (i32, i32) {
    %c0_i32 = arith.constant 0 : i32
    %c0_i32_0 = arith.constant 0 : i32
    %c0_i32_1 = arith.constant 0 : i32
    return %c0_i32, %c0_i32_0 : i32, i32
  }
  func.func @transform_9(%arg0: i32) -> (i32, i32, i32) {
    %c0_i32 = arith.constant 0 : i32
    %c0_i32_0 = arith.constant 0 : i32
    %c0_i32_1 = arith.constant 0 : i32
    %c0_i32_2 = arith.constant 0 : i32
    return %c0_i32, %c0_i32_0, %c0_i32_1 : i32, i32, i32
  }
  func.func @transform_10(%arg0: i32) -> (i32, i32) {
    %c0_i32 = arith.constant 0 : i32
    %c0_i32_0 = arith.constant 0 : i32
    %c0_i32_1 = arith.constant 0 : i32
    return %c0_i32, %c0_i32_0 : i32, i32
  }
  func.func @transform_11(%arg0: i32) -> (i32, i32) {
    %c0_i32 = arith.constant 0 : i32
    %c0_i32_0 = arith.constant 0 : i32
    %c0_i32_1 = arith.constant 0 : i32
    return %c0_i32, %c0_i32_0 : i32, i32
  }
  func.func @transform_12(%arg0: i32) -> (i32, i32) {
    %c0_i32 = arith.constant 0 : i32
    %c0_i32_0 = arith.constant 0 : i32
    %c0_i32_1 = arith.constant 0 : i32
    return %c0_i32, %c0_i32_0 : i32, i32
  }
  func.func @transform_13(%arg0: i32) -> (i32, i32) {
    %c0_i32 = arith.constant 0 : i32
    %c0_i32_0 = arith.constant 0 : i32
    %c0_i32_1 = arith.constant 0 : i32
    return %c0_i32, %c0_i32_0 : i32, i32
  }
  func.func @transform_14(%arg0: i32) -> (i32, i32) {
    %c0_i32 = arith.constant 0 : i32
    %c0_i32_0 = arith.constant 0 : i32
    %c0_i32_1 = arith.constant 0 : i32
    return %c0_i32, %c0_i32_0 : i32, i32
  }
  func.func @transform_15(%arg0: i32) -> (i32, i32, i32) {
    %c0_i32 = arith.constant 0 : i32
    %c0_i32_0 = arith.constant 0 : i32
    %c0_i32_1 = arith.constant 0 : i32
    return %arg0, %c0_i32, %c0_i32_0 : i32, i32, i32
  }
}

</mosaic_0001>

<bundles_post_ra>
// kernel: rfdb_forward_pallas.3
= control target key start
LH: loop header
LB: loop body
LE: loop exit
PB: predicated region body
PF: predicated region fallthrough
CT: control target
= control target key end

     0   :  { %s4117_s0 = inlined_call_operand.vmem [shape: f32[2,4,286], index: 0, kind: input, shape index: {}]   ;;  %s4118_s1 = inlined_call_operand.vmem [shape: f32[2,1,286], index: 1, kind: input, shape index: {}]   ;;  %s4119_s2 = inlined_call_operand.vmem [shape: f32[2,9,49], index: 2, kind: input, shape index: {}]   ;;  %s4120_s3 = inlined_call_operand.vmem [shape: f32[1,9], index: 3, kind: input, shape index: {}]   ;;  %s4121_s4 = inlined_call_operand.<no memory space> [shape: f32[1,1], index: 4, kind: input, shape index: {}]   ;;  %s4122_s5 = inlined_call_operand.vmem [shape: f32[9,1,1], index: 5, kind: input, shape index: {}]   ;;  %s4123_s7 = inlined_call_operand.vmem [shape: f32[9,1,1], index: 7, kind: input, shape index: {}]   ;;  %s4124_s9 = inlined_call_operand.vmem [shape: f32[9,1,1], index: 9, kind: input, shape index: {}]   ;;  %s4125_s11 = inlined_call_operand.vmem [shape: f32[4,1], index: 11, kind: input, shape index: {}]   ;;  %s4126_s12 = inlined_call_operand.vmem [shape: f32[4,1], index: 12, kind: input, shape index: {}]   ;;  %s4127_s13 = inlined_call_operand.vmem [shape: f32[1,286], index: 13, kind: input, shape index: {}]   ;;  %s4128_s15 = inlined_call_operand.vmem [shape: f32[2,4,286], index: 15, kind: output, shape index: {}]   ;;  %s4129_s6 = inlined_call_operand.<no memory space> [shape: f32[1,1], index: 6, kind: input, shape index: {}]   ;;  %s4130_s8 = inlined_call_operand.<no memory space> [shape: f32[1,1], index: 8, kind: input, shape index: {}]   ;;  %s4131_s10 = inlined_call_operand.<no memory space> [shape: f32[1,1], index: 10, kind: input, shape index: {}]   ;;  %s4132_s14 = inlined_call_operand.<no memory space> [shape: f32[1,1], index: 14, kind: input, shape index: {}]  }
   0x1   :  { %v20_v0 = vstv %s4121_s4  ;;  %v22_v1 = vstv %s4129_s6  ;;  %v24_v2 = vstv %s4130_s8  ;;  %v26_v3 = vstv %s4131_s10  ;;  %s3789_s4 = smov 0  }
   0x2   :  { %21 = vst [vmem:[#allocation3] sm:$0x1] %v20_v0  ;;  %23 = vst [vmem:[#allocation4] sm:$0x1] %v22_v1  ;;  %v28_v4 = vstv %s4132_s14 }
   0x3   :  { %25 = vst [vmem:[#allocation5] sm:$0x1] %v24_v2  ;;  %27 = vst [vmem:[#allocation6] sm:$0x1] %v26_v3 }
   0x4   :  { %29 = vst [vmem:[#allocation7] sm:$0x1] %v28_v4 }
   0x5 LB: > { %s3305_s6 = sadd.s32 4294967295, %s3673_s4   ;;  %p3309_p0 = scmp.ge.s32.totalorder %s3673_s4, 1  ;;  %s3673_s4 = sphi %s3789_s4, %s35_s4  }
   0x6   : > { %p466_p1 = scmp.lt.s32.totalorder %s3673_s4, 3 }
   0x8   : > { %p467_p2 = pnand %p3309_p0, %p466_p1 }
   0x9   : > { %p523_p3 = scmp.lt.s32.totalorder (!%p467_p2), %s3305_s6, 1  ;;  %v3675_v5 = vmov (!%p467_p2), 0.0|0.0   ;;  %v3676_v6 = vmov (!%p467_p2), 0.0   ;;  %vm3677_vm0 = vmmov (!%p467_p2), 0   ;;  %v3678_v7 = vmov (!%p467_p2), 0   ;;  %s3680_s16 = smov (!%p467_p2), 114  }
   0xa   : > { %470 = sbr.rel (%p467_p2) target bundleno = 2303 (0x8ff), region = 80  ;;  %3620 = vmatprep.subr.bf16.mxu0 (!%p467_p2), %v3675_v5  ;;  %3475 = vmatprep.subr.mxu1 (!%p467_p2), %v3676_v6  ;;  %v550_v8 = vld [vmem:[#allocation3] sm:$0x1] (!%p467_p2)  ;;  %vm564_vm1 = vcmask (!%p467_p2), 1040384   ;;  %vm3679_vm2 = vmmov (!%p467_p2), 1   ;;  %vm560_vm4 = vcmask (!%p467_p2), 72704   ;;  %v556_v13 = vlaneseq (!%p467_p2) }
   0xb   : > { %3472 = vmatprep.mubr.msk.f32.mxu0 (!%p467_p2), %vm3677_vm0, %v3676_v6  ;;  %3653 = vset.pattern.permute.xlu0 (!%p467_p2), %v3678_v7  ;;  %vm3622_vm3 = vmpackc.low (!%p467_p2), %vm564_vm1, %vm3679_vm2  ;;  %v547_v12 = vld [vmem:[%s4120_s3] sm:$0x1] (!%p467_p2)  ;;  %s3681_s17 = smov (!%p467_p2), 121   ;;  %vm543_vm5 = vcmask (!%p467_p2), 65536   ;;  %s3682_s18 = smov (!%p467_p2), 107   ;;  %vm663_vm6 = vcmask (!%p467_p2), 49152  }
   0xc   : > { %553 = vperm.xlu0 (!%p467_p2), %3653, %v550_v8   ;;  %3477 = vmatprep.mubr.msk.f32.mxu1 (!%p467_p2), %vm3677_vm0, %v3676_v6  ;;  %v3815_v14 = vshrl.u32 (!%p467_p2), %v556_v13, 7  ;;  %544 = vst.msk [vmem:[#allocation2] sm:$0x1] (!%p467_p2), %vm543_vm5, %v3676_v6  ;;  %545 = vst.msk [vmem:[#allocation2 + $0x1] sm:$0x1] (!%p467_p2), %vm543_vm5, %v3676_v6  ;;  %s3683_s19 = smov (!%p467_p2), 100  }
   0xd   : > { %3654 = vset.pattern.permute.xlu1 (!%p467_p2), %v3678_v7  ;;  %546 = vst.msk [vmem:[#allocation2 + $0x2] sm:$0x1] (!%p467_p2), %vm543_vm5, %v3676_v6  ;;  %s3684_s20 = smov (!%p467_p2), 93   ;;  %s3685_s21 = smov (!%p467_p2), 86   ;;  %vm667_vm7 = vcmask (!%p467_p2), 32800   ;;  %vm681_vm8 = vcmask (!%p467_p2), 7168  }
   0xe   : > { %v3818_v15 = vsub.s32 (!%p467_p2), 0, %v3815_v14  ;;  %s3686_s22 = smov (!%p467_p2), 127   ;;  %s3687_s23 = smov (!%p467_p2), 126   ;;  %v3316_v37 = vld [vmem:[%s4122_s5 + $0x1] sm:$0x1] (!%p467_p2)  ;;  %vm3224_vm9 = vcmask (!%p467_p2), 240640  }
   0xf   : > { %s3688_s24 = smov (!%p467_p2), 125   ;;  %s3689_s25 = smov (!%p467_p2), 124   ;;  %v671_v39 = vld [vmem:[%s4122_s5] sm:$0x1] (!%p467_p2)  ;;  %v3321_v41 = vld [vmem:[%s4122_s5 + $0x2] sm:$0x1] (!%p467_p2) }
  0x10   : > { %s3690_s26 = smov (!%p467_p2), 123   ;;  %s3691_s27 = smov (!%p467_p2), 122   ;;  %v3324_v42 = vld [vmem:[%s4122_s5 + $0x3] sm:$0x1] (!%p467_p2)  ;;  %v3327_v44 = vld [vmem:[%s4122_s5 + $0x4] sm:$0x1] (!%p467_p2) }
  0x11   : > { %s4134_s6 = smov (!%p523_p3, %s3305_s6), 1  ;;  %v3330_v46 = vld [vmem:[%s4122_s5 + $0x5] sm:$0x1]  ;;  %v3333_v48 = vld [vmem:[%s4122_s5 + $0x6] sm:$0x1] }
  0x12   : > { %s3406_s8 = sshll.u32 %s4134_s6, 4  ;;  %v3336_v50 = vld [vmem:[%s4122_s5 + $0x7] sm:$0x1]  ;;  %v3339_v52 = vld [vmem:[%s4122_s5 + $0x8] sm:$0x1] }
  0x13   : > { %s536_s28 = scalar_lea.vmem %s4119_s2, %s3406_s8  ;;  %s3692_s8 = smov 120  }
  0x14   : > { %v548_v9 = vld [vmem:[%s536_s28] sm:$0xff]  ;;  %v549_v10 = vld [vmem:[%s536_s28 + $0x8] sm:$0x1] }
  0x15   : > { %v3621_v11 = vpack.c.bf16 %v549_v10, %v548_v9 }
  0x17   : > { %3623 = vmatpush3.bf16.msk.msra.mxu0 %vm3622_vm3, %v3621_v11 }
  0x18   : > { %3485 = vmatprep.subr.mxu0 %v3676_v6 }
  0x1a   : > { %3473 = vmatmul.mubr.msk.f32.vlgmr.msra.gmra.mrb[0].mxu0 %vm560_vm4, %v547_v12 }
  0x1b   : > { %3487 = vmatprep.mubr.msk.f32.mxu0 %vm3677_vm0, %v3676_v6 }
  0x8b   : > { %v554_v16 = vpop.permute.xlu0 %553 }
  0x8c   : > { %v559_v17 = vrot.slane %v554_v16, %v3818_v15  ;;  %v669_v16 = vld [vmem:[#allocation4] sm:$0x1] }
  0xed   : > { %v634_v18 = vpop.f32.mrb[0].mxu0 }
  0xee   : > { %v635_v19 = vadd.f32 %v634_v18, %v559_v17  ;;  %v3474_v20 = vpop.f32.mrb[1].mxu0 }
  0xef   : > { %v3907_v20 = vld [vmem:[#allocation7] sm:$0x1] }
  0xf0   : > { %643 = vrot.lane.b32.xlu1 %v635_v19, %s3680_s16  ;;  %639 = vrot.lane.b32.xlu0 %v635_v19, %s3681_s17 }
  0xf4   : > { %647 = vrot.lane.b32.xlu1 %v635_v19, %s3682_s18  ;;  %651 = vrot.lane.b32.xlu0 %v635_v19, %s3683_s19 }
  0xf8   : > { %655 = vrot.lane.b32.xlu1 %v635_v19, %s3684_s20  ;;  %659 = vrot.lane.b32.xlu0 %v635_v19, %s3685_s21  ;;  %s3693_s20 = smov 4  }
 0x162   : > { %v644_v21 = vpop.permute.xlu1 %643  ;;  %v640_v22 = vpop.permute.xlu0 %639 }
 0x163   : > { %v642_v23 = vmax.f32 %v635_v19, %v640_v22 }
 0x165   : > { %v646_v24 = vmax.f32 %v642_v23, %v644_v21 }
 0x166   : > { %v648_v25 = vpop.permute.xlu1 %647  ;;  %v652_v26 = vpop.permute.xlu0 %651 }
 0x167   : > { %v650_v27 = vmax.f32 %v646_v24, %v648_v25  ;;  %v1403_v25 = vld [vmem:[%s4123_s7] sm:$0x1] }
 0x169   : > { %v654_v28 = vmax.f32 %v650_v27, %v652_v26 }
 0x16a   : > { %v656_v29 = vpop.permute.xlu1 %655  ;;  %v660_v31 = vpop.permute.xlu0 %659 }
 0x16b   : > { %v658_v30 = vmax.f32 %v654_v28, %v656_v29  ;;  %v3342_v28 = vld [vmem:[%s4123_s7 + $0x1] sm:$0x1] }
 0x16d   : > { %v662_v32 = vmax.f32 %v658_v30, %v660_v31  ;;  %v3347_v31 = vld [vmem:[%s4123_s7 + $0x2] sm:$0x1] }
 0x16f   : > { %v664_v33 = vsel %vm663_vm6, %v662_v32, -inf  ;;  %v3350_v32 = vld [vmem:[%s4123_s7 + $0x3] sm:$0x1] }
 0x170   : > { %665 = vmax.xlane.f32.xlu1 %v664_v33 }
 0x1fd   : > { %v666_v34 = vpop.xlane.xlu1 %665 }
 0x1fe   : > { %668 = vst.msk [vmem:[#allocation2] sm:$0x1] %vm667_vm7, %v666_v34  ;;  %v3353_v34 = vld [vmem:[%s4123_s7 + $0x4] sm:$0x1] }
 0x205   : > { %v670_v35 = vld [vmem:[#allocation2] sm:$0x1] }
 0x206   : > { %v678_v36 = vrot.slane %v670_v35, %v3818_v15 }
 0x208   : > { %679 = vrot.lane.b32.xlu0 %v678_v36, %s3686_s22 }
 0x20c   : > { %834 = vrot.lane.b32.xlu0 %v678_v36, %s3687_s23 }
 0x210   : > { %914 = vrot.lane.b32.xlu0 %v678_v36, %s3688_s24 }
 0x214   : > { %994 = vrot.lane.b32.xlu0 %v678_v36, %s3689_s25 }
 0x218   : > { %1074 = vrot.lane.b32.xlu0 %v678_v36, %s3690_s26 }
 0x21c   : > { %1154 = vrot.lane.b32.xlu0 %v678_v36, %s3691_s27 }
 0x220   : > { %1234 = vrot.lane.b32.xlu0 %v678_v36, %s3681_s17 }
 0x224   : > { %1314 = vrot.lane.b32.xlu0 %v678_v36, %s3692_s8 }
 0x27a   : > { %v680_v38 = vpop.permute.xlu0 %679 }
 0x27b   : > { %3476 = vmatpush3.msk.msra.mxu1 %vm564_vm1, %v680_v38  ;;  %v3359_v38 = vld [vmem:[%s4123_s7 + $0x6] sm:$0x1] }
 0x27c   : > { %3480 = vmatprep.subr.mxu1 %v3676_v6  ;;  %3478 = vmatmul.mubr.msk.f32.vlgmr.msra.gmra.mrb[0].mxu1 %vm681_vm8, %v3316_v37  ;;  %v3356_v37 = vld [vmem:[%s4123_s7 + $0x5] sm:$0x1] }
 0x27d   : > { %3481 = vmatpush3.msk.msra.mxu1 %vm564_vm1, %v670_v35  ;;  %3482 = vmatprep.mubr.msk.f32.mxu1 %vm3677_vm0, %v3676_v6 }
 0x27e   : > { %v835_v40 = vpop.permute.xlu0 %834  ;;  %3490 = vmatprep.subr.mxu1 %v3676_v6 }
 0x27f   : > { %3486 = vmatpush3.msk.msra.mxu0 %vm564_vm1, %v835_v40 }
 0x280   : > { %3483 = vmatmul.mubr.msk.f32.vlgmr.msra.gmra.mrb[2].mxu1 %vm681_vm8, %v671_v39  ;;  %3495 = vmatprep.subr.mxu0 %v3676_v6 }
 0x281   : > { %3488 = vmatmul.mubr.msk.f32.vlgmr.msra.gmra.mrb[2].mxu0 %vm681_vm8, %v3321_v41  ;;  %3492 = vmatprep.mubr.msk.f32.mxu1 %vm3677_vm0, %v3676_v6  ;;  %v3362_v41 = vld [vmem:[%s4123_s7 + $0x7] sm:$0x1] }
 0x282   : > { %v915_v43 = vpop.permute.xlu0 %914  ;;  %3497 = vmatprep.mubr.msk.f32.mxu0 %vm3677_vm0, %v3676_v6 }
 0x283   : > { %3491 = vmatpush3.msk.msra.mxu1 %vm564_vm1, %v915_v43 }
 0x284   : > { %3493 = vmatmul.mubr.msk.f32.vlgmr.msra.gmra.mrb[4].mxu1 %vm681_vm8, %v3324_v42  ;;  %3500 = vmatprep.subr.mxu1 %v3676_v6  ;;  %v3365_v42 = vld [vmem:[%s4123_s7 + $0x8] sm:$0x1] }
 0x285   : > { %3502 = vmatprep.mubr.msk.f32.mxu1 %vm3677_vm0, %v3676_v6 }
 0x286   : > { %v995_v45 = vpop.permute.xlu0 %994 }
 0x287   : > { %3496 = vmatpush3.msk.msra.mxu0 %vm564_vm1, %v995_v45 }
 0x288   : > { %3498 = vmatmul.mubr.msk.f32.vlgmr.msra.gmra.mrb[4].mxu0 %vm681_vm8, %v3327_v44  ;;  %3505 = vmatprep.subr.mxu0 %v3676_v6 }
 0x289   : > { %3507 = vmatprep.mubr.msk.f32.mxu0 %vm3677_vm0, %v3676_v6 }
 0x28a   : > { %v1075_v47 = vpop.permute.xlu0 %1074 }
 0x28b   : > { %3501 = vmatpush3.msk.msra.mxu1 %vm564_vm1, %v1075_v47 }
 0x28c   : > { %3503 = vmatmul.mubr.msk.f32.vlgmr.msra.gmra.mrb[6].mxu1 %vm681_vm8, %v3330_v46  ;;  %3510 = vmatprep.subr.mxu1 %v3676_v6 }
 0x28d   : > { %3512 = vmatprep.mubr.msk.f32.mxu1 %vm3677_vm0, %v3676_v6 }
 0x28e   : > { %v1155_v49 = vpop.permute.xlu0 %1154 }
 0x28f   : > { %3506 = vmatpush3.msk.msra.mxu0 %vm564_vm1, %v1155_v49 }
 0x290   : > { %3508 = vmatmul.mubr.msk.f32.vlgmr.msra.gmra.mrb[6].mxu0 %vm681_vm8, %v3333_v48  ;;  %3515 = vmatprep.subr.mxu0 %v3676_v6 }
 0x291   : > { %3517 = vmatprep.mubr.msk.f32.mxu0 %vm3677_vm0, %v3676_v6 }
 0x292   : > { %v1235_v51 = vpop.permute.xlu0 %1234 }
 0x293   : > { %3511 = vmatpush3.msk.msra.mxu1 %vm564_vm1, %v1235_v51 }
 0x294   : > { %3513 = vmatmul.mubr.msk.f32.vlgmr.msra.gmra.mrb[8].mxu1 %vm681_vm8, %v3336_v50  ;;  %3520 = vmatprep.subr.mxu1 %v3676_v6 }
 0x295   : > { %3522 = vmatprep.mubr.msk.f32.mxu1 %vm3677_vm0, %v3676_v6 }
 0x296   : > { %v1315_v53 = vpop.permute.xlu0 %1314 }
 0x297   : > { %3516 = vmatpush3.msk.msra.mxu0 %vm564_vm1, %v1315_v53 }
 0x298   : > { %3518 = vmatmul.mubr.msk.f32.vlgmr.msra.gmra.mrb[8].mxu0 %vm681_vm8, %v3339_v52  ;;  %3525 = vmatprep.subr.mxu0 %v3676_v6 }
 0x299   : > { %3527 = vmatprep.mubr.msk.f32.mxu0 %vm3677_vm0, %v3676_v6 }
 0x34f   : > { %v753_v54 = vpop.f32.mrb[0].mxu1 }
 0x350   : > { %v3479_v55 = vpop.f32.mrb[1].mxu1 }
 0x353   : > { %v828_v56 = vpop.f32.mrb[2].mxu1 }
 0x354   : > { %v829_v57 = vadd.f32 %v828_v56, %v753_v54  ;;  %v907_v58 = vpop.f32.mrb[2].mxu0  ;;  %v3484_v59 = vpop.f32.mrb[3].mxu1 }
 0x355   : > { %v3489_v60 = vpop.f32.mrb[3].mxu0 }
 0x356   : > { %v911_v61 = vadd.f32 %v907_v58, %v829_v57 }
 0x357   : > { %v987_v62 = vpop.f32.mrb[4].mxu1 }
 0x358   : > { %v991_v63 = vadd.f32 %v987_v62, %v911_v61  ;;  %v3494_v0 = vpop.f32.mrb[5].mxu1 }
 0x35b   : > { %v1067_v1 = vpop.f32.mrb[4].mxu0 }
 0x35c   : > { %v1071_v2 = vadd.f32 %v1067_v1, %v991_v63  ;;  %v3499_v3 = vpop.f32.mrb[5].mxu0 }
 0x35f   : > { %v1147_v4 = vpop.f32.mrb[6].mxu1 }
 0x360   : > { %v1151_v5 = vadd.f32 %v1147_v4, %v1071_v2  ;;  %v3504_v7 = vpop.f32.mrb[7].mxu1 }
 0x363   : > { %v1227_v8 = vpop.f32.mrb[6].mxu0 }
 0x364   : > { %v1231_v9 = vadd.f32 %v1227_v8, %v1151_v5  ;;  %v3509_v10 = vpop.f32.mrb[7].mxu0  ;;  %v1401_v5 = vld [vmem:[#allocation5] sm:$0x1] }
 0x367   : > { %v1307_v11 = vpop.f32.mrb[8].mxu1 }
 0x368   : > { %v1311_v12 = vadd.f32 %v1307_v11, %v1231_v9  ;;  %v3514_v13 = vpop.f32.mrb[9].mxu1 }
 0x36b   : > { %v1387_v17 = vpop.f32.mrb[8].mxu0 }
 0x36c   : > { %v1391_v18 = vadd.f32 %v1387_v17, %v1311_v12  ;;  %v3519_v19 = vpop.f32.mrb[9].mxu0  ;;  %v2134_v12 = vld [vmem:[%s4124_s9] sm:$0x1]  ;;  %v3368_v17 = vld [vmem:[%s4124_s9 + $0x1] sm:$0x1] }
 0x36e   : > { %v1392_v21 = vadd.f32 %v1391_v18, %v669_v16 }
 0x370   : > { %v1393_v22 = vmul.f32 %v1392_v21, %v3907_v20  ;;  %v3373_v21 = vld [vmem:[%s4124_s9 + $0x2] sm:$0x1] }
 0x372   : > { %v1394_v23 = vmax.f32 %v1393_v22, 0.0  ;;  %v3376_v22 = vld [vmem:[%s4124_s9 + $0x3] sm:$0x1] }
 0x374   : > { %1396 = vrot.lane.b32.xlu0 %v1394_v23, %s3693_s20 }
 0x3e6   : > { %v1397_v24 = vpop.permute.xlu0 %1396 }
 0x3e7   : > { %1400 = vst.msk [vmem:[#allocation2 + $0x1] sm:$0x1] %vm667_vm7, %v1397_v24 }
 0x3ee   : > { %v1402_v26 = vld [vmem:[#allocation2 + $0x1] sm:$0x1] }
 0x3ef   : > { %v1410_v27 = vrot.slane %v1402_v26, %v3818_v15  ;;  %3526 = vmatpush3.msk.msra.mxu0 %vm564_vm1, %v1402_v26  ;;  %v3382_v26 = vld [vmem:[%s4124_s9 + $0x5] sm:$0x1] }
 0x3f0   : > { %3528 = vmatmul.mubr.msk.f32.vlgmr.msra.gmra.mrb[10].mxu0 %vm681_vm8, %v1403_v25  ;;  %3535 = vmatprep.subr.mxu0 %v3676_v6  ;;  %v3379_v25 = vld [vmem:[%s4124_s9 + $0x4] sm:$0x1] }
 0x3f1   : > { %1565 = vrot.lane.b32.xlu0 %v1410_v27, %s3687_s23  ;;  %1411 = vrot.lane.b32.xlu1 %v1410_v27, %s3686_s22 }
 0x3f2   : > { %3537 = vmatprep.mubr.msk.f32.mxu0 %vm3677_vm0, %v3676_v6 }
 0x3f5   : > { %1645 = vrot.lane.b32.xlu0 %v1410_v27, %s3688_s24  ;;  %1885 = vrot.lane.b32.xlu1 %v1410_v27, %s3691_s27 }
 0x3f9   : > { %1725 = vrot.lane.b32.xlu0 %v1410_v27, %s3689_s25  ;;  %2045 = vrot.lane.b32.xlu1 %v1410_v27, %s3692_s8 }
 0x3fd   : > { %1805 = vrot.lane.b32.xlu0 %v1410_v27, %s3690_s26 }
 0x401   : > { %1965 = vrot.lane.b32.xlu0 %v1410_v27, %s3681_s17 }
 0x463   : > { %v1566_v29 = vpop.permute.xlu0 %1565  ;;  %v1412_v30 = vpop.permute.xlu1 %1411 }
 0x464   : > { %3521 = vmatpush3.msk.msra.mxu1 %vm564_vm1, %v1412_v30  ;;  %v3388_v30 = vld [vmem:[%s4124_s9 + $0x7] sm:$0x1] }
 0x465   : > { %3523 = vmatmul.mubr.msk.f32.vlgmr.msra.gmra.mrb[10].mxu1 %vm681_vm8, %v3342_v28  ;;  %3530 = vmatprep.subr.mxu1 %v3676_v6 }
 0x466   : > { %3531 = vmatpush3.msk.msra.mxu1 %vm564_vm1, %v1566_v29  ;;  %3532 = vmatprep.mubr.msk.f32.mxu1 %vm3677_vm0, %v3676_v6  ;;  %v3385_v29 = vld [vmem:[%s4124_s9 + $0x6] sm:$0x1] }
 0x467   : > { %v1646_v33 = vpop.permute.xlu0 %1645  ;;  %3540 = vmatprep.subr.mxu1 %v3676_v6  ;;  %v1886_v35 = vpop.permute.xlu1 %1885 }
 0x468   : > { %3536 = vmatpush3.msk.msra.mxu0 %vm564_vm1, %v1646_v33  ;;  %v3391_v33 = vld [vmem:[%s4124_s9 + $0x8] sm:$0x1] }
 0x469   : > { %3533 = vmatmul.mubr.msk.f32.vlgmr.msra.gmra.mrb[12].mxu1 %vm681_vm8, %v3347_v31  ;;  %3538 = vmatmul.mubr.msk.f32.vlgmr.msra.gmra.mrb[12].mxu0 %vm681_vm8, %v3350_v32 }
 0x46a   : > { %3542 = vmatprep.mubr.msk.f32.mxu1 %vm3677_vm0, %v3676_v6  ;;  %3545 = vmatprep.subr.mxu0 %v3676_v6 }
 0x46b   : > { %v1726_v36 = vpop.permute.xlu0 %1725  ;;  %3547 = vmatprep.mubr.msk.f32.mxu0 %vm3677_vm0, %v3676_v6  ;;  %v2046_v40 = vpop.permute.xlu1 %2045 }
 0x46c   : > { %3541 = vmatpush3.msk.msra.mxu1 %vm564_vm1, %v1726_v36  ;;  %v2865_v36 = vsub.s32 1, %v3815_v14 }
 0x46d   : > { %3543 = vmatmul.mubr.msk.f32.vlgmr.msra.gmra.mrb[14].mxu1 %vm681_vm8, %v3353_v34  ;;  %3550 = vmatprep.subr.mxu1 %v3676_v6 }
 0x46e   : > { %3551 = vmatpush3.msk.msra.mxu1 %vm564_vm1, %v1886_v35  ;;  %3552 = vmatprep.mubr.msk.f32.mxu1 %vm3677_vm0, %v3676_v6 }
 0x46f   : > { %v1806_v39 = vpop.permute.xlu0 %1805  ;;  %3560 = vmatprep.subr.mxu1 %v3676_v6 }
 0x470   : > { %3546 = vmatpush3.msk.msra.mxu0 %vm564_vm1, %v1806_v39 }
 0x471   : > { %3548 = vmatmul.mubr.msk.f32.vlgmr.msra.gmra.mrb[14].mxu0 %vm681_vm8, %v3356_v37  ;;  %3553 = vmatmul.mubr.msk.f32.vlgmr.msra.gmra.mrb[16].mxu1 %vm681_vm8, %v3359_v38  ;;  %v2856_v37 = vld [vmem:[%s4127_s13] sm:$0x7]  ;;  %v2869_v38 = vsub.s32 2, %v3815_v14 }
 0x472   : > { %3561 = vmatpush3.msk.msra.mxu1 %vm564_vm1, %v2046_v40  ;;  %3555 = vmatprep.subr.mxu0 %v3676_v6  ;;  %v2866_v39 = vrot.slane %v2856_v37, %v2865_v36  ;;  %v2862_v40 = vrot.slane %v2856_v37, %v3818_v15 }
 0x473   : > { %v1966_v43 = vpop.permute.xlu0 %1965  ;;  %3557 = vmatprep.mubr.msk.f32.mxu0 %vm3677_vm0, %v3676_v6  ;;  %3562 = vmatprep.mubr.msk.f32.mxu1 %vm3677_vm0, %v3676_v6 }
 0x474   : > { %3556 = vmatpush3.msk.msra.mxu0 %vm564_vm1, %v1966_v43  ;;  %3570 = vmatprep.subr.mxu1 %v3676_v6 }
 0x475   : > { %3558 = vmatmul.mubr.msk.f32.vlgmr.msra.gmra.mrb[16].mxu0 %vm681_vm8, %v3362_v41  ;;  %3563 = vmatmul.mubr.msk.f32.vlgmr.msra.gmra.mrb[18].mxu1 %vm681_vm8, %v3365_v42  ;;  %v2870_v41 = vrot.slane %v2856_v37, %v2869_v38 }
 0x476   : > { %3565 = vmatprep.subr.mxu0 %v3676_v6  ;;  %3567 = vmatprep.mubr.msk.f32.mxu0 %vm3677_vm0, %v3676_v6 }
 0x477   : > { %3572 = vmatprep.mubr.msk.f32.mxu1 %vm3677_vm0, %v3676_v6 }
 0x4c3   : > { %v1559_v44 = vpop.f32.mrb[10].mxu0 }
 0x4c4   : > { %v3529_v45 = vpop.f32.mrb[11].mxu0 }
 0x538   : > { %v1484_v46 = vpop.f32.mrb[10].mxu1 }
 0x539   : > { %v3524_v47 = vpop.f32.mrb[11].mxu1  ;;  %v1560_v48 = vadd.f32 %v1559_v44, %v1484_v46 }
 0x53c   : > { %v1638_v49 = vpop.f32.mrb[12].mxu1  ;;  %v1718_v50 = vpop.f32.mrb[12].mxu0 }
 0x53d   : > { %v1642_v51 = vadd.f32 %v1638_v49, %v1560_v48  ;;  %v3534_v52 = vpop.f32.mrb[13].mxu1  ;;  %v3539_v53 = vpop.f32.mrb[13].mxu0 }
 0x53f   : > { %v1722_v54 = vadd.f32 %v1718_v50, %v1642_v51 }
 0x540   : > { %v1798_v55 = vpop.f32.mrb[14].mxu1 }
 0x541   : > { %v1802_v56 = vadd.f32 %v1798_v55, %v1722_v54  ;;  %v3544_v57 = vpop.f32.mrb[15].mxu1 }
 0x544   : > { %v1878_v58 = vpop.f32.mrb[14].mxu0  ;;  %v1958_v59 = vpop.f32.mrb[16].mxu1 }
 0x545   : > { %v1882_v60 = vadd.f32 %v1878_v58, %v1802_v56  ;;  %v3549_v61 = vpop.f32.mrb[15].mxu0  ;;  %v3554_v62 = vpop.f32.mrb[17].mxu1 }
 0x546   : > { %v2132_v62 = vld [vmem:[#allocation6] sm:$0x1] }
 0x547   : > { %v1962_v63 = vadd.f32 %v1958_v59, %v1882_v60 }
 0x548   : > { %v2038_v0 = vpop.f32.mrb[16].mxu0  ;;  %v2118_v1 = vpop.f32.mrb[18].mxu1 }
 0x549   : > { %v2042_v2 = vadd.f32 %v2038_v0, %v1962_v63  ;;  %v3559_v3 = vpop.f32.mrb[17].mxu0  ;;  %v3564_v4 = vpop.f32.mrb[19].mxu1 }
 0x54a   : > { %v3038_v4 = vld [vmem:[%s4126_s12] sm:$0xf] }
 0x54b   : > { %v2122_v7 = vadd.f32 %v2118_v1, %v2042_v2 }
 0x54d   : > { %v2123_v8 = vadd.f32 %v2122_v7, %v1401_v5 }
 0x54f   : > { %v2124_v9 = vmul.f32 %v2123_v8, %v3907_v20 }
 0x551   : > { %v2125_v10 = vmax.f32 %v2124_v9, 0.0 }
 0x553   : > { %2127 = vrot.lane.b32.xlu0 %v2125_v10, %s3693_s20 }
 0x5c5   : > { %v2128_v11 = vpop.permute.xlu0 %2127 }
 0x5c6   : > { %2131 = vst.msk [vmem:[#allocation2 + $0x2] sm:$0x1] %vm667_vm7, %v2128_v11 }
 0x5cd   : > { %v2133_v13 = vld [vmem:[#allocation2 + $0x2] sm:$0x1] }
 0x5ce   : > { %v2141_v16 = vrot.slane %v2133_v13, %v3818_v15  ;;  %3571 = vmatpush3.msk.msra.mxu1 %vm564_vm1, %v2133_v13  ;;  %v3037_v13 = vld [vmem:[%s4125_s11] sm:$0xf] }
 0x5cf   : > { %3573 = vmatmul.mubr.msk.f32.vlgmr.msra.gmra.mrb[20].mxu1 %vm681_vm8, %v2134_v12  ;;  %3580 = vmatprep.subr.mxu1 %v3676_v6 }
 0x5d0   : > { %2296 = vrot.lane.b32.xlu0 %v2141_v16, %s3687_s23  ;;  %2142 = vrot.lane.b32.xlu1 %v2141_v16, %s3686_s22  ;;  %s3625_s22 = smul.u32 3, %s4134_s6 }
 0x5d1   : > { %3582 = vmatprep.mubr.msk.f32.mxu1 %vm3677_vm0, %v3676_v6 }
 0x5d4   : > { %2456 = vrot.lane.b32.xlu0 %v2141_v16, %s3689_s25  ;;  %2376 = vrot.lane.b32.xlu1 %v2141_v16, %s3688_s24  ;;  %s531_s24 = scalar_lea.vmem %s4118_s1, %s3625_s22 }
 0x5d8   : > { %2616 = vrot.lane.b32.xlu0 %v2141_v16, %s3691_s27  ;;  %2536 = vrot.lane.b32.xlu1 %v2141_v16, %s3690_s26  ;;  %s3624_s27 = smul.u32 12, %s4134_s6 }
 0x5da   : > { %s527_s29 = scalar_lea.vmem %s4117_s0, %s3624_s27  ;;  %s541_s18 = scalar_lea.vmem %s4128_s15, %s3624_s27 }
 0x5dc   : > { %2776 = vrot.lane.b32.xlu0 %v2141_v16, %s3692_s8  ;;  %2696 = vrot.lane.b32.xlu1 %v2141_v16, %s3681_s17 }
 0x5e0   : > { %3041 = vperm.xlu1 %3654, %v3038_v4  }
 0x642   : > { %v2297_v18 = vpop.permute.xlu0 %2296  ;;  %v2143_v19 = vpop.permute.xlu1 %2142 }
 0x643   : > { %3566 = vmatpush3.msk.msra.mxu0 %vm564_vm1, %v2143_v19 }
 0x644   : > { %3568 = vmatmul.mubr.msk.f32.vlgmr.msra.gmra.mrb[18].mxu0 %vm681_vm8, %v3368_v17  ;;  %3575 = vmatprep.subr.mxu0 %v3676_v6 }
 0x645   : > { %3576 = vmatpush3.msk.msra.mxu0 %vm564_vm1, %v2297_v18  ;;  %3577 = vmatprep.mubr.msk.f32.mxu0 %vm3677_vm0, %v3676_v6 }
 0x646   : > { %v2457_v23 = vpop.permute.xlu0 %2456  ;;  %v2377_v24 = vpop.permute.xlu1 %2376  ;;  %3585 = vmatprep.subr.mxu0 %v3676_v6 }
 0x647   : > { %3581 = vmatpush3.msk.msra.mxu1 %vm564_vm1, %v2377_v24 }
 0x648   : > { %3578 = vmatmul.mubr.msk.f32.vlgmr.msra.gmra.mrb[20].mxu0 %vm681_vm8, %v3373_v21  ;;  %3583 = vmatmul.mubr.msk.f32.vlgmr.msra.gmra.mrb[22].mxu1 %vm681_vm8, %v3376_v22 }
 0x649   : > { %3586 = vmatpush3.msk.msra.mxu0 %vm564_vm1, %v2457_v23  ;;  %3590 = vmatprep.subr.mxu1 %v3676_v6 }
 0x64a   : > { %v2617_v27 = vpop.permute.xlu0 %2616  ;;  %v2537_v28 = vpop.permute.xlu1 %2536  ;;  %3587 = vmatprep.mubr.msk.f32.mxu0 %vm3677_vm0, %v3676_v6  ;;  %3595 = vmatprep.subr.mxu0 %v3676_v6 }
 0x64b   : > { %3591 = vmatpush3.msk.msra.mxu1 %vm564_vm1, %v2537_v28  ;;  %3592 = vmatprep.mubr.msk.f32.mxu1 %vm3677_vm0, %v3676_v6 }
 0x64c   : > { %3588 = vmatmul.mubr.msk.f32.vlgmr.msra.gmra.mrb[22].mxu0 %vm681_vm8, %v3379_v25  ;;  %3593 = vmatmul.mubr.msk.f32.vlgmr.msra.gmra.mrb[24].mxu1 %vm681_vm8, %v3382_v26 }
 0x64d   : > { %3596 = vmatpush3.msk.msra.mxu0 %vm564_vm1, %v2617_v27  ;;  %3600 = vmatprep.subr.mxu1 %v3676_v6 }
 0x64e   : > { %v2777_v31 = vpop.permute.xlu0 %2776  ;;  %v2697_v32 = vpop.permute.xlu1 %2696  ;;  %3597 = vmatprep.mubr.msk.f32.mxu0 %vm3677_vm0, %v3676_v6  ;;  %3605 = vmatprep.subr.mxu0 %v3676_v6 }
 0x64f   : > { %3601 = vmatpush3.msk.msra.mxu1 %vm564_vm1, %v2697_v32  ;;  %3602 = vmatprep.mubr.msk.f32.mxu1 %vm3677_vm0, %v3676_v6 }
 0x650   : > { %3598 = vmatmul.mubr.msk.f32.vlgmr.msra.gmra.mrb[24].mxu0 %vm681_vm8, %v3385_v29  ;;  %3603 = vmatmul.mubr.msk.f32.vlgmr.msra.gmra.mrb[26].mxu1 %vm681_vm8, %v3388_v30 }
 0x651   : > { %3606 = vmatpush3.msk.msra.mxu0 %vm564_vm1, %v2777_v31  ;;  %3607 = vmatprep.mubr.msk.f32.mxu0 %vm3677_vm0, %v3676_v6 }
 0x652   : > { %3610 = vmatprep.subr.mxu0 %v3676_v6  ;;  %2960 = vmatprep.mubr.f32.mxu1 %v3676_v6 }
 0x653   : > { %3394 = vmatprep.subr.msk.mxu1 %vm564_vm1, %v2866_v39 }
 0x654   : > { %3608 = vmatmul.mubr.msk.f32.vlgmr.msra.gmra.mrb[26].mxu0 %vm681_vm8, %v3391_v33  ;;  %3395 = vmatpush1.msk.msra.mxu1 %vm564_vm1, %v2862_v40 }
 0x655   : > { %3612 = vmatprep.mubr.msk.f32.mxu0 %vm3677_vm0, %v3676_v6  ;;  %3611 = vmatpush3.msk.msra.mxu0 %vm564_vm1, %v2870_v41 }
 0x656   : > { %3615 = vmatprep.subr.mxu0 %v3676_v6 }
 0x6a2   : > { %v2290_v34 = vpop.f32.mrb[20].mxu1 }
 0x6a3   : > { %v3574_v35 = vpop.f32.mrb[21].mxu1 }
 0x717   : > { %v2215_v42 = vpop.f32.mrb[18].mxu0 }
 0x718   : > { %v2291_v43 = vadd.f32 %v2290_v34, %v2215_v42  ;;  %v3569_v44 = vpop.f32.mrb[19].mxu0 }
 0x71b   : > { %v2369_v45 = vpop.f32.mrb[20].mxu0  ;;  %v2449_v46 = vpop.f32.mrb[22].mxu1 }
 0x71c   : > { %v2373_v47 = vadd.f32 %v2369_v45, %v2291_v43  ;;  %v3579_v48 = vpop.f32.mrb[21].mxu0  ;;  %v3584_v14 = vpop.f32.mrb[23].mxu1  ;;  %v3215_v43 = vld [vmem:[%s527_s29] sm:$0xff] }
 0x71e   : > { %v2453_v49 = vadd.f32 %v2449_v46, %v2373_v47 }
 0x71f   : > { %v2529_v50 = vpop.f32.mrb[22].mxu0  ;;  %v2609_v51 = vpop.f32.mrb[24].mxu1 }
 0x720   : > { %v2533_v52 = vadd.f32 %v2529_v50, %v2453_v49  ;;  %v3589_v53 = vpop.f32.mrb[23].mxu0  ;;  %v3594_v54 = vpop.f32.mrb[25].mxu1 }
 0x722   : > { %v2613_v55 = vadd.f32 %v2609_v51, %v2533_v52 }
 0x723   : > { %v2689_v56 = vpop.f32.mrb[24].mxu0  ;;  %v2769_v57 = vpop.f32.mrb[26].mxu1 }
 0x724   : > { %v2693_v58 = vadd.f32 %v2689_v56, %v2613_v55  ;;  %v3599_v59 = vpop.f32.mrb[25].mxu0  ;;  %v3604_v60 = vpop.f32.mrb[27].mxu1 }
 0x726   : > { %v2773_v61 = vadd.f32 %v2769_v57, %v2693_v58 }
 0x727   : > { %v2849_v63 = vpop.f32.mrb[26].mxu0 }
 0x728   : > { %v2853_v0 = vadd.f32 %v2849_v63, %v2773_v61  ;;  %v3609_v1 = vpop.f32.mrb[27].mxu0 }
 0x72a   : > { %v2854_v2 = vadd.f32 %v2853_v0, %v2132_v62 }
 0x72c   : > { %v2855_v3 = vmul.f32 %v2854_v2, %v3907_v20  ;;  %v2857_v20 = vld [vmem:[%s531_s24] sm:$0x7] }
 0x72d   : > { %v2883_v5 = vrot.slane %v2857_v20, %v2869_v38  ;;  %v2879_v7 = vrot.slane %v2857_v20, %v2865_v36  ;;  %v2875_v8 = vrot.slane %v2857_v20, %v3818_v15  ;;  %v3042_v15 = vpop.permute.xlu1 %3041  ;;  %v3216_v38 = vld [vmem:[%s527_s29 + $0x8] sm:$0xf] }
 0x72e   : > { %3396 = vmatmul.mubr.msk.f32.vlgmr.msra.gmra.mrb[28].mxu1 %vm681_vm8, %v2855_v3  ;;  %3613 = vmatmul.mubr.msk.f32.vlgmr.msra.gmra.mrb[28].mxu0 %vm681_vm8, %v2855_v3 }
 0x72f   : > { %3120 = vmatprep.mubr.f32.mxu1 %v3676_v6  ;;  %3617 = vmatprep.mubr.msk.f32.mxu0 %vm3677_vm0, %v3676_v6 }
 0x801   : > { %v2962_v9 = vpop.f32.mrb[28].mxu1  ;;  %v3033_v10 = vpop.f32.mrb[28].mxu0 }
 0x802   : > { %v3034_v11 = vadd.f32 %v3033_v10, %v2883_v5  ;;  %v2964_v12 = vpop.f32.mrb[29].mxu1  ;;  %v3614_v6 = vpop.f32.mrb[29].mxu0  ;;  %v2963_v17 = vadd.f32 %v2962_v9, %v2875_v8 }
 0x803   : > { %v2965_v16 = vadd.f32 %v2964_v12, %v2879_v7 }
 0x804   : > { %3616 = vmatpush3.msk.msra.mxu0 %vm564_vm1, %v3034_v11 }
 0x805   : > { %3399 = vmatprep.subr.msk.mxu1 %vm564_vm1, %v2965_v16  ;;  %3618 = vmatmul.mubr.msk.f32.vlgmr.msra.gmra.mrb[30].mxu0 %vm681_vm8, %v3037_v13 }
 0x806   : > { %3400 = vmatpush1.msk.msra.mxu1 %vm564_vm1, %v2963_v17 }
 0x807   : > { %3401 = vmatmul.mubr.msk.f32.vlgmr.msra.gmra.mrb[30].mxu1 %vm681_vm8, %v3037_v13 }
 0x8d8   : > { %v3193_v18 = vpop.f32.mrb[30].mxu0 }
 0x8d9   : > { %v3194_v19 = vadd.f32 %v3193_v18, %v3042_v15  ;;  %v3619_v21 = vpop.f32.mrb[31].mxu0 }
 0x8da   : > { %v3122_v22 = vpop.f32.mrb[30].mxu1 }
 0x8db   : > { %v3123_v23 = vadd.f32 %v3122_v22, %v3042_v15  ;;  %v3124_v24 = vpop.f32.mrb[31].mxu1  ;;  %v3199_v25 = vsub.f32 0.0, %v3194_v19 }
 0x8dc   : > { %v3125_v26 = vadd.f32 %v3124_v24, %v3042_v15 }
 0x8dd   : > { %v3197_v27 = vsub.f32 0.0, %v3123_v23  ;;  %v3204_v28 = vmul.f32 1.442695, %v3199_v25 }
 0x8de   : > { %v3198_v29 = vsub.f32 0.0, %v3125_v26 }
 0x8df   : > { %v3200_v30 = vmul.f32 1.442695, %v3197_v27  ;;  %3655 = vpow2.f32 %v3204_v28 }
 0x8e0   : > { %v3202_v31 = vmul.f32 1.442695, %v3198_v29 }
 0x8e1   : > { %3657 = vpow2.f32 %v3200_v30 }
 0x8e2   : > { %3659 = vpow2.f32 %v3202_v31 }
 0x8e9   : > { %v3656_v32 = vpop.eup %3655 }
 0x8ea   : > { %v3208_v33 = vadd.f32 1.0, %v3656_v32 }
 0x8eb   : > { %v3658_v34 = vpop.eup %3657 }
 0x8ec   : > { %v3660_v35 = vpop.eup %3659  ;;  %v3206_v36 = vadd.f32 1.0, %v3658_v34  ;;  %3661 = vrcp.f32 %v3208_v33 }
 0x8ed   : > { %v3207_v37 = vadd.f32 1.0, %v3660_v35 }
 0x8ee   : > { %3663 = vrcp.f32 %v3206_v36 }
 0x8ef   : > { %3665 = vrcp.f32 %v3207_v37 }
 0x8f6   : > { %v3662_v39 = vpop.eup %3661 }
 0x8f7   : > { %v3222_v40 = vmul.f32 %v3662_v39, %v3216_v38 }
 0x8f8   : > { %v3664_v41 = vpop.eup %3663 }
 0x8f9   : > { %v3666_v42 = vpop.eup %3665  ;;  %3225 = vst.msk [vmem:[%s541_s18 + $0x8] sm:$0xf] %vm3224_vm9, %v3222_v40 }
 0x8fa   : > { %v3219_v44 = vcombine.low %v3664_v41, %v3666_v42 }
 0x8fc   : > { %v3221_v45 = vmul.f32 %v3219_v44, %v3215_v43 }
 0x8fe   : > { %3223 = vst [vmem:[%s541_s18] sm:$0xff] %v3221_v45 }
 0x8ff PF: > { %s35_s4 = sadd.s32 1, %s3673_s4  }
 0x900   : > { %p32_p4 = scmp.ge.s32.totalorder %s35_s4, 4  }
 0x902   :  { %34 = sbr.rel (!%p32_p4) target bundleno = 5 (0x5), region = 142 }

// kernel: rfdb_forward_pallas.2
= control target key start
LH: loop header
LB: loop body
LE: loop exit
PB: predicated region body
PF: predicated region fallthrough
CT: control target
= control target key end

     0   :  { %s9409_s29 = smov 0   ;;  %s10394_s0 = inlined_call_operand.vmem [shape: f32[2,4,324], index: 0, kind: input, shape index: {}]   ;;  %s10395_s1 = inlined_call_operand.vmem [shape: f32[1,286], index: 1, kind: input, shape index: {}]   ;;  %s10396_s2 = inlined_call_operand.vmem [shape: f32[2,4], index: 2, kind: input, shape index: {}]   ;;  %s10397_s3 = inlined_call_operand.vmem [shape: f32[2,1], index: 3, kind: input, shape index: {}]   ;;  %s10398_s4 = inlined_call_operand.vmem [shape: f32[9,4,4], index: 4, kind: input, shape index: {}]   ;;  %s10399_s5 = inlined_call_operand.vmem [shape: f32[4,1], index: 5, kind: input, shape index: {}]   ;;  %s10400_s6 = inlined_call_operand.vmem [shape: f32[2,4], index: 6, kind: input, shape index: {}]   ;;  %s10401_s7 = inlined_call_operand.vmem [shape: f32[2,1], index: 7, kind: input, shape index: {}]   ;;  %s10402_s8 = inlined_call_operand.vmem [shape: f32[9,4,4], index: 8, kind: input, shape index: {}]   ;;  %s10403_s9 = inlined_call_operand.vmem [shape: f32[4,1], index: 9, kind: input, shape index: {}]   ;;  %s10404_s10 = inlined_call_operand.vmem [shape: f32[2,4], index: 10, kind: input, shape index: {}]   ;;  %s10405_s11 = inlined_call_operand.vmem [shape: f32[2,1], index: 11, kind: input, shape index: {}]   ;;  %s10406_s12 = inlined_call_operand.vmem [shape: f32[9,4,4], index: 12, kind: input, shape index: {}]   ;;  %s10407_s13 = inlined_call_operand.vmem [shape: f32[4,1], index: 13, kind: input, shape index: {}]   ;;  %s10408_s14 = inlined_call_operand.vmem [shape: f32[9,2,4], index: 14, kind: input, shape index: {}]   ;;  %s10409_s15 = inlined_call_operand.vmem [shape: f32[2,1], index: 15, kind: input, shape index: {}]   ;;  %s10410_s16 = inlined_call_operand.vmem [shape: f32[4,4,2], index: 16, kind: input, shape index: {}]   ;;  %s10411_s17 = inlined_call_operand.vmem [shape: f32[4,1], index: 17, kind: input, shape index: {}]   ;;  %s10412_s18 = inlined_call_operand.vmem [shape: f32[1,4], index: 18, kind: input, shape index: {}]   ;;  %s10413_s19 = inlined_call_operand.<no memory space> [shape: f32[1,1], index: 19, kind: input, shape index: {}]   ;;  %s10414_s22 = inlined_call_operand.vmem [shape: f32[2,4,286], index: 22, kind: output, shape index: {0}]   ;;  %s10415_s23 = inlined_call_operand.vmem [shape: f32[2,1,286], index: 23, kind: output, shape index: {1}]   ;;  %s10416_s24 = inlined_call_operand.vmem [shape: f32[2,1,286], index: 24, kind: output, shape index: {2}]   ;;  %s10417_s20 = inlined_call_operand.<no memory space> [shape: f32[1,1], index: 20, kind: input, shape index: {}]   ;;  %s10418_s21 = inlined_call_operand.<no memory space> [shape: f32[1,1], index: 21, kind: input, shape index: {}]  }
   0x1   :  { %10422 = sst [smem:[#allocation6_spill]] %s10394_s0  ;;  %v30_v0 = vstv %s10413_s19  ;;  %v32_v1 = vstv %s10417_s20  ;;  %v34_v2 = vstv %s10418_s21 }
   0x2   :  { %10423 = sst [smem:[#allocation7_spill]] %s10395_s1  ;;  %31 = vst [vmem:[#allocation3] sm:$0x1] %v30_v0  ;;  %33 = vst [vmem:[#allocation4] sm:$0x1] %v32_v1 }
   0x3   :  { %10424 = sst [smem:[#allocation8_spill]] %s10396_s2  ;;  %35 = vst [vmem:[#allocation5] sm:$0x1] %v34_v2 }
   0x4   :  { %10425 = sst [smem:[#allocation9_spill]] %s10397_s3 }
   0x5   :  { %10426 = sst [smem:[#allocation10_spill]] %s10398_s4 }
   0x6   :  { %10427 = sst [smem:[#allocation11_spill]] %s10399_s5 }
   0x7   :  { %10428 = sst [smem:[#allocation12_spill]] %s10400_s6 }
   0x8   :  { %10429 = sst [smem:[#allocation13_spill]] %s10401_s7 }
   0x9   :  { %10430 = sst [smem:[#allocation14_spill]] %s10402_s8 }
   0xa LB: > { %s8570_s19 = sadd.s32 4294967295, %s9260_s29   ;;  %p8574_p0 = scmp.ge.s32.totalorder %s9260_s29, 1  ;;  %s9260_s29 = sphi %s9409_s29, %s41_s29  }
   0xb   : > { %p673_p1 = scmp.lt.s32.totalorder %s9260_s29, 3 }
   0xd   : > { %p674_p2 = pnand %p8574_p0, %p673_p1 }
   0xe   : > { %p747_p3 = scmp.lt.s32.totalorder (!%p674_p2), %s8570_s19, 1  ;;  %v9262_v3 = vmov (!%p674_p2), 0.0   ;;  %vm9263_vm0 = vmmov (!%p674_p2), 0   ;;  %s10431_s7 = sld [smem:[#allocation6_spill]] (!%p674_p2)  ;;  %v9272_v15 = vmov (!%p674_p2), 0   ;;  %vm798_vm1 = vcmask (!%p674_p2), 1043456  }
   0xf   : > { %677 = sbr.rel (%p674_p2) target bundleno = 2714 (0xa9a), region = 108  ;;  %8929 = vmatprep.subr.mxu1 (!%p674_p2), %v9262_v3  ;;  %766 = vst [vmem:[#allocation2] sm:$0xff] (!%p674_p2), %v9262_v3  ;;  %769 = vst [vmem:[#allocation2 + $0xc] sm:$0xff] (!%p674_p2), %v9262_v3  ;;  %8931 = vmatprep.mubr.msk.f32.mxu1 (!%p674_p2), %vm9263_vm0, %v9262_v3  ;;  %s9264_s3 = smov (!%p674_p2), 109   ;;  %vm794_vm2 = vcmask (!%p674_p2), 31744   ;;  %vm791_vm3 = vcmask (!%p674_p2), 891904  }
  0x10   : > { %771 = vst [vmem:[#allocation2 + $0x18] sm:$0xff] (!%p674_p2), %v9262_v3  ;;  %869 = vmatprep.mubr.f32.mxu0 (!%p674_p2), %v9262_v3  ;;  %s9265_s25 = smov (!%p674_p2), 127   ;;  %s9266_s8 = smov (!%p674_p2), 126   ;;  %9247 = vset.pattern.permute.xlu0 (!%p674_p2), %v9272_v15  ;;  %vm989_vm4 = vcmask (!%p674_p2), 1039360   ;;  %vm1305_vm5 = vcmask (!%p674_p2), 1031168   ;;  %vm1474_vm6 = vcmask (!%p674_p2), 900096  }
  0x11   : > { %s9267_s4 = smov (!%p674_p2), 110   ;;  %s9268_s1 = smov (!%p674_p2), 108   ;;  %9248 = vset.pattern.permute.xlu1 (!%p674_p2), %v9272_v15  ;;  %vm1792_vm7 = vcmask (!%p674_p2), 883712   ;;  %vm1961_vm8 = vcmask (!%p674_p2), 752640   ;;  %vm2130_vm9 = vcmask (!%p674_p2), 744448   ;;  %vm10421_vm10 = vcmask (!%p674_p2), 736256  }
  0x12   : > { %s9269_s5 = smov (!%p674_p2), 92   ;;  %s9270_s26 = smov (!%p674_p2), 91   ;;  %vm767_vm12 = vcmask (!%p674_p2), 551936   ;;  %vm2495_vm15 = vcmask (!%p674_p2), 1043608  }
  0x13   : > { %s9271_s27 = smov (!%p674_p2), 90   ;;  %s10432_s2 = sld [smem:[#allocation11_spill]] (!%p674_p2)  ;;  %768 = vst.msk [vmem:[#allocation2 + $0x8] sm:$0xf] (!%p674_p2), %vm767_vm12, %v9262_v3  ;;  %770 = vst.msk [vmem:[#allocation2 + $0x14] sm:$0xf] (!%p674_p2), %vm767_vm12, %v9262_v3 }
  0x14   : > { %s10434_s6 = sld [smem:[#allocation10_spill]] (!%p674_p2)  ;;  %772 = vst.msk [vmem:[#allocation2 + $0x20] sm:$0xf] (!%p674_p2), %vm767_vm12, %v9262_v3  ;;  %s9273_s21 = smov (!%p674_p2), 19   ;;  %vm2490_vm12 = vcmask (!%p674_p2), 154624  }
  0x16   : > { %s10447_s19 = smov (!%p747_p3, %s8570_s19), 1 }
  0x17   : > { %s9224_s20 = smul.u32 12, %s10447_s19 }
  0x19   : > { %s9432_s30 = scalar_lea.vmem %s10431_s7, %s9224_s20  ;;  %v974_v14 = vld [vmem:[%s10432_s2] sm:$0xf]  ;;  %s10433_s7 = sld [smem:[#allocation8_spill]] }
  0x1a   : > { %v774_v4 = vld [vmem:[%s9432_s30 + $0x8] sm:$0xf]  ;;  %v9436_v5 = vld [vmem:[%s9432_s30] sm:$0xff]  ;;  %v8599_v36 = vld [vmem:[%s10434_s6 + $0xc] sm:$0xf]  ;;  %s10435_s2 = sld [smem:[#allocation7_spill]] }
  0x1b   : > { %789 = vrot.lane.b32.xlu0 %v774_v4, %s9264_s3  ;;  %785 = vrot.lane.b32.xlu1 %v9436_v5, %s9264_s3  ;;  %v9443_v6 = vcombine.high %v9436_v5, %v9436_v5  ;;  %v9450_v7 = vld [vmem:[%s9432_s30 + $0x8] sm:$0xf]  ;;  %v8582_v23 = vld [vmem:[%s10434_s6 + $0x4] sm:$0xf] }
  0x1c   : > { %v1293_v8 = vld [vmem:[%s9432_s30 + $0x8] sm:$0xf]  ;;  %v977_v28 = vld [vmem:[%s10434_s6] sm:$0xf]  ;;  %v8605_v40 = vld [vmem:[%s10434_s6 + $0x10] sm:$0xf] }
  0x1d   : > { %v1462_v9 = vld [vmem:[%s9432_s30 + $0x8] sm:$0xf]  ;;  %v8611_v44 = vld [vmem:[%s10434_s6 + $0x14] sm:$0xf]  ;;  %v8617_v47 = vld [vmem:[%s10434_s6 + $0x18] sm:$0xf] }
  0x1e   : > { %v1780_v10 = vld [vmem:[%s9432_s30 + $0x8] sm:$0xf]  ;;  %v8623_v50 = vld [vmem:[%s10434_s6 + $0x1c] sm:$0xf]  ;;  %v8629_v56 = vld [vmem:[%s10434_s6 + $0x20] sm:$0xf] }
  0x1f   : > { %985 = vrot.lane.b32.xlu1 %v9443_v6, %s9265_s25  ;;  %787 = vrot.lane.b32.xlu0 %v9443_v6, %s9264_s3  ;;  %v1949_v11 = vld [vmem:[%s9432_s30 + $0x8] sm:$0xf]  ;;  %v775_v16 = vld [vmem:[%s10433_s7] sm:$0x3] }
  0x20   : > { %v2118_v12 = vld [vmem:[%s9432_s30 + $0x8] sm:$0xf] }
  0x21   : > { %v2287_v13 = vld [vmem:[%s9432_s30 + $0x8] sm:$0xf]  ;;  %s10436_s30 = sld [smem:[#allocation12_spill]] }
  0x22   : > { %v8593_v32 = vld [vmem:[%s10434_s6 + $0x8] sm:$0xf] }
  0x23   : > { %983 = vrot.lane.b32.xlu1 %v9436_v5, %s9265_s25  ;;  %987 = vrot.lane.b32.xlu0 %v9450_v7, %s9265_s25 }
  0x27   : > { %1301 = vrot.lane.b32.xlu0 %v9443_v6, %s9266_s8  ;;  %1303 = vrot.lane.b32.xlu1 %v1293_v8, %s9266_s8 }
  0x2b   : > { %1299 = vrot.lane.b32.xlu0 %v9436_v5, %s9266_s8  ;;  %1470 = vrot.lane.b32.xlu1 %v9443_v6, %s9267_s4 }
  0x2f   : > { %1472 = vrot.lane.b32.xlu0 %v1462_v9, %s9267_s4  ;;  %1468 = vrot.lane.b32.xlu1 %v9436_v5, %s9267_s4 }
  0x33   : > { %1788 = vrot.lane.b32.xlu0 %v9443_v6, %s9268_s1  ;;  %1790 = vrot.lane.b32.xlu1 %v1780_v10, %s9268_s1 }
  0x37   : > { %1786 = vrot.lane.b32.xlu0 %v9436_v5, %s9268_s1  ;;  %1957 = vrot.lane.b32.xlu1 %v9443_v6, %s9269_s5 }
  0x3b   : > { %1959 = vrot.lane.b32.xlu0 %v1949_v11, %s9269_s5  ;;  %1955 = vrot.lane.b32.xlu1 %v9436_v5, %s9269_s5 }
  0x3f   : > { %2126 = vrot.lane.b32.xlu0 %v9443_v6, %s9270_s26  ;;  %2128 = vrot.lane.b32.xlu1 %v2118_v12, %s9270_s26 }
  0x43   : > { %2124 = vrot.lane.b32.xlu0 %v9436_v5, %s9270_s26  ;;  %2295 = vrot.lane.b32.xlu1 %v9443_v6, %s9271_s27 }
  0x47   : > { %2297 = vrot.lane.b32.xlu0 %v2287_v13, %s9271_s27  ;;  %2293 = vrot.lane.b32.xlu1 %v9436_v5, %s9271_s27 }
  0x4b   : > { %2457 = vperm.xlu0 %9247, %v974_v14  }
  0x8d   : > { %v9498_v17 = vpop.permute.xlu0 %789  ;;  %v786_v18 = vpop.permute.xlu1 %785 }
  0x8e   : > { %8930 = vmatpush3.msk.msra.mxu1 %vm798_vm1, %v9498_v17 }
  0x8f   : > { %8932 = vmatmul.mubr.msk.f32.vlgmr.msra.gmra.mrb[0].mxu1 %vm794_vm2, %v775_v16  ;;  %8934 = vmatprep.subr.mxu1 %v9262_v3 }
  0x90   : > { %8936 = vmatprep.mubr.msk.f32.mxu1 %vm9263_vm0, %v9262_v3 }
  0x91   : > { %v986_v19 = vpop.permute.xlu1 %985  ;;  %v788_v20 = vpop.permute.xlu0 %787 }
  0x92   : > { %v9508_v21 = vsel %vm791_vm3, %v788_v20, %v9498_v17  ;;  %v9511_v22 = vsel %vm791_vm3, %v786_v18, %v788_v20 }
  0x93   : > { %8577 = vmatprep.subr.msk.mxu0 %vm798_vm1, %v9508_v21 }
  0x94   : > { %8578 = vmatpush1.msk.msra.mxu0 %vm798_vm1, %v9511_v22 }
  0x95   : > { %v984_v24 = vpop.permute.xlu1 %983  ;;  %8579 = vmatmul.mubr.msk.f32.vlgmr.msra.gmra.mrb[0].mxu0 %vm794_vm2, %v775_v16  ;;  %v988_v25 = vpop.permute.xlu0 %987 }
  0x96   : > { %v990_v26 = vsel %vm989_vm4, %v984_v24, %v986_v19  ;;  %8935 = vmatpush3.msk.msra.mxu1 %vm798_vm1, %v988_v25  ;;  %v991_v27 = vsel %vm989_vm4, %v986_v19, %v988_v25  ;;  %1065 = vmatprep.mubr.f32.mxu0 %v9262_v3 }
  0x97   : > { %8583 = vmatprep.subr.msk.mxu0 %vm798_vm1, %v991_v27  ;;  %8937 = vmatmul.mubr.msk.f32.vlgmr.msra.gmra.mrb[2].mxu1 %vm794_vm2, %v8582_v23 }
  0x98   : > { %8584 = vmatpush1.msk.msra.mxu0 %vm798_vm1, %v990_v26  ;;  %8939 = vmatprep.subr.mxu1 %v9262_v3 }
  0x99   : > { %8585 = vmatmul.mubr.msk.f32.vlgmr.msra.gmra.mrb[2].mxu0 %vm794_vm2, %v8582_v23  ;;  %v1302_v29 = vpop.permute.xlu0 %1301  ;;  %8940 = vmatpush3.msk.msra.mxu1 %vm798_vm1, %v9450_v7  ;;  %v1304_v30 = vpop.permute.xlu1 %1303 }
  0x9a   : > { %8941 = vmatprep.mubr.msk.f32.mxu1 %vm9263_vm0, %v9262_v3  ;;  %8944 = vmatprep.subr.mxu1 %v9262_v3  ;;  %v1307_v31 = vsel %vm1305_vm5, %v1302_v29, %v1304_v30 }
  0x9b   : > { %8942 = vmatmul.mubr.msk.f32.vlgmr.msra.gmra.mrb[4].mxu1 %vm794_vm2, %v977_v28  ;;  %8588 = vmatprep.subr.msk.mxu0 %vm798_vm1, %v9443_v6 }
  0x9c   : > { %8945 = vmatpush3.msk.msra.mxu1 %vm798_vm1, %v1304_v30  ;;  %8946 = vmatprep.mubr.msk.f32.mxu1 %vm9263_vm0, %v9262_v3  ;;  %v947_v30 = vlaneseq }
  0x9d   : > { %v1300_v33 = vpop.permute.xlu0 %1299  ;;  %8589 = vmatpush1.msk.msra.mxu0 %vm798_vm1, %v9436_v5  ;;  %1215 = vmatprep.mubr.f32.mxu0 %v9262_v3  ;;  %v1471_v34 = vpop.permute.xlu1 %1470 }
  0x9e   : > { %8949 = vmatprep.subr.mxu1 %v9262_v3  ;;  %8594 = vmatprep.subr.msk.mxu0 %vm798_vm1, %v1307_v31  ;;  %v1306_v35 = vsel %vm1305_vm5, %v1300_v33, %v1302_v29 }
  0x9f   : > { %8947 = vmatmul.mubr.msk.f32.vlgmr.msra.gmra.mrb[6].mxu1 %vm794_vm2, %v8593_v32 }
  0xa0   : > { %8951 = vmatprep.mubr.msk.f32.mxu1 %vm9263_vm0, %v9262_v3 }
  0xa1   : > { %8590 = vmatmul.mubr.msk.f32.vlgmr.msra.gmra.mrb[2].mxu0 %vm794_vm2, %v977_v28  ;;  %v1473_v37 = vpop.permute.xlu0 %1472  ;;  %v1469_v38 = vpop.permute.xlu1 %1468 }
  0xa2   : > { %8950 = vmatpush3.msk.msra.mxu1 %vm798_vm1, %v1473_v37  ;;  %8595 = vmatpush1.msk.msra.mxu0 %vm798_vm1, %v1306_v35  ;;  %v1476_v39 = vsel %vm1474_vm6, %v1471_v34, %v1473_v37  ;;  %v1475_v43 = vsel %vm1474_vm6, %v1469_v38, %v1471_v34  ;;  %v9654_v34 = vshrl.u32 %v947_v30, 7  ;;  %v765_v37 = vld [vmem:[%s10435_s2] sm:$0x7] }
  0xa3   : > { %8954 = vmatprep.subr.mxu1 %v9262_v3  ;;  %8952 = vmatmul.mubr.msk.f32.vlgmr.msra.gmra.mrb[8].mxu1 %vm794_vm2, %v8599_v36 }
  0xa4   : > { %8955 = vmatpush3.msk.msra.mxu1 %vm798_vm1, %v9498_v17  ;;  %1381 = vmatprep.mubr.f32.mxu0 %v9262_v3  ;;  %v957_v35 = vsub.s32 2, %v9654_v34 }
  0xa5   : > { %v1789_v41 = vpop.permute.xlu0 %1788  ;;  %8600 = vmatprep.subr.msk.mxu0 %vm798_vm1, %v1476_v39  ;;  %v1791_v42 = vpop.permute.xlu1 %1790  ;;  %8956 = vmatprep.mubr.msk.f32.mxu1 %vm9263_vm0, %v9262_v3 }
  0xa6   : > { %8959 = vmatprep.subr.mxu1 %v9262_v3  ;;  %v1794_v53 = vsel %vm1792_vm7, %v1789_v41, %v1791_v42 }
  0xa7   : > { %8957 = vmatmul.mubr.msk.f32.vlgmr.msra.gmra.mrb[10].mxu1 %vm794_vm2, %v8605_v40 }
  0xa8   : > { %8960 = vmatpush3.msk.msra.mxu1 %vm798_vm1, %v1791_v42  ;;  %8961 = vmatprep.mubr.msk.f32.mxu1 %vm9263_vm0, %v9262_v3 }
  0xa9   : > { %8596 = vmatmul.mubr.msk.f32.vlgmr.msra.gmra.mrb[2].mxu0 %vm794_vm2, %v8593_v32  ;;  %v1787_v45 = vpop.permute.xlu0 %1786  ;;  %v1958_v46 = vpop.permute.xlu1 %1957  ;;  %8964 = vmatprep.subr.mxu1 %v9262_v3 }
  0xaa   : > { %8601 = vmatpush1.msk.msra.mxu0 %vm798_vm1, %v1475_v43  ;;  %1550 = vmatprep.mubr.f32.mxu0 %v9262_v3  ;;  %v1793_v55 = vsel %vm1792_vm7, %v1787_v45, %v1789_v41  ;;  %v9660_v41 = vrot.slane %v765_v37, %v957_v35 }
  0xab   : > { %8606 = vmatprep.subr.msk.mxu0 %vm798_vm1, %v9508_v21  ;;  %8962 = vmatmul.mubr.msk.f32.vlgmr.msra.gmra.mrb[12].mxu1 %vm794_vm2, %v8611_v44 }
  0xac   : > { %8966 = vmatprep.mubr.msk.f32.mxu1 %vm9263_vm0, %v9262_v3 }
  0xad   : > { %v1960_v48 = vpop.permute.xlu0 %1959  ;;  %v1956_v49 = vpop.permute.xlu1 %1955 }
  0xae   : > { %8965 = vmatpush3.msk.msra.mxu1 %vm798_vm1, %v1960_v48  ;;  %v1963_v57 = vsel %vm1961_vm8, %v1958_v46, %v1960_v48  ;;  %v1962_v59 = vsel %vm1961_vm8, %v1956_v49, %v1958_v46  ;;  %v953_v48 = vsub.s32 1, %v9654_v34 }
  0xaf   : > { %8967 = vmatmul.mubr.msk.f32.vlgmr.msra.gmra.mrb[14].mxu1 %vm794_vm2, %v8617_v47  ;;  %8969 = vmatprep.subr.mxu1 %v9262_v3 }
  0xb0   : > { %8971 = vmatprep.mubr.msk.f32.mxu1 %vm9263_vm0, %v9262_v3 }
  0xb1   : > { %8602 = vmatmul.mubr.msk.f32.vlgmr.msra.gmra.mrb[2].mxu0 %vm794_vm2, %v8599_v36  ;;  %v2127_v51 = vpop.permute.xlu0 %2126  ;;  %v2129_v52 = vpop.permute.xlu1 %2128 }
  0xb2   : > { %8607 = vmatpush1.msk.msra.mxu0 %vm798_vm1, %v9511_v22  ;;  %8970 = vmatpush3.msk.msra.mxu1 %vm798_vm1, %v2129_v52  ;;  %v2132_v60 = vsel %vm2130_vm9, %v2127_v51, %v2129_v52  ;;  %v9676_v52 = vrot.slane %v765_v37, %v953_v48 }
  0xb3   : > { %8972 = vmatmul.mubr.msk.f32.vlgmr.msra.gmra.mrb[16].mxu1 %vm794_vm2, %v8623_v50  ;;  %1699 = vmatprep.mubr.f32.mxu0 %v9262_v3 }
  0xb4   : > { %8974 = vmatprep.subr.mxu1 %v9262_v3  ;;  %8976 = vmatprep.mubr.msk.f32.mxu1 %vm9263_vm0, %v9262_v3 }
  0xb5   : > { %v2125_v54 = vpop.permute.xlu0 %2124  ;;  %8612 = vmatprep.subr.msk.mxu0 %vm798_vm1, %v1794_v53  ;;  %v2296_v61 = vpop.permute.xlu1 %2295 }
  0xb6   : > { %v2131_v62 = vsel %vm2130_vm9, %v2125_v54, %v2127_v51 }
  0xb9   : > { %8608 = vmatmul.mubr.msk.f32.vlgmr.msra.gmra.mrb[2].mxu0 %vm794_vm2, %v8605_v40  ;;  %v2298_v58 = vpop.permute.xlu0 %2297  ;;  %v2294_v0 = vpop.permute.xlu1 %2293 }
  0xba   : > { %8975 = vmatpush3.msk.msra.mxu1 %vm798_vm1, %v2298_v58  ;;  %8613 = vmatpush1.msk.msra.mxu0 %vm798_vm1, %v1793_v55  ;;  %v2301_v63 = vsel %vm10421_vm10, %v2296_v61, %v2298_v58  ;;  %v2300_v1 = vsel %vm10421_vm10, %v2294_v0, %v2296_v61  ;;  %v2501_v61 = vld [vmem:[%s10436_s30] sm:$0x3]  ;;  %s10439_s30 = sld [smem:[#allocation14_spill]] }
  0xbb   : > { %8977 = vmatmul.mubr.msk.f32.vlgmr.msra.gmra.mrb[18].mxu1 %vm794_vm2, %v8629_v56  ;;  %1868 = vmatprep.mubr.f32.mxu0 %v9262_v3 }
  0xbc   : > { %8618 = vmatprep.subr.msk.mxu0 %vm798_vm1, %v1963_v57  ;;  %8979 = vmatprep.subr.mxu1 %v9262_v3 }
  0xbd   : > { %8981 = vmatprep.mubr.msk.f32.mxu1 %vm9263_vm0, %v9262_v3 }
  0xc0   : > { %v8651_v35 = vld [vmem:[%s10439_s30 + $0x8] sm:$0xf]  ;;  %v8663_v48 = vld [vmem:[%s10439_s30 + $0x10] sm:$0xf] }
  0xc1   : > { %8614 = vmatmul.mubr.msk.f32.vlgmr.msra.gmra.mrb[2].mxu0 %vm794_vm2, %v8611_v44 }
  0xc2   : > { %8619 = vmatpush1.msk.msra.mxu0 %vm798_vm1, %v1962_v59  ;;  %2037 = vmatprep.mubr.f32.mxu0 %v9262_v3 }
  0xc3   : > { %8624 = vmatprep.subr.msk.mxu0 %vm798_vm1, %v2132_v60 }
  0xc9   : > { %8620 = vmatmul.mubr.msk.f32.vlgmr.msra.gmra.mrb[2].mxu0 %vm794_vm2, %v8617_v47  ;;  %v9670_v47 = vsub.s32 0, %v9654_v34 }
  0xca   : > { %8625 = vmatpush1.msk.msra.mxu0 %vm798_vm1, %v2131_v62  ;;  %2206 = vmatprep.mubr.f32.mxu0 %v9262_v3  ;;  %v2458_v38 = vpop.permute.xlu0 %2457 }
  0xcb   : > { %8630 = vmatprep.subr.msk.mxu0 %vm798_vm1, %v2301_v63 }
  0xd1   : > { %8626 = vmatmul.mubr.msk.f32.vlgmr.msra.gmra.mrb[2].mxu0 %vm794_vm2, %v8623_v50  ;;  %v9674_v50 = vrot.slane %v765_v37, %v9670_v47 }
  0xd2   : > { %8631 = vmatpush1.msk.msra.mxu0 %vm798_vm1, %v2300_v1  ;;  %2375 = vmatprep.mubr.f32.mxu0 %v9262_v3 }
  0xd9   : > { %8632 = vmatmul.mubr.msk.f32.vlgmr.msra.gmra.mrb[2].mxu0 %vm794_vm2, %v8629_v56 }
  0xda   : > { %2581 = vmatprep.mubr.f32.mxu0 %v9262_v3 }
 0x162   : > { %v9647_v2 = vpop.f32.mrb[0].mxu1 }
 0x163   : > { %v8933_v4 = vpop.f32.mrb[1].mxu1 }
 0x168   : > { %v9649_v5 = vpop.f32.mrb[0].mxu0 }
 0x169   : > { %v9651_v6 = vpop.f32.mrb[1].mxu0 }
 0x16a   : > { %v1138_v7 = vpop.f32.mrb[2].mxu1 }
 0x16b   : > { %v8938_v8 = vpop.f32.mrb[3].mxu1 }
 0x16e   : > { %v1288_v9 = vpop.f32.mrb[4].mxu1 }
 0x16f   : > { %v1289_v10 = vadd.f32 %v1288_v9, %v1138_v7  ;;  %v8943_v11 = vpop.f32.mrb[5].mxu1 }
 0x172   : > { %v1454_v12 = vpop.f32.mrb[6].mxu1 }
 0x173   : > { %v1460_v13 = vadd.f32 %v1454_v12, %v1289_v10  ;;  %v8948_v14 = vpop.f32.mrb[7].mxu1 }
 0x176   : > { %v1623_v15 = vpop.f32.mrb[8].mxu1 }
 0x177   : > { %v1629_v16 = vadd.f32 %v1623_v15, %v1460_v13  ;;  %v8953_v18 = vpop.f32.mrb[9].mxu1 }
 0x17a   : > { %v1772_v19 = vpop.f32.mrb[10].mxu1 }
 0x17b   : > { %v1778_v20 = vadd.f32 %v1772_v19, %v1629_v16  ;;  %v8958_v23 = vpop.f32.mrb[11].mxu1  ;;  %v2670_v19 = vld [vmem:[%s10403_s9] sm:$0xf] }
 0x17e   : > { %v1941_v24 = vpop.f32.mrb[12].mxu1 }
 0x17f   : > { %v1947_v25 = vadd.f32 %v1941_v24, %v1778_v20  ;;  %v8963_v26 = vpop.f32.mrb[13].mxu1  ;;  %v8640_v24 = vld [vmem:[%s10439_s30 + $0x4] sm:$0xf] }
 0x182   : > { %v2110_v27 = vpop.f32.mrb[14].mxu1 }
 0x183   : > { %v2116_v28 = vadd.f32 %v2110_v27, %v1947_v25  ;;  %v8968_v29 = vpop.f32.mrb[15].mxu1 }
 0x184   : > { %v2673_v29 = vld [vmem:[%s10439_s30] sm:$0xf] }
 0x186   : > { %v2279_v31 = vpop.f32.mrb[16].mxu1 }
 0x187   : > { %v2285_v32 = vadd.f32 %v2279_v31, %v2116_v28  ;;  %v8973_v33 = vpop.f32.mrb[17].mxu1 }
 0x18e   : > { %v2448_v36 = vpop.f32.mrb[18].mxu1 }
 0x18f   : > { %v2454_v39 = vadd.f32 %v2448_v36, %v2285_v32  ;;  %v8978_v40 = vpop.f32.mrb[19].mxu1 }
 0x191   : > { %v2462_v42 = vadd.f32 %v2458_v38, %v2454_v39 }
 0x193   : > { %v2468_v43 = vadd.f32 %v2462_v42, %v9498_v17 }
 0x195   : > { %v2471_v44 = vmul.f32 %v2468_v43, %v9660_v41 }
 0x197   : > { %vm2474_vm11 = vcmp.ge.f32.partialorder %v2471_v44, 0.0  ;;  %v2477_v45 = vmul.f32 0.05, %v2471_v44 }
 0x199   : > { %v9664_v46 = vsel %vm2474_vm11, %v2471_v44, %v2477_v45  ;;  %vm2496_vm11 = vcmask 1047556  }
 0x19a   : > { %8980 = vmatpush3.msk.msra.mxu1 %vm798_vm1, %v9664_v46 }
 0x19b   : > { %8984 = vmatprep.subr.mxu1 %v9262_v3  ;;  %8982 = vmatmul.mubr.msk.f32.vlgmr.msra.gmra.mrb[20].mxu1 %vm794_vm2, %v2501_v61 }
 0x19c   : > { %8986 = vmatprep.mubr.msk.f32.mxu1 %vm9263_vm0, %v9262_v3 }
 0x1ac   : > { %v2377_v49 = vpop.f32.mrb[2].mxu0 }
 0x1ad   : > { %v2460_v17 = vadd.f32 %v2458_v38, %v2377_v49  ;;  %v2379_v51 = vpop.f32.mrb[3].mxu0 }
 0x1ae   : > { %v2461_v53 = vadd.f32 %v2458_v38, %v2379_v51  ;;  %v8657_v38 = vld [vmem:[%s10439_s30 + $0xc] sm:$0xf] }
 0x1af   : > { %v2466_v54 = vadd.f32 %v2460_v17, %v9511_v22 }
 0x1b0   : > { %v2467_v55 = vadd.f32 %v2461_v53, %v9508_v21 }
 0x1b1   : > { %v2469_v56 = vmul.f32 %v2466_v54, %v9674_v50 }
 0x1b2   : > { %v2470_v57 = vmul.f32 %v2467_v55, %v9676_v52  ;;  %v8669_v55 = vld [vmem:[%s10439_s30 + $0x14] sm:$0xf] }
 0x1b3   : > { %v2475_v58 = vmul.f32 0.05, %v2469_v56  ;;  %vm2472_vm13 = vcmp.ge.f32.partialorder %v2469_v56, 0.0 }
 0x1b4   : > { %vm2473_vm14 = vcmp.ge.f32.partialorder %v2470_v57, 0.0  ;;  %v2476_v59 = vmul.f32 0.05, %v2470_v57 }
 0x1b5   : > { %v9685_v60 = vsel %vm2472_vm13, %v2469_v56, %v2475_v58  ;;  %vm9706_vm13 = vmor %vm2496_vm11, %vm2495_vm15 }
 0x1b6   : > { %v9687_v22 = vsel %vm2473_vm14, %v2470_v57, %v2476_v59  ;;  %vm2499_vm14 = vcmask 396288  }
 0x1b7   : > { %8635 = vmatprep.subr.msk.mxu0 %vm798_vm1, %v9687_v22  ;;  %v2484_v21 = vcombine.low %v9685_v60, %v9687_v22 }
 0x1b8   : > { %8636 = vmatpush1.msk.msra.mxu0 %vm798_vm1, %v9685_v60 }
 0x1b9   : > { %2485 = vrot.lane.b32.xlu1 %v2484_v21, %s9273_s21  ;;  %8637 = vmatmul.mubr.msk.f32.vlgmr.msra.gmra.mrb[4].mxu0 %vm794_vm2, %v2501_v61 }
 0x1ba   : > { %2760 = vmatprep.mubr.f32.mxu0 %v9262_v3 }
 0x1bd   : > { %2487 = vrot.lane.b32.xlu1 %v9664_v46, %s9273_s21 }
 0x22b   : > { %v2486_v62 = vpop.permute.xlu1 %2485 }
 0x22c   : > { %v2489_v0 = vrot.slane %v2486_v62, 4 }
 0x22e   : > { %v2491_v1 = vsel %vm2490_vm12, %v2489_v0, %v2486_v62  ;;  %v8675_v62 = vld [vmem:[%s10439_s30 + $0x18] sm:$0xf] }
 0x22f   : > { %2498 = vst.msk [vmem:[#allocation2] sm:$0xff] %vm9706_vm13, %v2491_v1  ;;  %v2488_v4 = vpop.permute.xlu1 %2487 }
 0x230   : > { %v2492_v7 = vsel %vm2490_vm12, %v2489_v0, %v2488_v4 }
 0x231   : > { %2500 = vst.msk [vmem:[#allocation2 + $0x8] sm:$0xf] %vm2499_vm14, %v2492_v7  ;;  %v8681_v7 = vld [vmem:[%s10439_s30 + $0x1c] sm:$0xf] }
 0x236   : > { %v2671_v8 = vld [vmem:[#allocation2] sm:$0xff] }
 0x237   : > { %v2678_v9 = vcombine.high %v2671_v8, %v2671_v8 }
 0x238   : > { %v2672_v10 = vld [vmem:[#allocation2 + $0x8] sm:$0xf] }
 0x239   : > { %2681 = vrot.lane.b32.xlu0 %v2678_v9, %s9265_s25  ;;  %2683 = vrot.lane.b32.xlu1 %v2672_v10, %s9265_s25  ;;  %v2988_v11 = vld [vmem:[#allocation2 + $0x8] sm:$0xf] }
 0x23a   : > { %v3156_v12 = vld [vmem:[#allocation2 + $0x8] sm:$0xf] }
 0x23b   : > { %v3324_v13 = vld [vmem:[#allocation2 + $0x8] sm:$0xf] }
 0x23c   : > { %v3492_v14 = vld [vmem:[#allocation2 + $0x8] sm:$0xf] }
 0x23d   : > { %2679 = vrot.lane.b32.xlu0 %v2671_v8, %s9265_s25  ;;  %2996 = vrot.lane.b32.xlu1 %v2678_v9, %s9266_s8  ;;  %v3660_v15 = vld [vmem:[#allocation2 + $0x8] sm:$0xf] }
 0x23e   : > { %v3828_v16 = vld [vmem:[#allocation2 + $0x8] sm:$0xf] }
 0x23f   : > { %v3996_v18 = vld [vmem:[#allocation2 + $0x8] sm:$0xf] }
 0x241   : > { %2998 = vrot.lane.b32.xlu0 %v2988_v11, %s9266_s8  ;;  %2994 = vrot.lane.b32.xlu1 %v2671_v8, %s9266_s8 }
 0x245   : > { %3164 = vrot.lane.b32.xlu0 %v2678_v9, %s9267_s4  ;;  %3166 = vrot.lane.b32.xlu1 %v3156_v12, %s9267_s4 }
 0x249   : > { %3162 = vrot.lane.b32.xlu0 %v2671_v8, %s9267_s4  ;;  %3332 = vrot.lane.b32.xlu1 %v2678_v9, %s9264_s3 }
 0x24d   : > { %3334 = vrot.lane.b32.xlu0 %v3324_v13, %s9264_s3  ;;  %3330 = vrot.lane.b32.xlu1 %v2671_v8, %s9264_s3  ;;  %v8687_v13 = vld [vmem:[%s10439_s30 + $0x20] sm:$0xf] }
 0x251   : > { %3500 = vrot.lane.b32.xlu0 %v2678_v9, %s9268_s1  ;;  %3502 = vrot.lane.b32.xlu1 %v3492_v14, %s9268_s1 }
 0x255   : > { %3498 = vrot.lane.b32.xlu0 %v2671_v8, %s9268_s1  ;;  %3668 = vrot.lane.b32.xlu1 %v2678_v9, %s9269_s5 }
 0x259   : > { %3670 = vrot.lane.b32.xlu0 %v3660_v15, %s9269_s5  ;;  %3666 = vrot.lane.b32.xlu1 %v2671_v8, %s9269_s5 }
 0x25d   : > { %3836 = vrot.lane.b32.xlu0 %v2678_v9, %s9270_s26  ;;  %3838 = vrot.lane.b32.xlu1 %v3828_v16, %s9270_s26 }
 0x261   : > { %3834 = vrot.lane.b32.xlu0 %v2671_v8, %s9270_s26  ;;  %4004 = vrot.lane.b32.xlu1 %v2678_v9, %s9271_s27 }
 0x265   : > { %4006 = vrot.lane.b32.xlu0 %v3996_v18, %s9271_s27  ;;  %4002 = vrot.lane.b32.xlu1 %v2671_v8, %s9271_s27 }
 0x269   : > { %4165 = vperm.xlu0 %9247, %v2670_v19  }
 0x26e   : > { %v9792_v45 = vpop.f32.mrb[20].mxu1 }
 0x26f   : > { %v8983_v17 = vpop.f32.mrb[21].mxu1 }
 0x28c   : > { %v9790_v44 = vpop.f32.mrb[4].mxu0 }
 0x28d   : > { %v9797_v49 = vpop.f32.mrb[5].mxu0 }
 0x2ab   : > { %v2682_v20 = vpop.permute.xlu0 %2681  ;;  %v2684_v23 = vpop.permute.xlu1 %2683 }
 0x2ac   : > { %v2686_v25 = vsel %vm989_vm4, %v2682_v20, %v2684_v23  ;;  %8985 = vmatpush3.msk.msra.mxu1 %vm798_vm1, %v2684_v23 }
 0x2ad   : > { %8641 = vmatprep.subr.msk.mxu0 %vm798_vm1, %v2686_v25  ;;  %8989 = vmatprep.subr.mxu1 %v9262_v3 }
 0x2ae   : > { %8987 = vmatmul.mubr.msk.f32.vlgmr.msra.gmra.mrb[22].mxu1 %vm794_vm2, %v8640_v24 }
 0x2af   : > { %8990 = vmatpush3.msk.msra.mxu1 %vm798_vm1, %v2672_v10  ;;  %v2680_v26 = vpop.permute.xlu0 %2679  ;;  %v2997_v27 = vpop.permute.xlu1 %2996  ;;  %8991 = vmatprep.mubr.msk.f32.mxu1 %vm9263_vm0, %v9262_v3 }
 0x2b0   : > { %v2685_v28 = vsel %vm989_vm4, %v2680_v26, %v2682_v20  ;;  %8994 = vmatprep.subr.mxu1 %v9262_v3 }
 0x2b1   : > { %8642 = vmatpush1.msk.msra.mxu0 %vm798_vm1, %v2685_v28 }
 0x2b2   : > { %8643 = vmatmul.mubr.msk.f32.vlgmr.msra.gmra.mrb[6].mxu0 %vm794_vm2, %v8640_v24  ;;  %8646 = vmatprep.subr.msk.mxu0 %vm798_vm1, %v2678_v9 }
 0x2b3   : > { %v2999_v31 = vpop.permute.xlu0 %2998  ;;  %8647 = vmatpush1.msk.msra.mxu0 %vm798_vm1, %v2671_v8  ;;  %v2995_v32 = vpop.permute.xlu1 %2994  ;;  %8992 = vmatmul.mubr.msk.f32.vlgmr.msra.gmra.mrb[24].mxu1 %vm794_vm2, %v2673_v29 }
 0x2b4   : > { %v3001_v33 = vsel %vm1305_vm5, %v2997_v27, %v2999_v31  ;;  %8995 = vmatpush3.msk.msra.mxu1 %vm798_vm1, %v2999_v31  ;;  %8996 = vmatprep.mubr.msk.f32.mxu1 %vm9263_vm0, %v9262_v3  ;;  %v3000_v39 = vsel %vm1305_vm5, %v2995_v32, %v2997_v27 }
 0x2b5   : > { %8652 = vmatprep.subr.msk.mxu0 %vm798_vm1, %v3001_v33  ;;  %8999 = vmatprep.subr.mxu1 %v9262_v3 }
 0x2b6   : > { %2910 = vmatprep.mubr.f32.mxu0 %v9262_v3 }
 0x2b7   : > { %v3165_v36 = vpop.permute.xlu0 %3164  ;;  %v3167_v37 = vpop.permute.xlu1 %3166  ;;  %8997 = vmatmul.mubr.msk.f32.vlgmr.msra.gmra.mrb[26].mxu1 %vm794_vm2, %v8651_v35 }
 0x2b8   : > { %9000 = vmatpush3.msk.msra.mxu1 %vm798_vm1, %v3167_v37  ;;  %9001 = vmatprep.mubr.msk.f32.mxu1 %vm9263_vm0, %v9262_v3  ;;  %v3169_v40 = vsel %vm1474_vm6, %v3165_v36, %v3167_v37 }
 0x2b9   : > { %9004 = vmatprep.subr.mxu1 %v9262_v3 }
 0x2ba   : > { %8648 = vmatmul.mubr.msk.f32.vlgmr.msra.gmra.mrb[6].mxu0 %vm794_vm2, %v2673_v29 }
 0x2bb   : > { %8653 = vmatpush1.msk.msra.mxu0 %vm798_vm1, %v3000_v39  ;;  %v3163_v42 = vpop.permute.xlu0 %3162  ;;  %v3333_v43 = vpop.permute.xlu1 %3332  ;;  %9002 = vmatmul.mubr.msk.f32.vlgmr.msra.gmra.mrb[28].mxu1 %vm794_vm2, %v8657_v38 }
 0x2bc   : > { %8658 = vmatprep.subr.msk.mxu0 %vm798_vm1, %v3169_v40  ;;  %3075 = vmatprep.mubr.f32.mxu0 %v9262_v3  ;;  %v3168_v54 = vsel %vm1474_vm6, %v3163_v42, %v3165_v36 }
 0x2bd   : > { %9006 = vmatprep.mubr.msk.f32.mxu1 %vm9263_vm0, %v9262_v3 }
 0x2bf   : > { %v3335_v51 = vpop.permute.xlu0 %3334  ;;  %v3331_v53 = vpop.permute.xlu1 %3330 }
 0x2c0   : > { %9005 = vmatpush3.msk.msra.mxu1 %vm798_vm1, %v3335_v51  ;;  %v3337_v56 = vsel %vm791_vm3, %v3333_v43, %v3335_v51  ;;  %v3336_v61 = vsel %vm791_vm3, %v3331_v53, %v3333_v43 }
 0x2c1   : > { %9009 = vmatprep.subr.mxu1 %v9262_v3  ;;  %9007 = vmatmul.mubr.msk.f32.vlgmr.msra.gmra.mrb[30].mxu1 %vm794_vm2, %v8663_v48 }
 0x2c2   : > { %8654 = vmatmul.mubr.msk.f32.vlgmr.msra.gmra.mrb[6].mxu0 %vm794_vm2, %v8651_v35  ;;  %9011 = vmatprep.mubr.msk.f32.mxu1 %vm9263_vm0, %v9262_v3 }
 0x2c3   : > { %8659 = vmatpush1.msk.msra.mxu0 %vm798_vm1, %v3168_v54  ;;  %v3501_v57 = vpop.permute.xlu0 %3500  ;;  %v3503_v58 = vpop.permute.xlu1 %3502  ;;  %3243 = vmatprep.mubr.f32.mxu0 %v9262_v3 }
 0x2c4   : > { %8664 = vmatprep.subr.msk.mxu0 %vm798_vm1, %v3337_v56  ;;  %9010 = vmatpush3.msk.msra.mxu1 %vm798_vm1, %v3503_v58  ;;  %v3505_v0 = vsel %vm1792_vm7, %v3501_v57, %v3503_v58 }
 0x2c5   : > { %9014 = vmatprep.subr.mxu1 %v9262_v3  ;;  %9012 = vmatmul.mubr.msk.f32.vlgmr.msra.gmra.mrb[32].mxu1 %vm794_vm2, %v8669_v55 }
 0x2c6   : > { %9016 = vmatprep.mubr.msk.f32.mxu1 %vm9263_vm0, %v9262_v3 }
 0x2c7   : > { %v3499_v59 = vpop.permute.xlu0 %3498  ;;  %v3669_v21 = vpop.permute.xlu1 %3668 }
 0x2c8   : > { %v3504_v10 = vsel %vm1792_vm7, %v3499_v59, %v3501_v57 }
 0x2ca   : > { %8660 = vmatmul.mubr.msk.f32.vlgmr.msra.gmra.mrb[6].mxu0 %vm794_vm2, %v8657_v38 }
 0x2cb   : > { %8665 = vmatpush1.msk.msra.mxu0 %vm798_vm1, %v3336_v61  ;;  %v3671_v1 = vpop.permute.xlu0 %3670  ;;  %v3667_v4 = vpop.permute.xlu1 %3666  ;;  %3411 = vmatprep.mubr.f32.mxu0 %v9262_v3 }
 0x2cc   : > { %8670 = vmatprep.subr.msk.mxu0 %vm798_vm1, %v3505_v0  ;;  %9015 = vmatpush3.msk.msra.mxu1 %vm798_vm1, %v3671_v1  ;;  %v3673_v11 = vsel %vm1961_vm8, %v3669_v21, %v3671_v1  ;;  %v3672_v15 = vsel %vm1961_vm8, %v3667_v4, %v3669_v21 }
 0x2cd   : > { %9019 = vmatprep.subr.mxu1 %v9262_v3  ;;  %9017 = vmatmul.mubr.msk.f32.vlgmr.msra.gmra.mrb[34].mxu1 %vm794_vm2, %v8675_v62 }
 0x2ce   : > { %9021 = vmatprep.mubr.msk.f32.mxu1 %vm9263_vm0, %v9262_v3 }
 0x2cf   : > { %v3837_v8 = vpop.permute.xlu0 %3836  ;;  %v3839_v9 = vpop.permute.xlu1 %3838 }
 0x2d0   : > { %9020 = vmatpush3.msk.msra.mxu1 %vm798_vm1, %v3839_v9  ;;  %v3841_v16 = vsel %vm2130_vm9, %v3837_v8, %v3839_v9 }
 0x2d1   : > { %9022 = vmatmul.mubr.msk.f32.vlgmr.msra.gmra.mrb[36].mxu1 %vm794_vm2, %v8681_v7  ;;  %9024 = vmatprep.subr.mxu1 %v9262_v3 }
 0x2d2   : > { %8666 = vmatmul.mubr.msk.f32.vlgmr.msra.gmra.mrb[6].mxu0 %vm794_vm2, %v8663_v48  ;;  %9026 = vmatprep.mubr.msk.f32.mxu1 %vm9263_vm0, %v9262_v3 }
 0x2d3   : > { %8671 = vmatpush1.msk.msra.mxu0 %vm798_vm1, %v3504_v10  ;;  %v3835_v12 = vpop.permute.xlu0 %3834  ;;  %3579 = vmatprep.mubr.f32.mxu0 %v9262_v3  ;;  %v4005_v18 = vpop.permute.xlu1 %4004 }
 0x2d4   : > { %8676 = vmatprep.subr.msk.mxu0 %vm798_vm1, %v3673_v11  ;;  %v3840_v19 = vsel %vm2130_vm9, %v3835_v12, %v3837_v8 }
 0x2d7   : > { %v4007_v14 = vpop.permute.xlu0 %4006  ;;  %v4003_v23 = vpop.permute.xlu1 %4002 }
 0x2d8   : > { %9025 = vmatpush3.msk.msra.mxu1 %vm798_vm1, %v4007_v14  ;;  %v4009_v20 = vsel %vm10421_vm10, %v4005_v18, %v4007_v14  ;;  %v4008_v24 = vsel %vm10421_vm10, %v4003_v23, %v4005_v18 }
 0x2d9   : > { %9027 = vmatmul.mubr.msk.f32.vlgmr.msra.gmra.mrb[38].mxu1 %vm794_vm2, %v8687_v13  ;;  %9029 = vmatprep.subr.mxu1 %v9262_v3 }
 0x2da   : > { %8672 = vmatmul.mubr.msk.f32.vlgmr.msra.gmra.mrb[6].mxu0 %vm794_vm2, %v8669_v55  ;;  %9031 = vmatprep.mubr.msk.f32.mxu1 %vm9263_vm0, %v9262_v3 }
 0x2db   : > { %8677 = vmatpush1.msk.msra.mxu0 %vm798_vm1, %v3672_v15  ;;  %3747 = vmatprep.mubr.f32.mxu0 %v9262_v3 }
 0x2dc   : > { %8682 = vmatprep.subr.msk.mxu0 %vm798_vm1, %v3841_v16 }
 0x2e2   : > { %8678 = vmatmul.mubr.msk.f32.vlgmr.msra.gmra.mrb[6].mxu0 %vm794_vm2, %v8675_v62 }
 0x2e3   : > { %8683 = vmatpush1.msk.msra.mxu0 %vm798_vm1, %v3840_v19  ;;  %3915 = vmatprep.mubr.f32.mxu0 %v9262_v3 }
 0x2e4   : > { %8688 = vmatprep.subr.msk.mxu0 %vm798_vm1, %v4009_v20 }
 0x2e8   : > { %v4166_v21 = vpop.permute.xlu0 %4165 }
 0x2ea   : > { %8684 = vmatmul.mubr.msk.f32.vlgmr.msra.gmra.mrb[6].mxu0 %vm794_vm2, %v8681_v7 }
 0x2eb   : > { %8689 = vmatpush1.msk.msra.mxu0 %vm798_vm1, %v4008_v24  ;;  %4083 = vmatprep.mubr.f32.mxu0 %v9262_v3 }
 0x2f2   : > { %8690 = vmatmul.mubr.msk.f32.vlgmr.msra.gmra.mrb[6].mxu0 %vm794_vm2, %v8687_v13 }
 0x2f3   : > { %4282 = vmatprep.mubr.f32.mxu0 %v9262_v3 }
 0x381   : > { %v2833_v25 = vpop.f32.mrb[22].mxu1 }
 0x382   : > { %v8988_v26 = vpop.f32.mrb[23].mxu1 }
 0x386   : > { %v2983_v27 = vpop.f32.mrb[24].mxu1 }
 0x387   : > { %v2984_v28 = vadd.f32 %v2983_v27, %v2833_v25  ;;  %v8993_v29 = vpop.f32.mrb[25].mxu1 }
 0x38a   : > { %v3148_v31 = vpop.f32.mrb[26].mxu1 }
 0x38b   : > { %v3154_v32 = vadd.f32 %v3148_v31, %v2984_v28  ;;  %v8998_v33 = vpop.f32.mrb[27].mxu1 }
 0x38e   : > { %v3316_v35 = vpop.f32.mrb[28].mxu1 }
 0x38f   : > { %v3322_v36 = vadd.f32 %v3316_v35, %v3154_v32  ;;  %v9003_v37 = vpop.f32.mrb[29].mxu1 }
 0x390   : > { %v4371_v37 = vld [vmem:[%s10407_s13] sm:$0xf] }
 0x394   : > { %v3484_v38 = vpop.f32.mrb[30].mxu1 }
 0x395   : > { %v3490_v39 = vadd.f32 %v3484_v38, %v3322_v36  ;;  %v9008_v40 = vpop.f32.mrb[31].mxu1  ;;  %v8698_v38 = vld [vmem:[%s10406_s12 + $0x4] sm:$0xf] }
 0x396   : > { %v9940_v40 = vld [vmem:[#allocation2 + $0x18] sm:$0xff] }
 0x398   : > { %v3652_v42 = vpop.f32.mrb[32].mxu1 }
 0x399   : > { %v3658_v43 = vadd.f32 %v3652_v42, %v3490_v39  ;;  %v9013_v48 = vpop.f32.mrb[33].mxu1 }
 0x39a   : > { %v4374_v48 = vld [vmem:[%s10406_s12] sm:$0xf] }
 0x3a0   : > { %v3820_v17 = vpop.f32.mrb[34].mxu1 }
 0x3a1   : > { %v3826_v51 = vadd.f32 %v3820_v17, %v3658_v43  ;;  %v9018_v53 = vpop.f32.mrb[35].mxu1 }
 0x3a4   : > { %v3988_v54 = vpop.f32.mrb[36].mxu1 }
 0x3a5   : > { %v3994_v55 = vadd.f32 %v3988_v54, %v3826_v51  ;;  %v9023_v56 = vpop.f32.mrb[37].mxu1 }
 0x3a6   : > { %v8709_v56 = vld [vmem:[%s10406_s12 + $0x8] sm:$0xf] }
 0x3ac   : > { %v4156_v57 = vpop.f32.mrb[38].mxu1 }
 0x3ad   : > { %v4162_v58 = vadd.f32 %v4156_v57, %v3994_v55  ;;  %v9028_v59 = vpop.f32.mrb[39].mxu1 }
 0x3af   : > { %v4170_v61 = vadd.f32 %v4166_v21, %v4162_v58 }
 0x3b1   : > { %v4173_v62 = vadd.f32 %v4170_v61, %v9664_v46 }
 0x3b3   : > { %v4176_v0 = vmul.f32 %v4173_v62, %v9660_v41 }
 0x3b5   : > { %vm4179_vm15 = vcmp.ge.f32.partialorder %v4176_v0, 0.0  ;;  %v4182_v1 = vmul.f32 0.05, %v4176_v0 }
 0x3b7   : > { %v9874_v4 = vsel %vm4179_vm15, %v4176_v0, %v4182_v1 }
 0x3b8   : > { %4192 = vrot.lane.b32.xlu0 %v9874_v4, %s9273_s21  ;;  %9030 = vmatpush3.msk.msra.mxu1 %vm798_vm1, %v9874_v4 }
 0x3b9   : > { %9034 = vmatprep.subr.mxu1 %v9262_v3 }
 0x3c5   : > { %v4085_v7 = vpop.f32.mrb[6].mxu0 }
 0x3c6   : > { %v4168_v8 = vadd.f32 %v4166_v21, %v4085_v7  ;;  %v4087_v9 = vpop.f32.mrb[7].mxu0 }
 0x3c7   : > { %v4169_v10 = vadd.f32 %v4166_v21, %v4087_v9  ;;  %v8715_v21 = vld [vmem:[%s10406_s12 + $0xc] sm:$0xf] }
 0x3c8   : > { %v4171_v46 = vadd.f32 %v4168_v8, %v9685_v60 }
 0x3c9   : > { %v4172_v11 = vadd.f32 %v4169_v10, %v9687_v22  ;;  %v4202_v22 = vld [vmem:[%s10404_s10] sm:$0x3] }
 0x3ca   : > { %v4174_v12 = vmul.f32 %v4171_v46, %v9674_v50  ;;  %9032 = vmatmul.mubr.msk.f32.vlgmr.msra.gmra.mrb[40].mxu1 %vm794_vm2, %v4202_v22 }
 0x3cb   : > { %v4175_v13 = vmul.f32 %v4172_v11, %v9676_v52  ;;  %9036 = vmatprep.mubr.msk.f32.mxu1 %vm9263_vm0, %v9262_v3  ;;  %v8721_v11 = vld [vmem:[%s10406_s12 + $0x10] sm:$0xf] }
 0x3cc   : > { %v4180_v14 = vmul.f32 0.05, %v4174_v12  ;;  %vm4177_vm11 = vcmp.ge.f32.partialorder %v4174_v12, 0.0 }
 0x3cd   : > { %vm4178_vm15 = vcmp.ge.f32.partialorder %v4175_v13, 0.0  ;;  %v4181_v15 = vmul.f32 0.05, %v4175_v13 }
 0x3ce   : > { %v9885_v16 = vsel %vm4177_vm11, %v4174_v12, %v4180_v14 }
 0x3cf   : > { %v9887_v18 = vsel %vm4178_vm15, %v4175_v13, %v4181_v15  ;;  %v8727_v15 = vld [vmem:[%s10406_s12 + $0x14] sm:$0xf] }
 0x3d0   : > { %8693 = vmatprep.subr.msk.mxu0 %vm798_vm1, %v9887_v18  ;;  %v4189_v60 = vcombine.low %v9885_v16, %v9887_v18 }
 0x3d1   : > { %8694 = vmatpush1.msk.msra.mxu0 %vm798_vm1, %v9885_v16 }
 0x3d2   : > { %4190 = vrot.lane.b32.xlu1 %v4189_v60, %s9273_s21  ;;  %8695 = vmatmul.mubr.msk.f32.vlgmr.msra.gmra.mrb[8].mxu0 %vm794_vm2, %v4202_v22 }
 0x3d3   : > { %4461 = vmatprep.mubr.f32.mxu0 %v9262_v3 }
 0x42a   : > { %v4193_v23 = vpop.permute.xlu0 %4192 }
 0x444   : > { %v4191_v19 = vpop.permute.xlu1 %4190 }
 0x445   : > { %v4194_v20 = vrot.slane %v4191_v19, 4 }
 0x447   : > { %v4195_v24 = vsel %vm2490_vm12, %v4194_v20, %v4191_v19  ;;  %v4196_v25 = vsel %vm2490_vm12, %v4194_v20, %v4193_v23 }
 0x448   : > { %4200 = vst.msk [vmem:[#allocation2 + $0xc] sm:$0xff] %vm9706_vm13, %v4195_v24 }
 0x449   : > { %4201 = vst.msk [vmem:[#allocation2 + $0x14] sm:$0xf] %vm2499_vm14, %v4196_v25  ;;  %v8733_v25 = vld [vmem:[%s10406_s12 + $0x18] sm:$0xf] }
 0x44f   : > { %v4372_v27 = vld [vmem:[#allocation2 + $0xc] sm:$0xff] }
 0x450   : > { %v4373_v26 = vld [vmem:[#allocation2 + $0x14] sm:$0xf]  ;;  %v4379_v28 = vcombine.high %v4372_v27, %v4372_v27 }
 0x451   : > { %4384 = vrot.lane.b32.xlu0 %v4373_v26, %s9265_s25  ;;  %v4689_v3 = vld [vmem:[#allocation2 + $0x14] sm:$0xf] }
 0x452   : > { %4382 = vrot.lane.b32.xlu1 %v4379_v28, %s9265_s25  ;;  %v4857_v29 = vld [vmem:[#allocation2 + $0x14] sm:$0xf] }
 0x453   : > { %v5025_v31 = vld [vmem:[#allocation2 + $0x14] sm:$0xf] }
 0x454   : > { %v5193_v32 = vld [vmem:[#allocation2 + $0x14] sm:$0xf] }
 0x455   : > { %4697 = vrot.lane.b32.xlu0 %v4379_v28, %s9266_s8  ;;  %v5361_v33 = vld [vmem:[#allocation2 + $0x14] sm:$0xf] }
 0x456   : > { %4380 = vrot.lane.b32.xlu1 %v4372_v27, %s9265_s25  ;;  %v5529_v35 = vld [vmem:[#allocation2 + $0x14] sm:$0xf] }
 0x457   : > { %v5697_v36 = vld [vmem:[#allocation2 + $0x14] sm:$0xf] }
 0x459   : > { %4695 = vrot.lane.b32.xlu0 %v4372_v27, %s9266_s8 }
 0x45a   : > { %4699 = vrot.lane.b32.xlu1 %v4689_v3, %s9266_s8  ;;  %v8739_v3 = vld [vmem:[%s10406_s12 + $0x1c] sm:$0xf] }
 0x45d   : > { %4867 = vrot.lane.b32.xlu0 %v4857_v29, %s9267_s4 }
 0x45e   : > { %4865 = vrot.lane.b32.xlu1 %v4379_v28, %s9267_s4 }
 0x461   : > { %5033 = vrot.lane.b32.xlu0 %v4379_v28, %s9264_s3 }
 0x462   : > { %4863 = vrot.lane.b32.xlu1 %v4372_v27, %s9267_s4 }
 0x465   : > { %5031 = vrot.lane.b32.xlu0 %v4372_v27, %s9264_s3 }
 0x466   : > { %5035 = vrot.lane.b32.xlu1 %v5025_v31, %s9264_s3 }
 0x469   : > { %5203 = vrot.lane.b32.xlu0 %v5193_v32, %s9268_s1 }
 0x46a   : > { %5201 = vrot.lane.b32.xlu1 %v4379_v28, %s9268_s1 }
 0x46d   : > { %5369 = vrot.lane.b32.xlu0 %v4379_v28, %s9269_s5 }
 0x46e   : > { %5199 = vrot.lane.b32.xlu1 %v4372_v27, %s9268_s1 }
 0x471   : > { %5367 = vrot.lane.b32.xlu0 %v4372_v27, %s9269_s5 }
 0x472   : > { %5371 = vrot.lane.b32.xlu1 %v5361_v33, %s9269_s5 }
 0x475   : > { %5539 = vrot.lane.b32.xlu0 %v5529_v35, %s9270_s26  ;;  %v8745_v35 = vld [vmem:[%s10406_s12 + $0x20] sm:$0xf] }
 0x476   : > { %5537 = vrot.lane.b32.xlu1 %v4379_v28, %s9270_s26 }
 0x479   : > { %5705 = vrot.lane.b32.xlu0 %v4379_v28, %s9271_s27 }
 0x47a   : > { %5535 = vrot.lane.b32.xlu1 %v4372_v27, %s9270_s26 }
 0x47d   : > { %5703 = vrot.lane.b32.xlu0 %v4372_v27, %s9271_s27 }
 0x47e   : > { %5707 = vrot.lane.b32.xlu1 %v5697_v36, %s9271_s27 }
 0x482   : > { %5866 = vperm.xlu1 %9248, %v4371_v37  }
 0x49d   : > { %v9984_v7 = vpop.f32.mrb[40].mxu1 }
 0x49e   : > { %v9033_v10 = vpop.f32.mrb[41].mxu1 }
 0x4a5   : > { %v9977_v62 = vpop.f32.mrb[8].mxu0 }
 0x4a6   : > { %v9982_v1 = vpop.f32.mrb[9].mxu0 }
 0x4c3   : > { %v4385_v39 = vpop.permute.xlu0 %4384 }
 0x4c4   : > { %9035 = vmatpush3.msk.msra.mxu1 %vm798_vm1, %v4385_v39  ;;  %v4383_v42 = vpop.permute.xlu1 %4382 }
 0x4c5   : > { %9039 = vmatprep.subr.mxu1 %v9940_v40  ;;  %9037 = vmatmul.mubr.msk.f32.vlgmr.msra.gmra.mrb[42].mxu1 %vm794_vm2, %v8698_v38  ;;  %v4387_v43 = vsel %vm989_vm4, %v4383_v42, %v4385_v39 }
 0x4c6   : > { %9040 = vmatpush3.msk.msra.mxu1 %vm798_vm1, %v4373_v26  ;;  %9041 = vmatprep.mubr.msk.f32.mxu1 %vm9263_vm0, %v9940_v40 }
 0x4c7   : > { %v4698_v17 = vpop.permute.xlu0 %4697  ;;  %8699 = vmatprep.subr.msk.mxu0 %vm798_vm1, %v4387_v43  ;;  %9044 = vmatprep.subr.mxu1 %v9940_v40 }
 0x4c8   : > { %v4381_v51 = vpop.permute.xlu1 %4380 }
 0x4c9   : > { %9042 = vmatmul.mubr.msk.f32.vlgmr.msra.gmra.mrb[44].mxu1 %vm794_vm2, %v4374_v48  ;;  %v4386_v53 = vsel %vm989_vm4, %v4381_v51, %v4383_v42 }
 0x4ca   : > { %9046 = vmatprep.mubr.msk.f32.mxu1 %vm9263_vm0, %v9940_v40  ;;  %8700 = vmatpush1.msk.msra.mxu0 %vm798_vm1, %v4386_v53 }
 0x4cb   : > { %v4696_v54 = vpop.permute.xlu0 %4695  ;;  %8701 = vmatmul.mubr.msk.f32.vlgmr.msra.gmra.mrb[10].mxu0 %vm794_vm2, %v8698_v38  ;;  %8704 = vmatprep.subr.msk.mxu0 %vm798_vm1, %v4379_v28 }
 0x4cc   : > { %8705 = vmatpush1.msk.msra.mxu0 %vm798_vm1, %v4372_v27  ;;  %v4700_v55 = vpop.permute.xlu1 %4699  ;;  %4611 = vmatprep.mubr.f32.mxu0 %v9940_v40  ;;  %v4701_v0 = vsel %vm1305_vm5, %v4696_v54, %v4698_v17 }
 0x4cd   : > { %v4702_v57 = vsel %vm1305_vm5, %v4698_v17, %v4700_v55  ;;  %9045 = vmatpush3.msk.msra.mxu1 %vm798_vm1, %v4700_v55 }
 0x4ce   : > { %8710 = vmatprep.subr.msk.mxu0 %vm798_vm1, %v4702_v57  ;;  %9049 = vmatprep.subr.mxu1 %v9940_v40 }
 0x4cf   : > { %v4868_v58 = vpop.permute.xlu0 %4867  ;;  %9047 = vmatmul.mubr.msk.f32.vlgmr.msra.gmra.mrb[46].mxu1 %vm794_vm2, %v8709_v56 }
 0x4d0   : > { %9050 = vmatpush3.msk.msra.mxu1 %vm798_vm1, %v4868_v58  ;;  %v4866_v59 = vpop.permute.xlu1 %4865  ;;  %9051 = vmatprep.mubr.msk.f32.mxu1 %vm9263_vm0, %v9940_v40 }
 0x4d1   : > { %9054 = vmatprep.subr.mxu1 %v9940_v40  ;;  %v4870_v8 = vsel %vm1474_vm6, %v4866_v59, %v4868_v58 }
 0x4d3   : > { %v5034_v61 = vpop.permute.xlu0 %5033  ;;  %8706 = vmatmul.mubr.msk.f32.vlgmr.msra.gmra.mrb[10].mxu0 %vm794_vm2, %v4374_v48  ;;  %9052 = vmatmul.mubr.msk.f32.vlgmr.msra.gmra.mrb[48].mxu1 %vm794_vm2, %v8715_v21 }
 0x4d4   : > { %8711 = vmatpush1.msk.msra.mxu0 %vm798_vm1, %v4701_v0  ;;  %v4864_v9 = vpop.permute.xlu1 %4863  ;;  %4776 = vmatprep.mubr.f32.mxu0 %v9940_v40 }
 0x4d5   : > { %8716 = vmatprep.subr.msk.mxu0 %vm798_vm1, %v4870_v8  ;;  %9056 = vmatprep.mubr.msk.f32.mxu1 %vm9263_vm0, %v9940_v40  ;;  %v4869_v14 = vsel %vm1474_vm6, %v4864_v9, %v4866_v59 }
 0x4d7   : > { %v5032_v46 = vpop.permute.xlu0 %5031 }
 0x4d8   : > { %v5036_v12 = vpop.permute.xlu1 %5035  ;;  %v5037_v24 = vsel %vm791_vm3, %v5032_v46, %v5034_v61 }
 0x4d9   : > { %9055 = vmatpush3.msk.msra.mxu1 %vm798_vm1, %v5036_v12  ;;  %v5038_v60 = vsel %vm791_vm3, %v5034_v61, %v5036_v12 }
 0x4da   : > { %9059 = vmatprep.subr.mxu1 %v9940_v40  ;;  %9057 = vmatmul.mubr.msk.f32.vlgmr.msra.gmra.mrb[50].mxu1 %vm794_vm2, %v8721_v11 }
 0x4db   : > { %v5204_v13 = vpop.permute.xlu0 %5203  ;;  %8712 = vmatmul.mubr.msk.f32.vlgmr.msra.gmra.mrb[10].mxu0 %vm794_vm2, %v8709_v56  ;;  %9061 = vmatprep.mubr.msk.f32.mxu1 %vm9263_vm0, %v9940_v40 }
 0x4dc   : > { %9060 = vmatpush3.msk.msra.mxu1 %vm798_vm1, %v5204_v13  ;;  %8717 = vmatpush1.msk.msra.mxu0 %vm798_vm1, %v4869_v14  ;;  %v5202_v22 = vpop.permute.xlu1 %5201 }
 0x4dd   : > { %4944 = vmatprep.mubr.f32.mxu0 %v9940_v40  ;;  %8722 = vmatprep.subr.msk.mxu0 %vm798_vm1, %v5038_v60  ;;  %v5206_v26 = vsel %vm1792_vm7, %v5202_v22, %v5204_v13 }
 0x4de   : > { %9062 = vmatmul.mubr.msk.f32.vlgmr.msra.gmra.mrb[52].mxu1 %vm794_vm2, %v8727_v15  ;;  %9064 = vmatprep.subr.mxu1 %v9940_v40 }
 0x4df   : > { %v5370_v19 = vpop.permute.xlu0 %5369  ;;  %9066 = vmatprep.mubr.msk.f32.mxu1 %vm9263_vm0, %v9940_v40 }
 0x4e0   : > { %v5200_v20 = vpop.permute.xlu1 %5199 }
 0x4e1   : > { %v5205_v31 = vsel %vm1792_vm7, %v5200_v20, %v5202_v22 }
 0x4e3   : > { %v5368_v23 = vpop.permute.xlu0 %5367  ;;  %8718 = vmatmul.mubr.msk.f32.vlgmr.msra.gmra.mrb[10].mxu0 %vm794_vm2, %v8715_v21 }
 0x4e4   : > { %8723 = vmatpush1.msk.msra.mxu0 %vm798_vm1, %v5037_v24  ;;  %v5372_v27 = vpop.permute.xlu1 %5371  ;;  %5112 = vmatprep.mubr.f32.mxu0 %v9940_v40  ;;  %v5373_v37 = vsel %vm1961_vm8, %v5368_v23, %v5370_v19 }
 0x4e5   : > { %8728 = vmatprep.subr.msk.mxu0 %vm798_vm1, %v5206_v26  ;;  %9065 = vmatpush3.msk.msra.mxu1 %vm798_vm1, %v5372_v27  ;;  %v5374_v32 = vsel %vm1961_vm8, %v5370_v19, %v5372_v27 }
 0x4e6   : > { %9069 = vmatprep.subr.mxu1 %v9940_v40  ;;  %9067 = vmatmul.mubr.msk.f32.vlgmr.msra.gmra.mrb[54].mxu1 %vm794_vm2, %v8733_v25 }
 0x4e7   : > { %v5540_v28 = vpop.permute.xlu0 %5539  ;;  %9071 = vmatprep.mubr.msk.f32.mxu1 %vm9263_vm0, %v9940_v40 }
 0x4e8   : > { %9070 = vmatpush3.msk.msra.mxu1 %vm798_vm1, %v5540_v28  ;;  %v5538_v29 = vpop.permute.xlu1 %5537 }
 0x4e9   : > { %9074 = vmatprep.subr.mxu1 %v9940_v40  ;;  %v5542_v38 = vsel %vm2130_vm9, %v5538_v29, %v5540_v28 }
 0x4ea   : > { %9072 = vmatmul.mubr.msk.f32.vlgmr.msra.gmra.mrb[56].mxu1 %vm794_vm2, %v8739_v3 }
 0x4eb   : > { %8724 = vmatmul.mubr.msk.f32.vlgmr.msra.gmra.mrb[10].mxu0 %vm794_vm2, %v8721_v11  ;;  %9076 = vmatprep.mubr.msk.f32.mxu1 %vm9263_vm0, %v9940_v40  ;;  %v5706_v39 = vpop.permute.xlu0 %5705 }
 0x4ec   : > { %8729 = vmatpush1.msk.msra.mxu0 %vm798_vm1, %v5205_v31  ;;  %v5536_v33 = vpop.permute.xlu1 %5535  ;;  %5280 = vmatprep.mubr.f32.mxu0 %v9940_v40 }
 0x4ed   : > { %8734 = vmatprep.subr.msk.mxu0 %vm798_vm1, %v5374_v32  ;;  %v5541_v42 = vsel %vm2130_vm9, %v5536_v33, %v5538_v29 }
 0x4ef   : > { %v5704_v48 = vpop.permute.xlu0 %5703 }
 0x4f0   : > { %v5708_v36 = vpop.permute.xlu1 %5707  ;;  %v5709_v17 = vsel %vm10421_vm10, %v5704_v48, %v5706_v39 }
 0x4f1   : > { %9075 = vmatpush3.msk.msra.mxu1 %vm798_vm1, %v5708_v36  ;;  %v5710_v43 = vsel %vm10421_vm10, %v5706_v39, %v5708_v36 }
 0x4f2   : > { %9077 = vmatmul.mubr.msk.f32.vlgmr.msra.gmra.mrb[58].mxu1 %vm794_vm2, %v8745_v35  ;;  %9079 = vmatprep.subr.mxu1 %v9940_v40 }
 0x4f3   : > { %8730 = vmatmul.mubr.msk.f32.vlgmr.msra.gmra.mrb[10].mxu0 %vm794_vm2, %v8727_v15  ;;  %9081 = vmatprep.mubr.msk.f32.mxu1 %vm9263_vm0, %v9940_v40 }
 0x4f4   : > { %8735 = vmatpush1.msk.msra.mxu0 %vm798_vm1, %v5373_v37  ;;  %5448 = vmatprep.mubr.f32.mxu0 %v9940_v40 }
 0x4f5   : > { %8740 = vmatprep.subr.msk.mxu0 %vm798_vm1, %v5542_v38 }
 0x4fb   : > { %8736 = vmatmul.mubr.msk.f32.vlgmr.msra.gmra.mrb[10].mxu0 %vm794_vm2, %v8733_v25 }
 0x4fc   : > { %8741 = vmatpush1.msk.msra.mxu0 %vm798_vm1, %v5541_v42  ;;  %5616 = vmatprep.mubr.f32.mxu0 %v9940_v40 }
 0x4fd   : > { %8746 = vmatprep.subr.msk.mxu0 %vm798_vm1, %v5710_v43 }
 0x501   : > { %v5867_v23 = vpop.permute.xlu1 %5866 }
 0x503   : > { %8742 = vmatmul.mubr.msk.f32.vlgmr.msra.gmra.mrb[10].mxu0 %vm794_vm2, %v8739_v3 }
 0x504   : > { %8747 = vmatpush1.msk.msra.mxu0 %vm798_vm1, %v5709_v17  ;;  %5784 = vmatprep.mubr.f32.mxu0 %v9940_v40 }
 0x50b   : > { %8748 = vmatmul.mubr.msk.f32.vlgmr.msra.gmra.mrb[10].mxu0 %vm794_vm2, %v8745_v35 }
 0x50c   : > { %5993 = vmatprep.mubr.f32.mxu0 %v9940_v40 }
 0x598   : > { %v4534_v51 = vpop.f32.mrb[42].mxu1 }
 0x599   : > { %v9038_v53 = vpop.f32.mrb[43].mxu1 }
 0x59c   : > { %v4684_v54 = vpop.f32.mrb[44].mxu1 }
 0x59d   : > { %v4685_v55 = vadd.f32 %v4684_v54, %v4534_v51  ;;  %v9043_v56 = vpop.f32.mrb[45].mxu1 }
 0x5a2   : > { %v4849_v57 = vpop.f32.mrb[46].mxu1 }
 0x5a3   : > { %v4855_v58 = vadd.f32 %v4849_v57, %v4685_v55  ;;  %v9048_v59 = vpop.f32.mrb[47].mxu1 }
 0x5a6   : > { %v5017_v21 = vpop.f32.mrb[48].mxu1 }
 0x5a7   : > { %v5023_v61 = vadd.f32 %v5017_v21, %v4855_v58  ;;  %v9053_v0 = vpop.f32.mrb[49].mxu1 }
 0x5ad   : > { %v5185_v8 = vpop.f32.mrb[50].mxu1 }
 0x5ae   : > { %v5191_v9 = vadd.f32 %v5185_v8, %v5023_v61  ;;  %v9058_v10 = vpop.f32.mrb[51].mxu1 }
 0x5b1   : > { %v5353_v46 = vpop.f32.mrb[52].mxu1 }
 0x5b2   : > { %v5359_v11 = vadd.f32 %v5353_v46, %v5191_v9  ;;  %v9063_v12 = vpop.f32.mrb[53].mxu1  ;;  %v5903_v46 = vld [vmem:[%s10409_s15] sm:$0x3] }
 0x5b3   : > { %v8056_v12 = vld [vmem:[#allocation3] sm:$0x1] }
 0x5b9   : > { %v5521_v13 = vpop.f32.mrb[54].mxu1 }
 0x5ba   : > { %v5527_v14 = vadd.f32 %v5521_v13, %v5359_v11  ;;  %v9068_v15 = vpop.f32.mrb[55].mxu1  ;;  %v4203_v11 = vld [vmem:[%s10405_s11] sm:$0x3] }
 0x5bb   : > { %v8043_v13 = vld [vmem:[%s10411_s17] sm:$0xf] }
 0x5bc   : > { %v8751_v15 = vld [vmem:[%s10408_s14 + $0x2] sm:$0x3] }
 0x5bd   : > { %v5689_v60 = vpop.f32.mrb[56].mxu1 }
 0x5be   : > { %v5695_v22 = vadd.f32 %v5689_v60, %v5527_v14  ;;  %v9073_v19 = vpop.f32.mrb[57].mxu1  ;;  %v8223_v14 = vld [vmem:[#allocation5] sm:$0x1] }
 0x5c5   : > { %v5857_v20 = vpop.f32.mrb[58].mxu1 }
 0x5c6   : > { %v5863_v24 = vadd.f32 %v5857_v20, %v5695_v22  ;;  %v9078_v25 = vpop.f32.mrb[59].mxu1  ;;  %v5906_v20 = vld [vmem:[%s10408_s14] sm:$0x3] }
 0x5c8   : > { %v5871_v26 = vadd.f32 %v5867_v23, %v5863_v24 }
 0x5ca   : > { %v5874_v27 = vadd.f32 %v5871_v26, %v9874_v4 }
 0x5cc   : > { %v5877_v28 = vmul.f32 %v5874_v27, %v9660_v41 }
 0x5ce   : > { %vm5880_vm11 = vcmp.ge.f32.partialorder %v5877_v28, 0.0  ;;  %v5883_v3 = vmul.f32 0.05, %v5877_v28 }
 0x5d0   : > { %v5886_v29 = vsel %vm5880_vm11, %v5877_v28, %v5883_v3  ;;  %v8762_v28 = vld [vmem:[%s10408_s14 + $0x4] sm:$0x3] }
 0x5d1   : > { %5893 = vrot.lane.b32.xlu1 %v5886_v29, %s9273_s21 }
 0x5de   : > { %v5786_v31 = vpop.f32.mrb[10].mxu0 }
 0x5df   : > { %v5869_v32 = vadd.f32 %v5867_v23, %v5786_v31  ;;  %v5788_v33 = vpop.f32.mrb[11].mxu0 }
 0x5e0   : > { %v5870_v35 = vadd.f32 %v5867_v23, %v5788_v33 }
 0x5e1   : > { %v5872_v36 = vadd.f32 %v5869_v32, %v9885_v16  ;;  %v8768_v32 = vld [vmem:[%s10408_s14 + $0x6] sm:$0x3] }
 0x5e2   : > { %v5873_v37 = vadd.f32 %v5870_v35, %v9887_v18 }
 0x5e3   : > { %v5875_v38 = vmul.f32 %v5872_v36, %v9674_v50 }
 0x5e4   : > { %v5876_v39 = vmul.f32 %v5873_v37, %v9676_v52 }
 0x5e5   : > { %v5881_v4 = vmul.f32 0.05, %v5875_v38  ;;  %vm5878_vm15 = vcmp.ge.f32.partialorder %v5875_v38, 0.0 }
 0x5e6   : > { %v5882_v42 = vmul.f32 0.05, %v5876_v39  ;;  %vm5879_vm10 = vcmp.ge.f32.partialorder %v5876_v39, 0.0 }
 0x5e7   : > { %v5884_v43 = vsel %vm5878_vm15, %v5875_v38, %v5881_v4 }
 0x5e8   : > { %v5885_v48 = vsel %vm5879_vm10, %v5876_v39, %v5882_v42  ;;  %v8774_v39 = vld [vmem:[%s10408_s14 + $0x8] sm:$0x3] }
 0x5e9   : > { %v5890_v17 = vcombine.low %v5884_v43, %v5885_v48  ;;  %v8780_v48 = vld [vmem:[%s10408_s14 + $0xa] sm:$0x3] }
 0x5eb   : > { %5891 = vrot.lane.b32.xlu0 %v5890_v17, %s9273_s21 }
 0x643   : > { %v5894_v54 = vpop.permute.xlu1 %5893 }
 0x65d   : > { %v5892_v51 = vpop.permute.xlu0 %5891 }
 0x65e   : > { %v5895_v53 = vrot.slane %v5892_v51, 4 }
 0x660   : > { %v5896_v16 = vsel %vm2490_vm12, %v5895_v53, %v5892_v51  ;;  %v5897_v18 = vsel %vm2490_vm12, %v5895_v53, %v5894_v54 }
 0x661   : > { %5901 = vst.msk [vmem:[#allocation2 + $0x18] sm:$0xff] %vm9706_vm13, %v5896_v16 }
 0x662   : > { %5902 = vst.msk [vmem:[#allocation2 + $0x20] sm:$0xf] %vm2499_vm14, %v5897_v18 }
 0x668   : > { %v10081_v56 = vld [vmem:[#allocation2 + $0x18] sm:$0xff] }
 0x669   : > { %v5905_v55 = vld [vmem:[#allocation2 + $0x20] sm:$0xf]  ;;  %v10086_v57 = vcombine.high %v10081_v56, %v10081_v56 }
 0x66a   : > { %5916 = vrot.lane.b32.xlu1 %v5905_v55, %s9265_s25  ;;  %v6221_v63 = vld [vmem:[#allocation2 + $0x20] sm:$0xf] }
 0x66b   : > { %5914 = vrot.lane.b32.xlu0 %v10086_v57, %s9265_s25  ;;  %v6389_v58 = vld [vmem:[#allocation2 + $0x20] sm:$0xf] }
 0x66c   : > { %v6557_v59 = vld [vmem:[#allocation2 + $0x20] sm:$0xf] }
 0x66d   : > { %v6725_v21 = vld [vmem:[#allocation2 + $0x20] sm:$0xf] }
 0x66e   : > { %6229 = vrot.lane.b32.xlu1 %v10086_v57, %s9266_s8  ;;  %v6893_v61 = vld [vmem:[#allocation2 + $0x20] sm:$0xf] }
 0x66f   : > { %5912 = vrot.lane.b32.xlu0 %v10081_v56, %s9265_s25  ;;  %v7061_v0 = vld [vmem:[#allocation2 + $0x20] sm:$0xf]  ;;  %s756_s25 = scalar_lea.vmem %s10414_s22, %s9224_s20  ;;  %s9225_s20 = smul.u32 3, %s10447_s19 }
 0x670   : > { %v7229_v8 = vld [vmem:[#allocation2 + $0x20] sm:$0xf] }
 0x671   : > { %s760_s21 = scalar_lea.vmem %s10415_s23, %s9225_s20 }
 0x672   : > { %6227 = vrot.lane.b32.xlu1 %v10081_v56, %s9266_s8 }
 0x673   : > { %6231 = vrot.lane.b32.xlu0 %v6221_v63, %s9266_s8  ;;  %s10440_s8 = sld [smem:[#allocation9_spill]] }
 0x676   : > { %6399 = vrot.lane.b32.xlu1 %v6389_v58, %s9267_s4  ;;  %v8792_v58 = vld [vmem:[%s10408_s14 + $0xe] sm:$0x3] }
 0x677   : > { %6397 = vrot.lane.b32.xlu0 %v10086_v57, %s9267_s4 }
 0x679   : > { %v776_v9 = vld [vmem:[%s10440_s8] sm:$0x3] }
 0x67a   : > { %6565 = vrot.lane.b32.xlu1 %v10086_v57, %s9264_s3 }
 0x67b   : > { %6395 = vrot.lane.b32.xlu0 %v10081_v56, %s9267_s4 }
 0x67e   : > { %6563 = vrot.lane.b32.xlu1 %v10081_v56, %s9264_s3 }
 0x67f   : > { %6567 = vrot.lane.b32.xlu0 %v6557_v59, %s9264_s3 }
 0x682   : > { %6735 = vrot.lane.b32.xlu1 %v6725_v21, %s9268_s1 }
 0x683   : > { %6733 = vrot.lane.b32.xlu0 %v10086_v57, %s9268_s1 }
 0x686   : > { %6901 = vrot.lane.b32.xlu1 %v10086_v57, %s9269_s5 }
 0x687   : > { %6731 = vrot.lane.b32.xlu0 %v10081_v56, %s9268_s1 }
 0x68a   : > { %6899 = vrot.lane.b32.xlu1 %v10081_v56, %s9269_s5 }
 0x68b   : > { %6903 = vrot.lane.b32.xlu0 %v6893_v61, %s9269_s5  ;;  %s10441_s5 = sld [smem:[#allocation13_spill]] }
 0x68e   : > { %7071 = vrot.lane.b32.xlu1 %v7061_v0, %s9270_s26 }
 0x68f   : > { %7069 = vrot.lane.b32.xlu0 %v10086_v57, %s9270_s26 }
 0x691   : > { %v2502_v10 = vld [vmem:[%s10441_s5] sm:$0x3] }
 0x692   : > { %7237 = vrot.lane.b32.xlu1 %v10086_v57, %s9271_s27 }
 0x693   : > { %7067 = vrot.lane.b32.xlu0 %v10081_v56, %s9270_s26  ;;  %s764_s26 = scalar_lea.vmem %s10416_s24, %s9225_s20 }
 0x696   : > { %7235 = vrot.lane.b32.xlu1 %v10081_v56, %s9271_s27 }
 0x697   : > { %7239 = vrot.lane.b32.xlu0 %v7229_v8, %s9271_s27  ;;  %v10245_v8 = vld [vmem:[%s10408_s14 + $0x10] sm:$0x3] }
 0x69a   : > { %779 = vperm.xlu1 %9248, %v776_v9  }
 0x69b   : > { %2505 = vperm.xlu0 %9247, %v2502_v10  }
 0x69e   : > { %7398 = vperm.xlu1 %9248, %v5903_v46  }
 0x69f   : > { %4206 = vperm.xlu0 %9247, %v4203_v11  }
 0x6a2   : > { %8059 = vperm.xlu1 %9248, %v8056_v12  }
 0x6a3   : > { %8046 = vperm.xlu0 %9247, %v8043_v13  }
 0x6a7   : > { %8226 = vperm.xlu0 %9247, %v8223_v14  }
 0x6dc   : > { %v5917_v60 = vpop.permute.xlu1 %5916 }
 0x6dd   : > { %9080 = vmatpush3.msk.msra.mxu1 %vm798_vm1, %v5917_v60  ;;  %v5915_v22 = vpop.permute.xlu0 %5914 }
 0x6de   : > { %9084 = vmatprep.subr.mxu1 %v9940_v40  ;;  %9082 = vmatmul.mubr.msk.f32.vlgmr.msra.gmra.mrb[60].mxu1 %vm794_vm2, %v8751_v15  ;;  %v5919_v19 = vsel %vm989_vm4, %v5915_v22, %v5917_v60 }
 0x6df   : > { %9085 = vmatpush3.msk.msra.mxu1 %vm798_vm1, %v5905_v55  ;;  %9086 = vmatprep.mubr.msk.f32.mxu1 %vm9263_vm0, %v9940_v40  ;;  %v8786_v55 = vld [vmem:[%s10408_s14 + $0xc] sm:$0x3] }
 0x6e0   : > { %v6230_v23 = vpop.permute.xlu1 %6229  ;;  %8752 = vmatprep.subr.msk.mxu0 %vm798_vm1, %v5919_v19  ;;  %9089 = vmatprep.subr.mxu1 %v9940_v40 }
 0x6e1   : > { %v5913_v24 = vpop.permute.xlu0 %5912 }
 0x6e2   : > { %9087 = vmatmul.mubr.msk.f32.vlgmr.msra.gmra.mrb[62].mxu1 %vm794_vm2, %v5906_v20  ;;  %v5918_v25 = vsel %vm989_vm4, %v5913_v24, %v5915_v22 }
 0x6e3   : > { %9091 = vmatprep.mubr.msk.f32.mxu1 %vm9263_vm0, %v9940_v40  ;;  %8753 = vmatpush1.msk.msra.mxu0 %vm798_vm1, %v5918_v25 }
 0x6e4   : > { %v6228_v26 = vpop.permute.xlu1 %6227  ;;  %8754 = vmatmul.mubr.msk.f32.vlgmr.msra.gmra.mrb[12].mxu0 %vm794_vm2, %v8751_v15  ;;  %8757 = vmatprep.subr.msk.mxu0 %vm798_vm1, %v10086_v57 }
 0x6e5   : > { %8758 = vmatpush1.msk.msra.mxu0 %vm798_vm1, %v10081_v56  ;;  %v6232_v27 = vpop.permute.xlu0 %6231  ;;  %6143 = vmatprep.mubr.f32.mxu0 %v9940_v40  ;;  %v6233_v35 = vsel %vm1305_vm5, %v6228_v26, %v6230_v23 }
 0x6e6   : > { %v6234_v3 = vsel %vm1305_vm5, %v6230_v23, %v6232_v27  ;;  %9090 = vmatpush3.msk.msra.mxu1 %vm798_vm1, %v6232_v27  ;;  %vm7423_vm5 = vcmask 1041408  }
 0x6e7   : > { %8763 = vmatprep.subr.msk.mxu0 %vm798_vm1, %v6234_v3  ;;  %9094 = vmatprep.subr.mxu1 %v9940_v40 }
 0x6e8   : > { %v6400_v29 = vpop.permute.xlu1 %6399  ;;  %9092 = vmatmul.mubr.msk.f32.vlgmr.msra.gmra.mrb[64].mxu1 %vm794_vm2, %v8762_v28 }
 0x6e9   : > { %9095 = vmatpush3.msk.msra.mxu1 %vm798_vm1, %v6400_v29  ;;  %v6398_v31 = vpop.permute.xlu0 %6397  ;;  %9096 = vmatprep.mubr.msk.f32.mxu1 %vm9263_vm0, %v9940_v40 }
 0x6ea   : > { %9099 = vmatprep.subr.mxu1 %v9940_v40  ;;  %v6402_v36 = vsel %vm1474_vm6, %v6398_v31, %v6400_v29 }
 0x6ec   : > { %v6566_v33 = vpop.permute.xlu1 %6565  ;;  %8759 = vmatmul.mubr.msk.f32.vlgmr.msra.gmra.mrb[12].mxu0 %vm794_vm2, %v5906_v20  ;;  %9097 = vmatmul.mubr.msk.f32.vlgmr.msra.gmra.mrb[66].mxu1 %vm794_vm2, %v8768_v32 }
 0x6ed   : > { %8764 = vmatpush1.msk.msra.mxu0 %vm798_vm1, %v6233_v35  ;;  %v6396_v37 = vpop.permute.xlu0 %6395  ;;  %6308 = vmatprep.mubr.f32.mxu0 %v9940_v40 }
 0x6ee   : > { %8769 = vmatprep.subr.msk.mxu0 %vm798_vm1, %v6402_v36  ;;  %9101 = vmatprep.mubr.msk.f32.mxu1 %vm9263_vm0, %v9940_v40  ;;  %v6401_v43 = vsel %vm1474_vm6, %v6396_v37, %v6398_v31  ;;  %vm7419_vm6 = vcmask 15360   ;;  %v8804_v31 = vld [vmem:[%s10410_s16 + $0x4] sm:$0xf] }
 0x6f0   : > { %v6564_v38 = vpop.permute.xlu1 %6563 }
 0x6f1   : > { %v6568_v4 = vpop.permute.xlu0 %6567  ;;  %v6569_v18 = vsel %vm791_vm3, %v6564_v38, %v6566_v33 }
 0x6f2   : > { %9100 = vmatpush3.msk.msra.mxu1 %vm798_vm1, %v6568_v4  ;;  %v6570_v17 = vsel %vm791_vm3, %v6566_v33, %v6568_v4  ;;  %vm10442_vm3 = vcmask 736256  }
 0x6f3   : > { %9104 = vmatprep.subr.mxu1 %v9940_v40  ;;  %9102 = vmatmul.mubr.msk.f32.vlgmr.msra.gmra.mrb[68].mxu1 %vm794_vm2, %v8774_v39  ;;  %vm10443_vm4 = vmmov %vm10442_vm3 }
 0x6f4   : > { %v6736_v42 = vpop.permute.xlu1 %6735  ;;  %8765 = vmatmul.mubr.msk.f32.vlgmr.msra.gmra.mrb[12].mxu0 %vm794_vm2, %v8762_v28  ;;  %9106 = vmatprep.mubr.msk.f32.mxu1 %vm9263_vm0, %v9940_v40 }
 0x6f5   : > { %9105 = vmatpush3.msk.msra.mxu1 %vm798_vm1, %v6736_v42  ;;  %8770 = vmatpush1.msk.msra.mxu0 %vm798_vm1, %v6401_v43  ;;  %v6734_v51 = vpop.permute.xlu0 %6733 }
 0x6f6   : > { %6476 = vmatprep.mubr.f32.mxu0 %v9940_v40  ;;  %8775 = vmatprep.subr.msk.mxu0 %vm798_vm1, %v6570_v17  ;;  %v6738_v56 = vsel %vm1792_vm7, %v6734_v51, %v6736_v42  ;;  %v7416_v17 = vld [vmem:[%s10410_s16] sm:$0xf] }
 0x6f7   : > { %9107 = vmatmul.mubr.msk.f32.vlgmr.msra.gmra.mrb[70].mxu1 %vm794_vm2, %v8780_v48  ;;  %9109 = vmatprep.subr.mxu1 %v9940_v40 }
 0x6f8   : > { %v6902_v53 = vpop.permute.xlu1 %6901  ;;  %9111 = vmatprep.mubr.msk.f32.mxu1 %vm9263_vm0, %v9940_v40 }
 0x6f9   : > { %v6732_v54 = vpop.permute.xlu0 %6731 }
 0x6fa   : > { %v6737_v21 = vsel %vm1792_vm7, %v6732_v54, %v6734_v51 }
 0x6fc   : > { %v6900_v16 = vpop.permute.xlu1 %6899  ;;  %8771 = vmatmul.mubr.msk.f32.vlgmr.msra.gmra.mrb[12].mxu0 %vm794_vm2, %v8768_v32 }
 0x6fd   : > { %8776 = vmatpush1.msk.msra.mxu0 %vm798_vm1, %v6569_v18  ;;  %v6904_v57 = vpop.permute.xlu0 %6903  ;;  %6644 = vmatprep.mubr.f32.mxu0 %v9940_v40  ;;  %v6905_v10 = vsel %vm1961_vm8, %v6900_v16, %v6902_v53 }
 0x6fe   : > { %8781 = vmatprep.subr.msk.mxu0 %vm798_vm1, %v6738_v56  ;;  %9110 = vmatpush3.msk.msra.mxu1 %vm798_vm1, %v6904_v57  ;;  %v6906_v61 = vsel %vm1961_vm8, %v6902_v53, %v6904_v57  ;;  %v8815_v57 = vld [vmem:[%s10410_s16 + $0x8] sm:$0xf] }
 0x6ff   : > { %9114 = vmatprep.subr.mxu1 %v9940_v40  ;;  %9112 = vmatmul.mubr.msk.f32.vlgmr.msra.gmra.mrb[72].mxu1 %vm794_vm2, %v8786_v55 }
 0x700   : > { %v7072_v63 = vpop.permute.xlu1 %7071  ;;  %9116 = vmatprep.mubr.msk.f32.mxu1 %vm9263_vm0, %v9940_v40 }
 0x701   : > { %9115 = vmatpush3.msk.msra.mxu1 %vm798_vm1, %v7072_v63  ;;  %v7070_v59 = vpop.permute.xlu0 %7069 }
 0x702   : > { %9119 = vmatprep.subr.mxu1 %v9940_v40  ;;  %v7074_v46 = vsel %vm2130_vm9, %v7070_v59, %v7072_v63 }
 0x703   : > { %9117 = vmatmul.mubr.msk.f32.vlgmr.msra.gmra.mrb[74].mxu1 %vm794_vm2, %v8792_v58 }
 0x704   : > { %8777 = vmatmul.mubr.msk.f32.vlgmr.msra.gmra.mrb[12].mxu0 %vm794_vm2, %v8774_v39  ;;  %9121 = vmatprep.mubr.msk.f32.mxu1 %vm9263_vm0, %v9940_v40  ;;  %v7238_v11 = vpop.permute.xlu1 %7237 }
 0x705   : > { %8782 = vmatpush1.msk.msra.mxu0 %vm798_vm1, %v6737_v21  ;;  %v7068_v0 = vpop.permute.xlu0 %7067  ;;  %6812 = vmatprep.mubr.f32.mxu0 %v9940_v40 }
 0x706   : > { %8787 = vmatprep.subr.msk.mxu0 %vm798_vm1, %v6906_v61  ;;  %v7073_v12 = vsel %vm2130_vm9, %v7068_v0, %v7070_v59 }
 0x708   : > { %v7236_v13 = vpop.permute.xlu1 %7235 }
 0x709   : > { %v7240_v9 = vpop.permute.xlu0 %7239  ;;  %v7241_v25 = vsel %vm10443_vm4, %v7236_v13, %v7238_v11 }
 0x70a   : > { %9120 = vmatpush3.msk.msra.mxu1 %vm798_vm1, %v7240_v9  ;;  %v7242_v14 = vsel %vm10442_vm3, %v7238_v11, %v7240_v9 }
 0x70b   : > { %9122 = vmatmul.mubr.msk.f32.vlgmr.msra.gmra.mrb[76].mxu1 %vm794_vm2, %v10245_v8  ;;  %9124 = vmatprep.subr.mxu1 %v9940_v40 }
 0x70c   : > { %8783 = vmatmul.mubr.msk.f32.vlgmr.msra.gmra.mrb[12].mxu0 %vm794_vm2, %v8780_v48  ;;  %9126 = vmatprep.mubr.msk.f32.mxu1 %vm9263_vm0, %v9940_v40 }
 0x70d   : > { %8788 = vmatpush1.msk.msra.mxu0 %vm798_vm1, %v6905_v10  ;;  %6980 = vmatprep.mubr.f32.mxu0 %v9940_v40 }
 0x70e   : > { %8793 = vmatprep.subr.msk.mxu0 %vm798_vm1, %v7074_v46 }
 0x714   : > { %8789 = vmatmul.mubr.msk.f32.vlgmr.msra.gmra.mrb[12].mxu0 %vm794_vm2, %v8786_v55 }
 0x715   : > { %8794 = vmatpush1.msk.msra.mxu0 %vm798_vm1, %v7073_v12  ;;  %7148 = vmatprep.mubr.f32.mxu0 %v9940_v40 }
 0x716   : > { %8799 = vmatprep.subr.msk.mxu0 %vm798_vm1, %v7242_v14 }
 0x719   : > { %v780_v15 = vpop.permute.xlu1 %779 }
 0x71a   : > { %v874_v60 = vadd.f32 %v9651_v6, %v780_v15  ;;  %v943_v22 = vadd.f32 %v9647_v2, %v780_v15  ;;  %v2506_v19 = vpop.permute.xlu0 %2505  ;;  %v872_v20 = vadd.f32 %v9649_v5, %v780_v15 }
 0x71b   : > { %v2584_v24 = vadd.f32 %v9790_v44, %v2506_v19  ;;  %v2586_v26 = vadd.f32 %v9797_v49, %v2506_v19  ;;  %v2655_v27 = vadd.f32 %v9792_v45, %v2506_v19 }
 0x71c   : > { %v964_v23 = vmul.f32 %v9660_v41, %v943_v22  ;;  %8795 = vmatmul.mubr.msk.f32.vlgmr.msra.gmra.mrb[12].mxu0 %vm794_vm2, %v8792_v58  ;;  %v963_v28 = vmul.f32 %v9676_v52, %v874_v60  ;;  %v962_v49 = vmul.f32 %v9674_v50, %v872_v20 }
 0x71d   : > { %v2658_v6 = vmul.f32 %v2584_v24, %v9674_v50  ;;  %8800 = vmatpush1.msk.msra.mxu0 %vm798_vm1, %v7241_v25  ;;  %7316 = vmatprep.mubr.f32.mxu0 %v9940_v40  ;;  %v2659_v2 = vmul.f32 %v2586_v26, %v9676_v52  ;;  %v2660_v5 = vmul.f32 %v2655_v27, %v9660_v41 }
 0x71e   : > { %v4207_v44 = vpop.permute.xlu0 %4206  ;;  %v970_v45 = vmul.f32 0.05, %v964_v23  ;;  %vm967_vm9 = vcmp.ge.f32.partialorder %v964_v23, 0.0  ;;  %v969_v37 = vmul.f32 0.05, %v963_v28  ;;  %vm966_vm12 = vcmp.ge.f32.partialorder %v963_v28, 0.0 }
 0x71f   : > { %v4287_v3 = vadd.f32 %v9982_v1, %v4207_v44  ;;  %v4356_v29 = vadd.f32 %v9984_v7, %v4207_v44  ;;  %v2666_v32 = vmul.f32 0.05, %v2660_v5  ;;  %vm2662_vm7 = vcmp.ge.f32.partialorder %v2659_v2, 0.0 }
 0x720   : > { %v2665_v33 = vmul.f32 0.05, %v2659_v2  ;;  %vm2663_vm8 = vcmp.ge.f32.partialorder %v2660_v5, 0.0  ;;  %v2664_v35 = vmul.f32 0.05, %v2658_v6  ;;  %vm2661_vm10 = vcmp.ge.f32.partialorder %v2658_v6, 0.0 }
 0x721   : > { %v4361_v36 = vmul.f32 %v4356_v29, %v9660_v41  ;;  %v4360_v38 = vmul.f32 %v4287_v3, %v9676_v52  ;;  %v2669_v4 = vsel %vm2663_vm8, %v2660_v5, %v2666_v32  ;;  %v973_v7 = vsel %vm967_vm9, %v964_v23, %v970_v45  ;;  %v8821_v45 = vld [vmem:[%s10410_s16 + $0xc] sm:$0xf] }
 0x722   : > { %v2668_v39 = vsel %vm2662_vm7, %v2659_v2, %v2665_v33  ;;  %9125 = vmatpush3.msk.msra.mxu1 %vm7423_vm5, %v2669_v4  ;;  %v968_v42 = vmul.f32 0.05, %v962_v49  ;;  %v4285_v43 = vadd.f32 %v9977_v62, %v4207_v44  ;;  %v2667_v48 = vsel %vm2661_vm10, %v2658_v6, %v2664_v35  ;;  %v7399_v2 = vpop.permute.xlu1 %7398 }
 0x723   : > { %v4367_v1 = vmul.f32 0.05, %v4361_v36  ;;  %8805 = vmatprep.subr.msk.mxu0 %vm7423_vm5, %v2668_v39  ;;  %9127 = vmatmul.mubr.msk.f32.vlgmr.msra.gmra.mrb[78].mxu1 %vm7419_vm6, %v8804_v31  ;;  %vm4364_vm13 = vcmp.ge.f32.partialorder %v4361_v36, 0.0  ;;  %v972_v51 = vsel %vm966_vm12, %v963_v28, %v969_v37  ;;  %vm965_vm14 = vcmp.ge.f32.partialorder %v962_v49, 0.0 }
 0x724   : > { %9129 = vmatprep.subr.mxu1 %v9940_v40  ;;  %8801 = vmatmul.mubr.msk.f32.vlgmr.msra.gmra.mrb[12].mxu0 %vm794_vm2, %v10245_v8  ;;  %v4366_v54 = vmul.f32 0.05, %v4360_v38  ;;  %vm4363_vm11 = vcmp.ge.f32.partialorder %v4360_v38, 0.0  ;;  %v4359_v62 = vmul.f32 %v4285_v43, %v9674_v50  ;;  %v971_v16 = vsel %vm965_vm14, %v962_v49, %v968_v42 }
 0x725   : > { %9130 = vmatpush3.msk.msra.mxu1 %vm7423_vm5, %v973_v7  ;;  %8806 = vmatpush1.msk.msra.mxu0 %vm7423_vm5, %v2667_v48  ;;  %v4370_v53 = vsel %vm4364_vm13, %v4361_v36, %v4367_v1  ;;  %vm8394_vm8 = vcmask 240640  }
 0x726   : > { %9131 = vmatprep.mubr.msk.f32.mxu1 %vm9263_vm0, %v9940_v40  ;;  %8810 = vmatprep.subr.msk.mxu0 %vm7423_vm5, %v972_v51  ;;  %v4369_v18 = vsel %vm4363_vm11, %v4360_v38, %v4366_v54  ;;  %v4365_v55 = vmul.f32 0.05, %v4359_v62  ;;  %vm4362_vm15 = vcmp.ge.f32.partialorder %v4359_v62, 0.0 }
 0x727   : > { %9134 = vmatprep.subr.mxu1 %v9940_v40  ;;  %7497 = vmatprep.mubr.f32.mxu0 %v9940_v40 }
 0x728   : > { %9132 = vmatmul.mubr.msk.f32.vlgmr.msra.gmra.mrb[80].mxu1 %vm7419_vm6, %v7416_v17  ;;  %8807 = vmatmul.mubr.msk.f32.vlgmr.msra.gmra.mrb[14].mxu0 %vm7419_vm6, %v8804_v31  ;;  %v4368_v56 = vsel %vm4362_vm15, %v4359_v62, %v4365_v55 }
 0x729   : > { %9135 = vmatpush3.msk.msra.mxu1 %vm7423_vm5, %v4370_v53  ;;  %8811 = vmatpush1.msk.msra.mxu0 %vm7423_vm5, %v971_v16 }
 0x72a   : > { %7650 = vmatprep.mubr.f32.mxu0 %v9940_v40  ;;  %8816 = vmatprep.subr.msk.mxu0 %vm7423_vm5, %v4369_v18  ;;  %v8047_v18 = vpop.permute.xlu0 %8046 }
 0x72b   : > { %9136 = vmatprep.mubr.msk.f32.mxu1 %vm9263_vm0, %v9940_v40  ;;  %9139 = vmatprep.subr.mxu1 %v9940_v40 }
 0x72c   : > { %9137 = vmatmul.mubr.msk.f32.vlgmr.msra.gmra.mrb[82].mxu1 %vm7419_vm6, %v8815_v57 }
 0x72d   : > { %9141 = vmatprep.mubr.msk.f32.mxu1 %vm9263_vm0, %v9940_v40 }
 0x730   : > { %8812 = vmatmul.mubr.msk.f32.vlgmr.msra.gmra.mrb[14].mxu0 %vm7419_vm6, %v7416_v17 }
 0x731   : > { %8817 = vmatpush1.msk.msra.mxu0 %vm7423_vm5, %v4368_v56  ;;  %7805 = vmatprep.mubr.f32.mxu0 %v9940_v40 }
 0x738   : > { %8818 = vmatmul.mubr.msk.f32.vlgmr.msra.gmra.mrb[14].mxu0 %vm7419_vm6, %v8815_v57  ;;  %v8055_v57 = vld [vmem:[%s10412_s18] sm:$0x1] }
 0x739   : > { %7963 = vmatprep.mubr.f32.mxu0 %v9940_v40 }
 0x7b1   : > { %v6066_v63 = vpop.f32.mrb[60].mxu1 }
 0x7b2   : > { %v9083_v58 = vpop.f32.mrb[61].mxu1 }
 0x7b5   : > { %v6216_v59 = vpop.f32.mrb[62].mxu1 }
 0x7b6   : > { %v6217_v21 = vadd.f32 %v6216_v59, %v6066_v63  ;;  %v9088_v61 = vpop.f32.mrb[63].mxu1 }
 0x7bb   : > { %v6381_v0 = vpop.f32.mrb[64].mxu1 }
 0x7bc   : > { %v6387_v8 = vadd.f32 %v6381_v0, %v6217_v21  ;;  %v9093_v9 = vpop.f32.mrb[65].mxu1 }
 0x7bd   : > { %v8060_v9 = vpop.permute.xlu1 %8059 }
 0x7bf   : > { %v6549_v10 = vpop.f32.mrb[66].mxu1 }
 0x7c0   : > { %v6555_v46 = vadd.f32 %v6549_v10, %v6387_v8  ;;  %v9098_v11 = vpop.f32.mrb[67].mxu1  ;;  %v8065_v10 = vrot.slane %v8060_v9, %v9670_v47 }
 0x7c6   : > { %v6717_v12 = vpop.f32.mrb[68].mxu1 }
 0x7c7   : > { %v6723_v13 = vadd.f32 %v6717_v12, %v6555_v46  ;;  %v9103_v14 = vpop.f32.mrb[69].mxu1 }
 0x7c8   : > { %v8222_v14 = vld [vmem:[#allocation4] sm:$0x1] }
 0x7ca   : > { %v6885_v15 = vpop.f32.mrb[70].mxu1 }
 0x7cb   : > { %v6891_v60 = vadd.f32 %v6885_v15, %v6723_v13  ;;  %v9108_v22 = vpop.f32.mrb[71].mxu1  ;;  %v9274_v15 = vmov 1966171168  }
 0x7d2   : > { %v7053_v19 = vpop.f32.mrb[72].mxu1 }
 0x7d3   : > { %v7059_v20 = vadd.f32 %v7053_v19, %v6891_v60  ;;  %v9113_v23 = vpop.f32.mrb[73].mxu1  ;;  %v8398_v60 = vunpack.c.l.s4 %v9274_v15 }
 0x7d5   : > { %v8399_v22 = vunpack.c.0.s8 %v8398_v60 }
 0x7d6   : > { %v7221_v24 = vpop.f32.mrb[74].mxu1 }
 0x7d7   : > { %v7227_v25 = vadd.f32 %v7221_v24, %v7059_v20  ;;  %v9118_v26 = vpop.f32.mrb[75].mxu1 }
 0x7de   : > { %v7389_v27 = vpop.f32.mrb[76].mxu1 }
 0x7df   : > { %v7395_v28 = vadd.f32 %v7389_v27, %v7227_v25  ;;  %v9123_v6 = vpop.f32.mrb[77].mxu1  ;;  %v8402_v25 = vsub.s32 %v8399_v22, %v9654_v34 }
 0x7e1   : > { %v7403_v5 = vadd.f32 %v7399_v2, %v7395_v28 }
 0x7e3   : > { %v7406_v44 = vmul.f32 %v7403_v5, %v9660_v41 }
 0x7e5   : > { %v7412_v49 = vmul.f32 0.05, %v7406_v44  ;;  %vm7409_vm3 = vcmp.ge.f32.partialorder %v7406_v44, 0.0 }
 0x7e7   : > { %v7415_v3 = vsel %vm7409_vm3, %v7406_v44, %v7412_v49 }
 0x7e8   : > { %9140 = vmatpush3.msk.msra.mxu1 %vm7423_vm5, %v7415_v3 }
 0x7e9   : > { %9142 = vmatmul.mubr.msk.f32.vlgmr.msra.gmra.mrb[84].mxu1 %vm7419_vm6, %v8821_v45  ;;  %9144 = vmatprep.subr.mxu1 %v9940_v40 }
 0x7ea   : > { %9146 = vmatprep.mubr.msk.f32.mxu1 %vm9263_vm0, %v9940_v40 }
 0x7f6   : > { %v7570_v29 = vpop.f32.mrb[78].mxu1 }
 0x7f7   : > { %v7318_v31 = vpop.f32.mrb[12].mxu0  ;;  %v9128_v32 = vpop.f32.mrb[79].mxu1 }
 0x7f8   : > { %v7401_v33 = vadd.f32 %v7399_v2, %v7318_v31  ;;  %v7320_v35 = vpop.f32.mrb[13].mxu0 }
 0x7f9   : > { %v7402_v36 = vadd.f32 %v7399_v2, %v7320_v35 }
 0x7fa   : > { %v7404_v37 = vmul.f32 %v7401_v33, %v9674_v50 }
 0x7fb   : > { %v7723_v38 = vpop.f32.mrb[80].mxu1  ;;  %v7405_v39 = vmul.f32 %v7402_v36, %v9676_v52 }
 0x7fc   : > { %v7724_v4 = vadd.f32 %v7723_v38, %v7570_v29  ;;  %v9133_v1 = vpop.f32.mrb[81].mxu1  ;;  %v7410_v7 = vmul.f32 0.05, %v7404_v37  ;;  %vm7407_vm4 = vcmp.ge.f32.partialorder %v7404_v37, 0.0 }
 0x7fd   : > { %v7411_v42 = vmul.f32 0.05, %v7405_v39  ;;  %vm7408_vm7 = vcmp.ge.f32.partialorder %v7405_v39, 0.0 }
 0x7fe   : > { %v7413_v48 = vsel %vm7407_vm4, %v7404_v37, %v7410_v7 }
 0x7ff   : > { %v7414_v43 = vsel %vm7408_vm7, %v7405_v39, %v7411_v42  ;;  %v7878_v17 = vpop.f32.mrb[82].mxu1 }
 0x800   : > { %8822 = vmatprep.subr.msk.mxu0 %vm7423_vm5, %v7414_v43  ;;  %v7884_v51 = vadd.f32 %v7878_v17, %v7724_v4  ;;  %v9138_v53 = vpop.f32.mrb[83].mxu1 }
 0x801   : > { %8823 = vmatpush1.msk.msra.mxu0 %vm7423_vm5, %v7413_v48  ;;  %vm8233_vm5 = vcmask 7168  }
 0x802   : > { %8824 = vmatmul.mubr.msk.f32.vlgmr.msra.gmra.mrb[14].mxu0 %vm7419_vm6, %v8821_v45  ;;  %v8227_v45 = vpop.permute.xlu0 %8226 }
 0x803   : > { %8142 = vmatprep.mubr.f32.mxu0 %v9940_v40  ;;  %v8232_v3 = vrot.slane %v8227_v45, %v9670_v47 }
 0x8bc   : > { %v8036_v54 = vpop.f32.mrb[84].mxu1 }
 0x8bd   : > { %v8042_v62 = vadd.f32 %v8036_v54, %v7884_v51  ;;  %v9143_v16 = vpop.f32.mrb[85].mxu1 }
 0x8bf   : > { %v8051_v55 = vadd.f32 %v8047_v18, %v8042_v62 }
 0x8c1   : > { %v8054_v56 = vmul.f32 %v8051_v55, %v9660_v41 }
 0x8c3   : > { %9145 = vmatpush3.msk.msra.mxu1 %vm798_vm1, %v8054_v56  ;;  %8395 = vst.msk [vmem:[%s756_s25 + $0x8] sm:$0xf] %vm8394_vm8, %v8054_v56 }
 0x8c4   : > { %9147 = vmatmul.mubr.msk.f32.vlgmr.msra.gmra.mrb[86].mxu1 %vm794_vm2, %v8055_v57  ;;  %9149 = vmatprep.subr.mxu1 %v9940_v40 }
 0x8c5   : > { %9151 = vmatprep.mubr.msk.f32.mxu1 %vm9263_vm0, %v9940_v40  ;;  %vm8237_vm0 = vcmask 1040384  }
 0x8d5   : > { %v7965_v63 = vpop.f32.mrb[14].mxu0 }
 0x8d6   : > { %v8049_v58 = vadd.f32 %v8047_v18, %v7965_v63  ;;  %v7967_v59 = vpop.f32.mrb[15].mxu0 }
 0x8d7   : > { %v8050_v21 = vadd.f32 %v8047_v18, %v7967_v59 }
 0x8d8   : > { %v8052_v61 = vmul.f32 %v8049_v58, %v9674_v50 }
 0x8d9   : > { %v8053_v0 = vmul.f32 %v8050_v21, %v9676_v52 }
 0x8db   : > { %v8391_v8 = vcombine.low %v8052_v61, %v8053_v0  ;;  %8827 = vmatprep.subr.msk.mxu0 %vm798_vm1, %v8053_v0 }
 0x8dc   : > { %8828 = vmatpush1.msk.msra.mxu0 %vm798_vm1, %v8052_v61  ;;  %vm10376_vm1 = vcmp.lt.s32.totalorder %v947_v30, 286 }
 0x8dd   : > { %8393 = vst [vmem:[%s756_s25] sm:$0xff] %v8391_v8  ;;  %8829 = vmatmul.mubr.msk.f32.vlgmr.msra.gmra.mrb[16].mxu0 %vm794_vm2, %v8055_v57 }
 0x8de   : > { %8311 = vmatprep.mubr.f32.mxu0 %v9940_v40 }
 0x997   : > { %v8215_v46 = vpop.f32.mrb[86].mxu1 }
 0x998   : > { %v8216_v11 = vadd.f32 %v8215_v46, %v8065_v10  ;;  %v9148_v12 = vpop.f32.mrb[87].mxu1 }
 0x99a   : > { %v8221_v13 = vmul.f32 %v8216_v11, %v9660_v41 }
 0x99c   : > { %9150 = vmatpush3.msk.msra.mxu1 %vm8237_vm0, %v8221_v13  ;;  %v8410_v28 = vrot.slane %v8221_v13, %v8402_v25 }
 0x99d   : > { %9152 = vmatmul.mubr.msk.f32.vlgmr.msra.gmra.mrb[88].mxu1 %vm8233_vm5, %v8222_v14 }
 0x9b0   : > { %v8144_v40 = vpop.f32.mrb[16].mxu0 }
 0x9b1   : > { %v8145_v19 = vadd.f32 %v8144_v40, %v8065_v10  ;;  %v8146_v20 = vpop.f32.mrb[17].mxu0 }
 0x9b2   : > { %v8147_v23 = vadd.f32 %v8146_v20, %v8065_v10 }
 0x9b3   : > { %v8219_v24 = vmul.f32 %v8145_v19, %v9674_v50 }
 0x9b4   : > { %v8220_v26 = vmul.f32 %v8147_v23, %v9676_v52 }
 0x9b6   : > { %v8396_v27 = vcombine.low %v8219_v24, %v8220_v26  ;;  %8832 = vmatprep.subr.msk.mxu0 %vm8237_vm0, %v8220_v26 }
 0x9b7   : > { %8833 = vmatpush1.msk.msra.mxu0 %vm8237_vm0, %v8219_v24 }
 0x9b8   : > { %v8403_v6 = vrot.slane %v8396_v27, %v8402_v25  ;;  %8834 = vmatmul.mubr.msk.f32.vlgmr.msra.gmra.mrb[18].mxu0 %vm8233_vm5, %v8222_v14 }
 0x9ba   : > { %v8411_v2 = vcombine.low %v8403_v6, %v8410_v28 }
 0x9bc   : > { %v8418_v5 = vrot.slane %v8411_v2, %v8402_v25 }
 0x9be   : > { %8424 = vst.msk [vmem:[%s760_s21] sm:$0x7] %vm10376_vm1, %v8418_v5 }
 0xa70   : > { %v8384_v44 = vpop.f32.mrb[88].mxu1 }
 0xa71   : > { %v9153_v49 = vpop.f32.mrb[89].mxu1  ;;  %v8385_v29 = vadd.f32 %v8384_v44, %v8232_v3 }
 0xa73   : > { %v8390_v30 = vmul.f32 %v8385_v29, %v9660_v41 }
 0xa75   : > { %v8442_v39 = vrot.slane %v8390_v30, %v8402_v25 }
 0xa8b   : > { %v8313_v31 = vpop.f32.mrb[18].mxu0 }
 0xa8c   : > { %v8314_v32 = vadd.f32 %v8313_v31, %v8232_v3  ;;  %v8315_v33 = vpop.f32.mrb[19].mxu0 }
 0xa8d   : > { %v8316_v35 = vadd.f32 %v8315_v33, %v8232_v3 }
 0xa8e   : > { %v8388_v36 = vmul.f32 %v8314_v32, %v9674_v50 }
 0xa8f   : > { %v8389_v37 = vmul.f32 %v8316_v35, %v9676_v52 }
 0xa91   : > { %v8428_v38 = vcombine.low %v8388_v36, %v8389_v37 }
 0xa93   : > { %v8435_v4 = vrot.slane %v8428_v38, %v8402_v25 }
 0xa95   : > { %v8443_v1 = vcombine.low %v8435_v4, %v8442_v39 }
 0xa97   : > { %v8450_v47 = vrot.slane %v8443_v1, %v8402_v25 }
 0xa99   : > { %8452 = vst.msk [vmem:[%s764_s26] sm:$0x7] %vm10376_vm1, %v8450_v47 }
 0xa9a PF: > { %s41_s29 = sadd.s32 1, %s9260_s29  }
 0xa9b   : > { %p38_p4 = scmp.ge.s32.totalorder %s41_s29, 4  }
 0xa9d   :  { %40 = sbr.rel (!%p38_p4) target bundleno = 10 (0xa), region = 199 }

</bundles_post_ra>
